<compile_context>
chip_gen: v7x
topology: tpu7x:2x2x1
jax: 0.10.0
libtpu: 0.0.40
codegen_flags: <defaults>
</compile_context>

<pallas_src>
import functools

import jax
import jax.numpy as jnp
from jax.experimental import pallas as pl
from jax.experimental.pallas import tpu as pltpu

ALPHA = 0.25            # nn.PReLU() default init, treated as a constant
CH_ALIGN = 16           # bf16 sublane packing alignment for channel dims
LANE = 128
VMEM_LIMIT = 48 * 1024 * 1024   # leave headroom below v7x's 64 MiB physical

_COMPILER_PARAMS = pltpu.CompilerParams(
    dimension_semantics=("parallel",), vmem_limit_bytes=VMEM_LIMIT)


def _round_up(x, m):
    return ((x + m - 1) // m) * m


def _cpad(c):
    return _round_up(c, CH_ALIGN)


# ---------------------------------------------------------------------------
# Canvas geometry
# ---------------------------------------------------------------------------
def _geometry(H, W):
    """Flattened zero-padded canvas with a lane-aligned interior slab.

    Output pixel (h, w) lives at interior column q = h*Wp + w of a Qpad-wide
    slab starting at canvas offset store_off = front + Wp + 1, which is a
    multiple of 128.  A 3x3 tap (kh, kw) reads the Qpad-wide slab starting at
    canvas offset front + kh*Wp + kw.
    """
    Wp, Hp = W + 2, H + 2
    shift = Wp + 1
    Qpad = _round_up(H * Wp, LANE)
    offsets = tuple(kh * Wp + kw for kh in range(3) for kw in range(3))
    max_off = max(offsets)
    front = (-shift) % LANE                 # makes front + shift lane aligned
    Ppad = _round_up(front + max_off + Qpad, LANE)
    return dict(H=H, W=W, Wp=Wp, Hp=Hp, shift=shift, Qpad=Qpad, Ppad=Ppad,
                offsets=offsets, front=front, store_off=front + shift)


# ---------------------------------------------------------------------------
# In-kernel helpers
# ---------------------------------------------------------------------------
def _interior_mask(geo):
    """(1, Qpad) bool mask of valid output columns, built in-kernel (no DMA)."""
    q = jax.lax.broadcasted_iota(jnp.int32, (1, geo["Qpad"]), 1)
    return jnp.logical_and((q % geo["Wp"]) < geo["W"], q < geo["H"] * geo["Wp"])


def _conv_mxu(load_tap, cin, w, b, tap_offs, prelu, *, rhs_ref, geo, mask):
    """im2col gather + ONE fused MXU matmul + bias / PReLU / interior mask."""
    Qpad, front = geo["Qpad"], geo["front"]
    kk = len(tap_offs)
    for k, off in enumerate(tap_offs):
        rhs_ref[k * cin:(k + 1) * cin, :] = load_tap(front + off)
    z = jnp.dot(w, rhs_ref[0:kk * cin, :], preferred_element_type=jnp.float32)
    if b is not None:
        z = z + b
    if prelu:
        z = jnp.where(z >= 0.0, z, ALPHA * z)
    return jnp.where(mask, z, 0.0)


# ---------------------------------------------------------------------------
# Fused trunk kernel: first_conv -> center -> RNet_a -> 5 ResBlocks ->
#                     RNet_B tail (+residual) -> mixer, all in VMEM.
# ---------------------------------------------------------------------------
def _trunk_kernel(x_ref, wf, bf, wc, bc, wa, ba, wrb, brb, wbo, bbo, wmx, bmx,
                  o_ref, c_a, c_b, c_ra, c_e, c_h, rhs, *, geo):
    Qpad, so = geo["Qpad"], geo["store_off"]
    offs3 = geo["offsets"]
    offs1 = (geo["shift"],)
    mask = _interior_mask(geo)

    # Zero the canvas scratch once; every layer afterwards issues exactly one
    # lane-aligned full-width interior store.
    for c in (c_a, c_b, c_ra, c_e, c_h):
        c[...] = jnp.zeros(c.shape, c.dtype)

    def slab(c_ref):
        return c_ref[:, so:so + Qpad]

    def store(c_ref, z):
        c_ref[:, so:so + Qpad] = z.astype(c_ref.dtype)

    conv = functools.partial(_conv_mxu, rhs_ref=rhs, geo=geo, mask=mask)

    # first_conv: 45(->48) -> 3(->16), 3x3, PReLU
    z = conv(lambda s: x_ref[0, :, s:s + Qpad], x_ref.shape[1],
             wf[...], bf[...], offs3, True)
    store(c_a, z)

    # center_event_rectifier: -> base1, 3x3, PReLU
    z = conv(lambda s: c_a[:, s:s + Qpad], c_a.shape[0],
             wc[...], bc[...], offs3, True)
    store(c_b, z)

    # RNet_a: base1 -> base2, 1x1, PReLU
    z = conv(lambda s: c_b[:, s:s + Qpad], c_b.shape[0],
             wa[...], ba[...], offs1, True)
    store(c_ra, z)                               # kept as the long residual
    store(c_e, z)

    # RNet_B: 5 ResNet blocks (conv -> PReLU -> conv -> +input)
    c2 = c_e.shape[0]
    for blk in range(5):
        z1 = conv(lambda s: c_e[:, s:s + Qpad], c2,
                  wrb[2 * blk], brb[2 * blk], offs3, True)
        store(c_h, z1)
        z2 = conv(lambda s: c_h[:, s:s + Qpad], c2,
                  wrb[2 * blk + 1], brb[2 * blk + 1], offs3, False)
        z2 = z2 + slab(c_e).astype(jnp.float32)
        store(c_e, z2)

    # RNet_B tail ConvBlock (PReLU), then hidden_state = rnet_a_out + rnet_b
    z = conv(lambda s: c_e[:, s:s + Qpad], c2, wbo[...], bbo[...], offs3, True)
    z = z + slab(c_ra).astype(jnp.float32)
    store(c_h, z)                                # hidden_state canvas

    # mixer: base2 -> 8(->16), 3x3, PReLU; emit lane-dense (Cout, Qpad) slab
    z = conv(lambda s: c_h[:, s:s + Qpad], c2, wmx[...], bmx[...], offs3, True)
    o_ref[0] = z.astype(o_ref.dtype)


# ---------------------------------------------------------------------------
# Single-conv kernel for shu2 / endconv (no bias, no PReLU), lane-dense output
# ---------------------------------------------------------------------------
def _out_conv_kernel(x_ref, w_ref, o_ref, rhs, *, geo):
    Qpad, front = geo["Qpad"], geo["front"]
    cin = x_ref.shape[1]
    for k, off in enumerate(geo["offsets"]):
        rhs[k * cin:(k + 1) * cin, :] = x_ref[0, :, front + off:front + off + Qpad]
    z = jnp.dot(w_ref[...], rhs[...], preferred_element_type=jnp.float32)
    # Wrap/tail columns are discarded by the wrapper slice; no mask needed.
    o_ref[0] = z.astype(o_ref.dtype)


# ---------------------------------------------------------------------------
# pallas_call wrappers
# ---------------------------------------------------------------------------
def _full_spec(a):
    return pl.BlockSpec(a.shape, lambda n, _nd=a.ndim: (0,) * _nd)


def trunk_forward(x_canvas, params, geo):
    N, cx, Ppad = x_canvas.shape
    Qpad = geo["Qpad"]
    wf, bf = params["first_conv"]
    wc, bc = params["center"]
    wa, ba = params["rnet_a"]
    wrb, brb = params["rnet_b_w"], params["rnet_b_b"]
    wbo, bbo = params["rnet_b_out"]
    wmx, bmx = params["mixer"]
    c_first, c1, c2, c_mix = wf.shape[0], wc.shape[0], wa.shape[0], wmx.shape[0]
    rhs_rows = max(9 * cx, 9 * c_first, c1, 9 * c2)
    weights = [wf, bf, wc, bc, wa, ba, wrb, brb, wbo, bbo, wmx, bmx]

    return pl.pallas_call(
        functools.partial(_trunk_kernel, geo=geo),
        out_shape=jax.ShapeDtypeStruct((N, c_mix, Qpad), jnp.bfloat16),
        grid_spec=pltpu.PrefetchScalarGridSpec(
            num_scalar_prefetch=0,
            grid=(N,),
            in_specs=[pl.BlockSpec((1, cx, Ppad), lambda n: (n, 0, 0))]
                     + [_full_spec(a) for a in weights],
            out_specs=pl.BlockSpec((1, c_mix, Qpad), lambda n: (n, 0, 0)),
            scratch_shapes=[
                pltpu.VMEM((c_first, Ppad), jnp.bfloat16),   # first_conv out
                pltpu.VMEM((c1, Ppad), jnp.bfloat16),        # center out
                pltpu.VMEM((c2, Ppad), jnp.bfloat16),        # rnet_a out (res)
                pltpu.VMEM((c2, Ppad), jnp.bfloat16),        # resblock state
                pltpu.VMEM((c2, Ppad), jnp.bfloat16),        # resblock hidden
                pltpu.VMEM((rhs_rows, Qpad), jnp.bfloat16),  # shared im2col
            ]),
        compiler_params=_COMPILER_PARAMS,
    )(x_canvas, *weights)


def out_conv(x_canvas, w, geo, out_dtype):
    N, cin, Ppad = x_canvas.shape
    cout = w.shape[0]
    Qpad = geo["Qpad"]
    return pl.pallas_call(
        functools.partial(_out_conv_kernel, geo=geo),
        out_shape=jax.ShapeDtypeStruct((N, cout, Qpad), out_dtype),
        grid_spec=pltpu.PrefetchScalarGridSpec(
            num_scalar_prefetch=0,
            grid=(N,),
            in_specs=[pl.BlockSpec((1, cin, Ppad), lambda n: (n, 0, 0)),
                      pl.BlockSpec(w.shape, lambda n: (0, 0))],
            out_specs=pl.BlockSpec((1, cout, Qpad), lambda n: (n, 0, 0)),
            scratch_shapes=[pltpu.VMEM((9 * cin, Qpad), jnp.bfloat16)]),
        compiler_params=_COMPILER_PARAMS,
    )(x_canvas, w)


# ---------------------------------------------------------------------------
# Layout glue (pure XLA: canvas <-> NCHW, pixel shuffle)
# ---------------------------------------------------------------------------
def to_canvas(x_nchw, geo, cpad):
    """NCHW -> bf16 canvas (N, Cpad, Ppad): front zeros + padded image + tail."""
    N, C, H, W = x_nchw.shape
    x = jnp.pad(x_nchw.astype(jnp.bfloat16),
                ((0, 0), (0, cpad - C), (1, 1), (1, 1)))
    x = x.reshape(N, cpad, (H + 2) * (W + 2))
    tail = geo["Ppad"] - geo["front"] - (H + 2) * (W + 2)
    return jnp.pad(x, ((0, 0), (0, 0), (geo["front"], tail)))


def from_dense(z, C, geo):
    """Lane-dense (N, Cpad, Qpad) kernel output -> NCHW (N, C, H, W)."""
    N = z.shape[0]
    H, W, Wp = geo["H"], geo["W"], geo["Wp"]
    return z[:, :C, :H * Wp].reshape(N, C, H, Wp)[:, :, :, :W]


def pixel_shuffle_nchw(x, r):
    """torch.nn.PixelShuffle semantics on NCHW."""
    N, C, H, W = x.shape
    c = C // (r * r)
    x = x.reshape(N, c, r, r, H, W)
    x = jnp.transpose(x, (0, 1, 4, 2, 5, 3))
    return x.reshape(N, c, H * r, W * r)


# ---------------------------------------------------------------------------
# Deterministic synthetic parameters (PyTorch-shape-equivalent) + packing
# ---------------------------------------------------------------------------
def pack_weight(w_torch, cin_pad, cout_pad):
    """(Cout, Cin, KH, KW) torch layout -> (Cout_pad, KH*KW*Cin_pad) bf16."""
    cout, cin, kh, kw = w_torch.shape
    w = jnp.transpose(w_torch, (0, 2, 3, 1))                # (Cout,KH,KW,Cin)
    w = jnp.pad(w, ((0, cout_pad - cout), (0, 0), (0, 0), (0, cin_pad - cin)))
    return w.reshape(cout_pad, kh * kw * cin_pad).astype(jnp.bfloat16)


def pack_bias(b, cout_pad):
    if b is None:
        return None
    return jnp.pad(b, (0, cout_pad - b.shape[0])).reshape(cout_pad, 1) \
              .astype(jnp.float32)


def make_conv_params(key, cin, cout, k, scale=0.05, bias=True):
    kw_key, kb_key = jax.random.split(key)
    w_t = jax.random.normal(kw_key, (cout, cin, k, k), jnp.float32) * scale
    b = (jax.random.normal(kb_key, (cout,), jnp.float32) * scale) if bias else None
    return pack_weight(w_t, _cpad(cin), _cpad(cout)), pack_bias(b, _cpad(cout))


def init_srnet_params(key, base1, base2):
    keys = iter(jax.random.split(key, 32))
    p = {}
    p["first_conv"] = make_conv_params(next(keys), 45, 3, 3)
    p["center"] = make_conv_params(next(keys), 3, base1, 3)
    p["rnet_a"] = make_conv_params(next(keys), base1, base2, 1)
    rb_w, rb_b = [], []
    for _ in range(5):                      # ResnetBlock: conv1 + conv2
        for _c in range(2):
            w, b = make_conv_params(next(keys), base2, base2, 3)
            rb_w.append(w)
            rb_b.append(b)
    p["rnet_b_w"] = jnp.stack(rb_w)          # (10, c2pad, 9*c2pad)
    p["rnet_b_b"] = jnp.stack(rb_b)          # (10, c2pad, 1)
    p["rnet_b_out"] = make_conv_params(next(keys), base2, base2, 3)
    p["mixer"] = make_conv_params(next(keys), base2, 8, 3)
    p["shu2"] = make_conv_params(next(keys), 2, 8, 3, bias=False)
    p["endconv"] = make_conv_params(next(keys), 2, 3, 3, bias=False)
    # TODO(synk): rnet_d / endconv2 params omitted (see srnet_forward).
    return p


# ---------------------------------------------------------------------------
# SRNet forward (scale=4 path), mirroring the PyTorch module
# ---------------------------------------------------------------------------
def srnet_forward(params, x_nchw, aggregate_event, scale=4):
    del aggregate_event          # unused by the PyTorch forward as well
    N, _, H, W = x_nchw.shape

    # Fused trunk: first_conv -> center -> RNet_a -> RNet_B (+residual) ->
    # mixer, ONE pallas_call with all intermediates in VMEM scratch.
    geo1 = _geometry(H, W)
    mix = trunk_forward(to_canvas(x_nchw, geo1, _cpad(45)), params, geo1)

    # TODO(synk): self.rnet_d(hidden_state) is dead code in the PyTorch
    # forward (its output never reaches the returned value), so it is omitted.

    # ps1 + shu2
    o = from_dense(mix, 8, geo1)                       # (N, 8, H, W)
    o = pixel_shuffle_nchw(o, 2)                       # (N, 2, 2H, 2W)
    geo2 = _geometry(2 * H, 2 * W)
    o = out_conv(to_canvas(o, geo2, _cpad(2)), params["shu2"][0], geo2,
                 jnp.bfloat16)

    if scale == 4:
        o = from_dense(o, 8, geo2)                     # (N, 8, 2H, 2W)
        o = pixel_shuffle_nchw(o, 2)                   # (N, 2, 4H, 4W)
        geo3 = _geometry(4 * H, 4 * W)
        o = out_conv(to_canvas(o, geo3, _cpad(2)), params["endconv"][0], geo3,
                     jnp.float32)
        return from_dense(o, 3, geo3).astype(jnp.float32)
    # TODO(synk): scale == 2 path (endconv2) is not exercised here.
    return from_dense(o, 8, geo2).astype(jnp.float32)


if __name__ == "__main__":
    key = jax.random.PRNGKey(0)
    pk, xk, ek = jax.random.split(key, 3)

    # Small but shape-consistent config (base1/base2 are constructor params).
    base1, base2 = 32, 16
    N, H, W = 2, 8, 8

    params = init_srnet_params(pk, base1, base2)
    x = jax.random.normal(xk, (N, 45, H, W), jnp.float32)                # NCHW
    aggregate_event = jax.random.normal(ek, (N, 8, H, W), jnp.float32)   # unused

    fwd = jax.jit(functools.partial(srnet_forward, scale=4))
    out = jax.block_until_ready(fwd(params, x, aggregate_event))

    assert out.shape == (N, 3, 4 * H, 4 * W), out.shape
    assert out.dtype == jnp.float32
    print("KERNEL_OK")
</pallas_src>

<mosaic_0001>
module attributes {stable_mosaic.version = 11 : i64} {
  func.func @_trunk_kernel(%arg0: i32, %arg1: memref<1x48x384xbf16, #tpu.memory_space<vmem>>, %arg2: memref<16x432xbf16, #tpu.memory_space<vmem>>, %arg3: memref<16x1xf32, #tpu.memory_space<vmem>>, %arg4: memref<32x144xbf16, #tpu.memory_space<vmem>>, %arg5: memref<32x1xf32, #tpu.memory_space<vmem>>, %arg6: memref<16x32xbf16, #tpu.memory_space<vmem>>, %arg7: memref<16x1xf32, #tpu.memory_space<vmem>>, %arg8: memref<10x16x144xbf16, #tpu.memory_space<vmem>>, %arg9: memref<10x16x1xf32, #tpu.memory_space<vmem>>, %arg10: memref<16x144xbf16, #tpu.memory_space<vmem>>, %arg11: memref<16x1xf32, #tpu.memory_space<vmem>>, %arg12: memref<16x144xbf16, #tpu.memory_space<vmem>>, %arg13: memref<16x1xf32, #tpu.memory_space<vmem>>, %arg14: memref<1x16x128xbf16, #tpu.memory_space<vmem>>, %arg15: memref<16x384xbf16, #tpu.memory_space<vmem>>, %arg16: memref<32x384xbf16, #tpu.memory_space<vmem>>, %arg17: memref<16x384xbf16, #tpu.memory_space<vmem>>, %arg18: memref<16x384xbf16, #tpu.memory_space<vmem>>, %arg19: memref<16x384xbf16, #tpu.memory_space<vmem>>, %arg20: memref<432x128xbf16, #tpu.memory_space<vmem>>) attributes {dimension_semantics = [#tpu.dimension_semantics<parallel>], iteration_bounds = array<i64: 2>, scalar_prefetch = 0 : i64, scratch_operands = 6 : i64, tpu.core_type = #tpu.core_type<tc>, window_params = [{transform_indices = @transform_0, window_bounds = array<i64: 1, 48, 384>}, {pipeline_mode = #tpu.pipeline_mode<synchronous>, transform_indices = @transform_1, window_bounds = array<i64: 16, 432>}, {pipeline_mode = #tpu.pipeline_mode<synchronous>, transform_indices = @transform_2, window_bounds = array<i64: 16, 1>}, {pipeline_mode = #tpu.pipeline_mode<synchronous>, transform_indices = @transform_3, window_bounds = array<i64: 32, 144>}, {pipeline_mode = #tpu.pipeline_mode<synchronous>, transform_indices = @transform_4, window_bounds = array<i64: 32, 1>}, {pipeline_mode = #tpu.pipeline_mode<synchronous>, transform_indices = @transform_5, window_bounds = array<i64: 16, 32>}, {pipeline_mode = #tpu.pipeline_mode<synchronous>, transform_indices = @transform_6, window_bounds = array<i64: 16, 1>}, {pipeline_mode = #tpu.pipeline_mode<synchronous>, transform_indices = @transform_7, window_bounds = array<i64: 10, 16, 144>}, {pipeline_mode = #tpu.pipeline_mode<synchronous>, transform_indices = @transform_8, window_bounds = array<i64: 10, 16, 1>}, {pipeline_mode = #tpu.pipeline_mode<synchronous>, transform_indices = @transform_9, window_bounds = array<i64: 16, 144>}, {pipeline_mode = #tpu.pipeline_mode<synchronous>, transform_indices = @transform_10, window_bounds = array<i64: 16, 1>}, {pipeline_mode = #tpu.pipeline_mode<synchronous>, transform_indices = @transform_11, window_bounds = array<i64: 16, 144>}, {pipeline_mode = #tpu.pipeline_mode<synchronous>, transform_indices = @transform_12, window_bounds = array<i64: 16, 1>}, {transform_indices = @transform_13, window_bounds = array<i64: 1, 16, 128>}]} {
    %0 = tpu.iota {dimensions = array<i32: 1>} : vector<1x128xi32>
    %c10_i32 = arith.constant 10 : i32
    %c0_i32 = arith.constant 0 : i32
    %1 = arith.cmpi eq, %c10_i32, %c0_i32 : i32
    %c1_i32 = arith.constant 1 : i32
    %2 = arith.select %1, %c1_i32, %c10_i32 : i32
    %3 = vector.broadcast %2 : i32 to vector<1x128xi32>
    %4 = arith.remsi %0, %3 : vector<1x128xi32>
    %c0_i32_0 = arith.constant 0 : i32
    %5 = vector.broadcast %c0_i32_0 : i32 to vector<1x128xi32>
    %6 = arith.cmpi ne, %4, %5 : vector<1x128xi32>
    %c0_i32_1 = arith.constant 0 : i32
    %7 = vector.broadcast %c0_i32_1 : i32 to vector<1x128xi32>
    %8 = arith.cmpi slt, %4, %7 : vector<1x128xi32>
    %c0_i32_2 = arith.constant 0 : i32
    %9 = arith.cmpi slt, %2, %c0_i32_2 : i32
    %10 = vector.broadcast %9 : i1 to vector<1x128xi1>
    %11 = vector.broadcast %10 : vector<1x128xi1> to vector<1x128xi1>
    %12 = arith.xori %8, %11 : vector<1x128xi1>
    %13 = arith.andi %12, %6 : vector<1x128xi1>
    %14 = vector.broadcast %2 : i32 to vector<1x128xi32>
    %15 = arith.addi %4, %14 : vector<1x128xi32>
    %16 = arith.select %13, %15, %4 : vector<1x128xi1>, vector<1x128xi32>
    %c8_i32 = arith.constant 8 : i32
    %17 = vector.broadcast %c8_i32 : i32 to vector<1x128xi32>
    %18 = arith.cmpi slt, %16, %17 : vector<1x128xi32>
    %c80_i32 = arith.constant 80 : i32
    %19 = vector.broadcast %c80_i32 : i32 to vector<1x128xi32>
    %20 = arith.cmpi slt, %0, %19 : vector<1x128xi32>
    %21 = arith.andi %18, %20 : vector<1x128xi1>
    %cst = arith.constant 0.000000e+00 : bf16
    %22 = vector.broadcast %cst : bf16 to vector<16x384xbf16>
    %c0 = arith.constant 0 : index
    %c0_3 = arith.constant 0 : index
    %23 = vector.load %arg15[%c0, %c0_3] : memref<16x384xbf16, #tpu.memory_space<vmem>>, vector<16x384xbf16>
    tpu.vector_store %arg15[%c0, %c0_3], %22 {strides = array<i32>} : memref<16x384xbf16, #tpu.memory_space<vmem>>, vector<16x384xbf16>,
    %cst_4 = arith.constant 0.000000e+00 : bf16
    %24 = vector.broadcast %cst_4 : bf16 to vector<32x384xbf16>
    %c0_5 = arith.constant 0 : index
    %c0_6 = arith.constant 0 : index
    %25 = vector.load %arg16[%c0_5, %c0_6] : memref<32x384xbf16, #tpu.memory_space<vmem>>, vector<32x384xbf16>
    tpu.vector_store %arg16[%c0_5, %c0_6], %24 {strides = array<i32>} : memref<32x384xbf16, #tpu.memory_space<vmem>>, vector<32x384xbf16>,
    %cst_7 = arith.constant 0.000000e+00 : bf16
    %26 = vector.broadcast %cst_7 : bf16 to vector<16x384xbf16>
    %c0_8 = arith.constant 0 : index
    %c0_9 = arith.constant 0 : index
    %27 = vector.load %arg17[%c0_8, %c0_9] : memref<16x384xbf16, #tpu.memory_space<vmem>>, vector<16x384xbf16>
    tpu.vector_store %arg17[%c0_8, %c0_9], %26 {strides = array<i32>} : memref<16x384xbf16, #tpu.memory_space<vmem>>, vector<16x384xbf16>,
    %cst_10 = arith.constant 0.000000e+00 : bf16
    %28 = vector.broadcast %cst_10 : bf16 to vector<16x384xbf16>
    %c0_11 = arith.constant 0 : index
    %c0_12 = arith.constant 0 : index
    %29 = vector.load %arg18[%c0_11, %c0_12] : memref<16x384xbf16, #tpu.memory_space<vmem>>, vector<16x384xbf16>
    tpu.vector_store %arg18[%c0_11, %c0_12], %28 {strides = array<i32>} : memref<16x384xbf16, #tpu.memory_space<vmem>>, vector<16x384xbf16>,
    %cst_13 = arith.constant 0.000000e+00 : bf16
    %30 = vector.broadcast %cst_13 : bf16 to vector<16x384xbf16>
    %c0_14 = arith.constant 0 : index
    %c0_15 = arith.constant 0 : index
    %31 = vector.load %arg19[%c0_14, %c0_15] : memref<16x384xbf16, #tpu.memory_space<vmem>>, vector<16x384xbf16>
    tpu.vector_store %arg19[%c0_14, %c0_15], %30 {strides = array<i32>} : memref<16x384xbf16, #tpu.memory_space<vmem>>, vector<16x384xbf16>,
    %c0_16 = arith.constant 0 : index
    %c0_17 = arith.constant 0 : index
    %32 = vector.load %arg2[%c0_16, %c0_17] : memref<16x432xbf16, #tpu.memory_space<vmem>>, vector<16x432xbf16>
    %c0_18 = arith.constant 0 : index
    %c0_19 = arith.constant 0 : index
    %33 = vector.load %arg3[%c0_18, %c0_19] : memref<16x1xf32, #tpu.memory_space<vmem>>, vector<16x1xf32>
    %c0_20 = arith.constant 0 : index
    %c0_21 = arith.constant 0 : index
    %c117 = arith.constant 117 : index
    %34 = vector.load %arg1[%c0_20, %c0_21, %c117] : memref<1x48x384xbf16, #tpu.memory_space<vmem>>, vector<1x48x128xbf16>
    %35 = vector.shape_cast %34 : vector<1x48x128xbf16> to vector<48x128xbf16>
    %c0_22 = arith.constant 0 : index
    %c0_23 = arith.constant 0 : index
    %36 = vector.load %arg20[%c0_22, %c0_23] : memref<432x128xbf16, #tpu.memory_space<vmem>>, vector<48x128xbf16>
    tpu.vector_store %arg20[%c0_22, %c0_23], %35 {strides = array<i32>} : memref<432x128xbf16, #tpu.memory_space<vmem>>, vector<48x128xbf16>,
    %c0_24 = arith.constant 0 : index
    %c0_25 = arith.constant 0 : index
    %c118 = arith.constant 118 : index
    %37 = vector.load %arg1[%c0_24, %c0_25, %c118] : memref<1x48x384xbf16, #tpu.memory_space<vmem>>, vector<1x48x128xbf16>
    %38 = vector.shape_cast %37 : vector<1x48x128xbf16> to vector<48x128xbf16>
    %c48 = arith.constant 48 : index
    %c0_26 = arith.constant 0 : index
    %39 = vector.load %arg20[%c48, %c0_26] : memref<432x128xbf16, #tpu.memory_space<vmem>>, vector<48x128xbf16>
    tpu.vector_store %arg20[%c48, %c0_26], %38 {strides = array<i32>} : memref<432x128xbf16, #tpu.memory_space<vmem>>, vector<48x128xbf16>,
    %c0_27 = arith.constant 0 : index
    %c0_28 = arith.constant 0 : index
    %c119 = arith.constant 119 : index
    %40 = vector.load %arg1[%c0_27, %c0_28, %c119] : memref<1x48x384xbf16, #tpu.memory_space<vmem>>, vector<1x48x128xbf16>
    %41 = vector.shape_cast %40 : vector<1x48x128xbf16> to vector<48x128xbf16>
    %c96 = arith.constant 96 : index
    %c0_29 = arith.constant 0 : index
    %42 = vector.load %arg20[%c96, %c0_29] : memref<432x128xbf16, #tpu.memory_space<vmem>>, vector<48x128xbf16>
    tpu.vector_store %arg20[%c96, %c0_29], %41 {strides = array<i32>} : memref<432x128xbf16, #tpu.memory_space<vmem>>, vector<48x128xbf16>,
    %c0_30 = arith.constant 0 : index
    %c0_31 = arith.constant 0 : index
    %c127 = arith.constant 127 : index
    %43 = vector.load %arg1[%c0_30, %c0_31, %c127] : memref<1x48x384xbf16, #tpu.memory_space<vmem>>, vector<1x48x128xbf16>
    %44 = vector.shape_cast %43 : vector<1x48x128xbf16> to vector<48x128xbf16>
    %c144 = arith.constant 144 : index
    %c0_32 = arith.constant 0 : index
    %45 = vector.load %arg20[%c144, %c0_32] : memref<432x128xbf16, #tpu.memory_space<vmem>>, vector<48x128xbf16>
    tpu.vector_store %arg20[%c144, %c0_32], %44 {strides = array<i32>} : memref<432x128xbf16, #tpu.memory_space<vmem>>, vector<48x128xbf16>,
    %c0_33 = arith.constant 0 : index
    %c0_34 = arith.constant 0 : index
    %c128 = arith.constant 128 : index
    %46 = vector.load %arg1[%c0_33, %c0_34, %c128] : memref<1x48x384xbf16, #tpu.memory_space<vmem>>, vector<1x48x128xbf16>
    %47 = vector.shape_cast %46 : vector<1x48x128xbf16> to vector<48x128xbf16>
    %c192 = arith.constant 192 : index
    %c0_35 = arith.constant 0 : index
    %48 = vector.load %arg20[%c192, %c0_35] : memref<432x128xbf16, #tpu.memory_space<vmem>>, vector<48x128xbf16>
    tpu.vector_store %arg20[%c192, %c0_35], %47 {strides = array<i32>} : memref<432x128xbf16, #tpu.memory_space<vmem>>, vector<48x128xbf16>,
    %c0_36 = arith.constant 0 : index
    %c0_37 = arith.constant 0 : index
    %c129 = arith.constant 129 : index
    %49 = vector.load %arg1[%c0_36, %c0_37, %c129] : memref<1x48x384xbf16, #tpu.memory_space<vmem>>, vector<1x48x128xbf16>
    %50 = vector.shape_cast %49 : vector<1x48x128xbf16> to vector<48x128xbf16>
    %c240 = arith.constant 240 : index
    %c0_38 = arith.constant 0 : index
    %51 = vector.load %arg20[%c240, %c0_38] : memref<432x128xbf16, #tpu.memory_space<vmem>>, vector<48x128xbf16>
    tpu.vector_store %arg20[%c240, %c0_38], %50 {strides = array<i32>} : memref<432x128xbf16, #tpu.memory_space<vmem>>, vector<48x128xbf16>,
    %c0_39 = arith.constant 0 : index
    %c0_40 = arith.constant 0 : index
    %c137 = arith.constant 137 : index
    %52 = vector.load %arg1[%c0_39, %c0_40, %c137] : memref<1x48x384xbf16, #tpu.memory_space<vmem>>, vector<1x48x128xbf16>
    %53 = vector.shape_cast %52 : vector<1x48x128xbf16> to vector<48x128xbf16>
    %c288 = arith.constant 288 : index
    %c0_41 = arith.constant 0 : index
    %54 = vector.load %arg20[%c288, %c0_41] : memref<432x128xbf16, #tpu.memory_space<vmem>>, vector<48x128xbf16>
    tpu.vector_store %arg20[%c288, %c0_41], %53 {strides = array<i32>} : memref<432x128xbf16, #tpu.memory_space<vmem>>, vector<48x128xbf16>,
    %c0_42 = arith.constant 0 : index
    %c0_43 = arith.constant 0 : index
    %c138 = arith.constant 138 : index
    %55 = vector.load %arg1[%c0_42, %c0_43, %c138] : memref<1x48x384xbf16, #tpu.memory_space<vmem>>, vector<1x48x128xbf16>
    %56 = vector.shape_cast %55 : vector<1x48x128xbf16> to vector<48x128xbf16>
    %c336 = arith.constant 336 : index
    %c0_44 = arith.constant 0 : index
    %57 = vector.load %arg20[%c336, %c0_44] : memref<432x128xbf16, #tpu.memory_space<vmem>>, vector<48x128xbf16>
    tpu.vector_store %arg20[%c336, %c0_44], %56 {strides = array<i32>} : memref<432x128xbf16, #tpu.memory_space<vmem>>, vector<48x128xbf16>,
    %c0_45 = arith.constant 0 : index
    %c0_46 = arith.constant 0 : index
    %c139 = arith.constant 139 : index
    %58 = vector.load %arg1[%c0_45, %c0_46, %c139] : memref<1x48x384xbf16, #tpu.memory_space<vmem>>, vector<1x48x128xbf16>
    %59 = vector.shape_cast %58 : vector<1x48x128xbf16> to vector<48x128xbf16>
    %c384 = arith.constant 384 : index
    %c0_47 = arith.constant 0 : index
    %60 = vector.load %arg20[%c384, %c0_47] : memref<432x128xbf16, #tpu.memory_space<vmem>>, vector<48x128xbf16>
    tpu.vector_store %arg20[%c384, %c0_47], %59 {strides = array<i32>} : memref<432x128xbf16, #tpu.memory_space<vmem>>, vector<48x128xbf16>,
    %c0_48 = arith.constant 0 : index
    %c0_49 = arith.constant 0 : index
    %61 = vector.load %arg20[%c0_48, %c0_49] : memref<432x128xbf16, #tpu.memory_space<vmem>>, vector<432x128xbf16>
    %cst_50 = arith.constant dense<0.000000e+00> : vector<16x128xf32>
    %62 = tpu.matmul %32, %61, %cst_50 {dimension_numbers = #tpu.dot_dimension_numbers<[1], [0], [0], [1], [0, 0, 1, 1], [], []>} : vector<16x432xbf16>, vector<432x128xbf16>, vector<16x128xf32> -> vector<16x128xf32>
    %63 = vector.broadcast %33 : vector<16x1xf32> to vector<16x128xf32>
    %64 = arith.addf %62, %63 : vector<16x128xf32>
    %cst_51 = arith.constant 0.000000e+00 : f32
    %65 = vector.broadcast %cst_51 : f32 to vector<16x128xf32>
    %66 = arith.cmpf oge, %64, %65 : vector<16x128xf32>
    %cst_52 = arith.constant 2.500000e-01 : f32
    %67 = vector.broadcast %cst_52 : f32 to vector<16x128xf32>
    %68 = arith.mulf %67, %64 : vector<16x128xf32>
    %69 = arith.select %66, %64, %68 : vector<16x128xi1>, vector<16x128xf32>
    %cst_53 = arith.constant 0.000000e+00 : f32
    %70 = vector.shape_cast %21 : vector<1x128xi1> to vector<1x128xi1>
    %71 = vector.broadcast %70 : vector<1x128xi1> to vector<16x128xi1>
    %72 = vector.broadcast %cst_53 : f32 to vector<16x128xf32>
    %73 = arith.select %71, %69, %72 : vector<16x128xi1>, vector<16x128xf32>
    %74 = arith.truncf %73 : vector<16x128xf32> to vector<16x128xbf16>
    %c0_54 = arith.constant 0 : index
    %c128_55 = arith.constant 128 : index
    %75 = vector.load %arg15[%c0_54, %c128_55] : memref<16x384xbf16, #tpu.memory_space<vmem>>, vector<16x128xbf16>
    tpu.vector_store %arg15[%c0_54, %c128_55], %74 {strides = array<i32>} : memref<16x384xbf16, #tpu.memory_space<vmem>>, vector<16x128xbf16>,
    %c0_56 = arith.constant 0 : index
    %c0_57 = arith.constant 0 : index
    %76 = vector.load %arg4[%c0_56, %c0_57] : memref<32x144xbf16, #tpu.memory_space<vmem>>, vector<32x144xbf16>
    %c0_58 = arith.constant 0 : index
    %c0_59 = arith.constant 0 : index
    %77 = vector.load %arg5[%c0_58, %c0_59] : memref<32x1xf32, #tpu.memory_space<vmem>>, vector<32x1xf32>
    %c0_60 = arith.constant 0 : index
    %c117_61 = arith.constant 117 : index
    %78 = vector.load %arg15[%c0_60, %c117_61] : memref<16x384xbf16, #tpu.memory_space<vmem>>, vector<16x128xbf16>
    %c0_62 = arith.constant 0 : index
    %c0_63 = arith.constant 0 : index
    %79 = vector.load %arg20[%c0_62, %c0_63] : memref<432x128xbf16, #tpu.memory_space<vmem>>, vector<16x128xbf16>
    tpu.vector_store %arg20[%c0_62, %c0_63], %78 {strides = array<i32>} : memref<432x128xbf16, #tpu.memory_space<vmem>>, vector<16x128xbf16>,
    %c0_64 = arith.constant 0 : index
    %c118_65 = arith.constant 118 : index
    %80 = vector.load %arg15[%c0_64, %c118_65] : memref<16x384xbf16, #tpu.memory_space<vmem>>, vector<16x128xbf16>
    %c16 = arith.constant 16 : index
    %c0_66 = arith.constant 0 : index
    %81 = vector.load %arg20[%c16, %c0_66] : memref<432x128xbf16, #tpu.memory_space<vmem>>, vector<16x128xbf16>
    tpu.vector_store %arg20[%c16, %c0_66], %80 {strides = array<i32>} : memref<432x128xbf16, #tpu.memory_space<vmem>>, vector<16x128xbf16>,
    %c0_67 = arith.constant 0 : index
    %c119_68 = arith.constant 119 : index
    %82 = vector.load %arg15[%c0_67, %c119_68] : memref<16x384xbf16, #tpu.memory_space<vmem>>, vector<16x128xbf16>
    %c32 = arith.constant 32 : index
    %c0_69 = arith.constant 0 : index
    %83 = vector.load %arg20[%c32, %c0_69] : memref<432x128xbf16, #tpu.memory_space<vmem>>, vector<16x128xbf16>
    tpu.vector_store %arg20[%c32, %c0_69], %82 {strides = array<i32>} : memref<432x128xbf16, #tpu.memory_space<vmem>>, vector<16x128xbf16>,
    %c0_70 = arith.constant 0 : index
    %c127_71 = arith.constant 127 : index
    %84 = vector.load %arg15[%c0_70, %c127_71] : memref<16x384xbf16, #tpu.memory_space<vmem>>, vector<16x128xbf16>
    %c48_72 = arith.constant 48 : index
    %c0_73 = arith.constant 0 : index
    %85 = vector.load %arg20[%c48_72, %c0_73] : memref<432x128xbf16, #tpu.memory_space<vmem>>, vector<16x128xbf16>
    tpu.vector_store %arg20[%c48_72, %c0_73], %84 {strides = array<i32>} : memref<432x128xbf16, #tpu.memory_space<vmem>>, vector<16x128xbf16>,
    %c0_74 = arith.constant 0 : index
    %c128_75 = arith.constant 128 : index
    %86 = vector.load %arg15[%c0_74, %c128_75] : memref<16x384xbf16, #tpu.memory_space<vmem>>, vector<16x128xbf16>
    %c64 = arith.constant 64 : index
    %c0_76 = arith.constant 0 : index
    %87 = vector.load %arg20[%c64, %c0_76] : memref<432x128xbf16, #tpu.memory_space<vmem>>, vector<16x128xbf16>
    tpu.vector_store %arg20[%c64, %c0_76], %86 {strides = array<i32>} : memref<432x128xbf16, #tpu.memory_space<vmem>>, vector<16x128xbf16>,
    %c0_77 = arith.constant 0 : index
    %c129_78 = arith.constant 129 : index
    %88 = vector.load %arg15[%c0_77, %c129_78] : memref<16x384xbf16, #tpu.memory_space<vmem>>, vector<16x128xbf16>
    %c80 = arith.constant 80 : index
    %c0_79 = arith.constant 0 : index
    %89 = vector.load %arg20[%c80, %c0_79] : memref<432x128xbf16, #tpu.memory_space<vmem>>, vector<16x128xbf16>
    tpu.vector_store %arg20[%c80, %c0_79], %88 {strides = array<i32>} : memref<432x128xbf16, #tpu.memory_space<vmem>>, vector<16x128xbf16>,
    %c0_80 = arith.constant 0 : index
    %c137_81 = arith.constant 137 : index
    %90 = vector.load %arg15[%c0_80, %c137_81] : memref<16x384xbf16, #tpu.memory_space<vmem>>, vector<16x128xbf16>
    %c96_82 = arith.constant 96 : index
    %c0_83 = arith.constant 0 : index
    %91 = vector.load %arg20[%c96_82, %c0_83] : memref<432x128xbf16, #tpu.memory_space<vmem>>, vector<16x128xbf16>
    tpu.vector_store %arg20[%c96_82, %c0_83], %90 {strides = array<i32>} : memref<432x128xbf16, #tpu.memory_space<vmem>>, vector<16x128xbf16>,
    %c0_84 = arith.constant 0 : index
    %c138_85 = arith.constant 138 : index
    %92 = vector.load %arg15[%c0_84, %c138_85] : memref<16x384xbf16, #tpu.memory_space<vmem>>, vector<16x128xbf16>
    %c112 = arith.constant 112 : index
    %c0_86 = arith.constant 0 : index
    %93 = vector.load %arg20[%c112, %c0_86] : memref<432x128xbf16, #tpu.memory_space<vmem>>, vector<16x128xbf16>
    tpu.vector_store %arg20[%c112, %c0_86], %92 {strides = array<i32>} : memref<432x128xbf16, #tpu.memory_space<vmem>>, vector<16x128xbf16>,
    %c0_87 = arith.constant 0 : index
    %c139_88 = arith.constant 139 : index
    %94 = vector.load %arg15[%c0_87, %c139_88] : memref<16x384xbf16, #tpu.memory_space<vmem>>, vector<16x128xbf16>
    %c128_89 = arith.constant 128 : index
    %c0_90 = arith.constant 0 : index
    %95 = vector.load %arg20[%c128_89, %c0_90] : memref<432x128xbf16, #tpu.memory_space<vmem>>, vector<16x128xbf16>
    tpu.vector_store %arg20[%c128_89, %c0_90], %94 {strides = array<i32>} : memref<432x128xbf16, #tpu.memory_space<vmem>>, vector<16x128xbf16>,
    %c0_91 = arith.constant 0 : index
    %c0_92 = arith.constant 0 : index
    %96 = vector.load %arg20[%c0_91, %c0_92] : memref<432x128xbf16, #tpu.memory_space<vmem>>, vector<144x128xbf16>
    %cst_93 = arith.constant dense<0.000000e+00> : vector<32x128xf32>
    %97 = tpu.matmul %76, %96, %cst_93 {dimension_numbers = #tpu.dot_dimension_numbers<[1], [0], [0], [1], [0, 0, 1, 1], [], []>} : vector<32x144xbf16>, vector<144x128xbf16>, vector<32x128xf32> -> vector<32x128xf32>
    %98 = vector.broadcast %77 : vector<32x1xf32> to vector<32x128xf32>
    %99 = arith.addf %97, %98 : vector<32x128xf32>
    %cst_94 = arith.constant 0.000000e+00 : f32
    %100 = vector.broadcast %cst_94 : f32 to vector<32x128xf32>
    %101 = arith.cmpf oge, %99, %100 : vector<32x128xf32>
    %cst_95 = arith.constant 2.500000e-01 : f32
    %102 = vector.broadcast %cst_95 : f32 to vector<32x128xf32>
    %103 = arith.mulf %102, %99 : vector<32x128xf32>
    %104 = arith.select %101, %99, %103 : vector<32x128xi1>, vector<32x128xf32>
    %cst_96 = arith.constant 0.000000e+00 : f32
    %105 = vector.shape_cast %21 : vector<1x128xi1> to vector<1x128xi1>
    %106 = vector.broadcast %105 : vector<1x128xi1> to vector<32x128xi1>
    %107 = vector.broadcast %cst_96 : f32 to vector<32x128xf32>
    %108 = arith.select %106, %104, %107 : vector<32x128xi1>, vector<32x128xf32>
    %109 = arith.truncf %108 : vector<32x128xf32> to vector<32x128xbf16>
    %c0_97 = arith.constant 0 : index
    %c128_98 = arith.constant 128 : index
    %110 = vector.load %arg16[%c0_97, %c128_98] : memref<32x384xbf16, #tpu.memory_space<vmem>>, vector<32x128xbf16>
    tpu.vector_store %arg16[%c0_97, %c128_98], %109 {strides = array<i32>} : memref<32x384xbf16, #tpu.memory_space<vmem>>, vector<32x128xbf16>,
    %c0_99 = arith.constant 0 : index
    %c0_100 = arith.constant 0 : index
    %111 = vector.load %arg6[%c0_99, %c0_100] : memref<16x32xbf16, #tpu.memory_space<vmem>>, vector<16x32xbf16>
    %c0_101 = arith.constant 0 : index
    %c0_102 = arith.constant 0 : index
    %112 = vector.load %arg7[%c0_101, %c0_102] : memref<16x1xf32, #tpu.memory_space<vmem>>, vector<16x1xf32>
    %c0_103 = arith.constant 0 : index
    %c128_104 = arith.constant 128 : index
    %113 = vector.load %arg16[%c0_103, %c128_104] : memref<32x384xbf16, #tpu.memory_space<vmem>>, vector<32x128xbf16>
    %c0_105 = arith.constant 0 : index
    %c0_106 = arith.constant 0 : index
    %114 = vector.load %arg20[%c0_105, %c0_106] : memref<432x128xbf16, #tpu.memory_space<vmem>>, vector<32x128xbf16>
    tpu.vector_store %arg20[%c0_105, %c0_106], %113 {strides = array<i32>} : memref<432x128xbf16, #tpu.memory_space<vmem>>, vector<32x128xbf16>,
    %c0_107 = arith.constant 0 : index
    %c0_108 = arith.constant 0 : index
    %115 = vector.load %arg20[%c0_107, %c0_108] : memref<432x128xbf16, #tpu.memory_space<vmem>>, vector<32x128xbf16>
    %cst_109 = arith.constant dense<0.000000e+00> : vector<16x128xf32>
    %116 = tpu.matmul %111, %115, %cst_109 {dimension_numbers = #tpu.dot_dimension_numbers<[1], [0], [0], [1], [0, 0, 1, 1], [], []>} : vector<16x32xbf16>, vector<32x128xbf16>, vector<16x128xf32> -> vector<16x128xf32>
    %117 = vector.broadcast %112 : vector<16x1xf32> to vector<16x128xf32>
    %118 = arith.addf %116, %117 : vector<16x128xf32>
    %cst_110 = arith.constant 0.000000e+00 : f32
    %119 = vector.broadcast %cst_110 : f32 to vector<16x128xf32>
    %120 = arith.cmpf oge, %118, %119 : vector<16x128xf32>
    %cst_111 = arith.constant 2.500000e-01 : f32
    %121 = vector.broadcast %cst_111 : f32 to vector<16x128xf32>
    %122 = arith.mulf %121, %118 : vector<16x128xf32>
    %123 = arith.select %120, %118, %122 : vector<16x128xi1>, vector<16x128xf32>
    %cst_112 = arith.constant 0.000000e+00 : f32
    %124 = vector.shape_cast %21 : vector<1x128xi1> to vector<1x128xi1>
    %125 = vector.broadcast %124 : vector<1x128xi1> to vector<16x128xi1>
    %126 = vector.broadcast %cst_112 : f32 to vector<16x128xf32>
    %127 = arith.select %125, %123, %126 : vector<16x128xi1>, vector<16x128xf32>
    %128 = arith.truncf %127 : vector<16x128xf32> to vector<16x128xbf16>
    %c0_113 = arith.constant 0 : index
    %c128_114 = arith.constant 128 : index
    %129 = vector.load %arg17[%c0_113, %c128_114] : memref<16x384xbf16, #tpu.memory_space<vmem>>, vector<16x128xbf16>
    tpu.vector_store %arg17[%c0_113, %c128_114], %128 {strides = array<i32>} : memref<16x384xbf16, #tpu.memory_space<vmem>>, vector<16x128xbf16>,
    %130 = arith.truncf %127 : vector<16x128xf32> to vector<16x128xbf16>
    %c0_115 = arith.constant 0 : index
    %c128_116 = arith.constant 128 : index
    %131 = vector.load %arg18[%c0_115, %c128_116] : memref<16x384xbf16, #tpu.memory_space<vmem>>, vector<16x128xbf16>
    tpu.vector_store %arg18[%c0_115, %c128_116], %130 {strides = array<i32>} : memref<16x384xbf16, #tpu.memory_space<vmem>>, vector<16x128xbf16>,
    %c0_117 = arith.constant 0 : index
    %c0_118 = arith.constant 0 : index
    %c0_119 = arith.constant 0 : index
    %132 = vector.load %arg8[%c0_117, %c0_118, %c0_119] : memref<10x16x144xbf16, #tpu.memory_space<vmem>>, vector<1x16x144xbf16>
    %133 = vector.shape_cast %132 : vector<1x16x144xbf16> to vector<16x144xbf16>
    %c0_120 = arith.constant 0 : index
    %c0_121 = arith.constant 0 : index
    %c0_122 = arith.constant 0 : index
    %134 = vector.load %arg9[%c0_120, %c0_121, %c0_122] : memref<10x16x1xf32, #tpu.memory_space<vmem>>, vector<1x16x1xf32>
    %135 = vector.shape_cast %134 : vector<1x16x1xf32> to vector<16x1xf32>
    %c0_123 = arith.constant 0 : index
    %c117_124 = arith.constant 117 : index
    %136 = vector.load %arg18[%c0_123, %c117_124] : memref<16x384xbf16, #tpu.memory_space<vmem>>, vector<16x128xbf16>
    %c0_125 = arith.constant 0 : index
    %c0_126 = arith.constant 0 : index
    %137 = vector.load %arg20[%c0_125, %c0_126] : memref<432x128xbf16, #tpu.memory_space<vmem>>, vector<16x128xbf16>
    tpu.vector_store %arg20[%c0_125, %c0_126], %136 {strides = array<i32>} : memref<432x128xbf16, #tpu.memory_space<vmem>>, vector<16x128xbf16>,
    %c0_127 = arith.constant 0 : index
    %c118_128 = arith.constant 118 : index
    %138 = vector.load %arg18[%c0_127, %c118_128] : memref<16x384xbf16, #tpu.memory_space<vmem>>, vector<16x128xbf16>
    %c16_129 = arith.constant 16 : index
    %c0_130 = arith.constant 0 : index
    %139 = vector.load %arg20[%c16_129, %c0_130] : memref<432x128xbf16, #tpu.memory_space<vmem>>, vector<16x128xbf16>
    tpu.vector_store %arg20[%c16_129, %c0_130], %138 {strides = array<i32>} : memref<432x128xbf16, #tpu.memory_space<vmem>>, vector<16x128xbf16>,
    %c0_131 = arith.constant 0 : index
    %c119_132 = arith.constant 119 : index
    %140 = vector.load %arg18[%c0_131, %c119_132] : memref<16x384xbf16, #tpu.memory_space<vmem>>, vector<16x128xbf16>
    %c32_133 = arith.constant 32 : index
    %c0_134 = arith.constant 0 : index
    %141 = vector.load %arg20[%c32_133, %c0_134] : memref<432x128xbf16, #tpu.memory_space<vmem>>, vector<16x128xbf16>
    tpu.vector_store %arg20[%c32_133, %c0_134], %140 {strides = array<i32>} : memref<432x128xbf16, #tpu.memory_space<vmem>>, vector<16x128xbf16>,
    %c0_135 = arith.constant 0 : index
    %c127_136 = arith.constant 127 : index
    %142 = vector.load %arg18[%c0_135, %c127_136] : memref<16x384xbf16, #tpu.memory_space<vmem>>, vector<16x128xbf16>
    %c48_137 = arith.constant 48 : index
    %c0_138 = arith.constant 0 : index
    %143 = vector.load %arg20[%c48_137, %c0_138] : memref<432x128xbf16, #tpu.memory_space<vmem>>, vector<16x128xbf16>
    tpu.vector_store %arg20[%c48_137, %c0_138], %142 {strides = array<i32>} : memref<432x128xbf16, #tpu.memory_space<vmem>>, vector<16x128xbf16>,
    %c0_139 = arith.constant 0 : index
    %c128_140 = arith.constant 128 : index
    %144 = vector.load %arg18[%c0_139, %c128_140] : memref<16x384xbf16, #tpu.memory_space<vmem>>, vector<16x128xbf16>
    %c64_141 = arith.constant 64 : index
    %c0_142 = arith.constant 0 : index
    %145 = vector.load %arg20[%c64_141, %c0_142] : memref<432x128xbf16, #tpu.memory_space<vmem>>, vector<16x128xbf16>
    tpu.vector_store %arg20[%c64_141, %c0_142], %144 {strides = array<i32>} : memref<432x128xbf16, #tpu.memory_space<vmem>>, vector<16x128xbf16>,
    %c0_143 = arith.constant 0 : index
    %c129_144 = arith.constant 129 : index
    %146 = vector.load %arg18[%c0_143, %c129_144] : memref<16x384xbf16, #tpu.memory_space<vmem>>, vector<16x128xbf16>
    %c80_145 = arith.constant 80 : index
    %c0_146 = arith.constant 0 : index
    %147 = vector.load %arg20[%c80_145, %c0_146] : memref<432x128xbf16, #tpu.memory_space<vmem>>, vector<16x128xbf16>
    tpu.vector_store %arg20[%c80_145, %c0_146], %146 {strides = array<i32>} : memref<432x128xbf16, #tpu.memory_space<vmem>>, vector<16x128xbf16>,
    %c0_147 = arith.constant 0 : index
    %c137_148 = arith.constant 137 : index
    %148 = vector.load %arg18[%c0_147, %c137_148] : memref<16x384xbf16, #tpu.memory_space<vmem>>, vector<16x128xbf16>
    %c96_149 = arith.constant 96 : index
    %c0_150 = arith.constant 0 : index
    %149 = vector.load %arg20[%c96_149, %c0_150] : memref<432x128xbf16, #tpu.memory_space<vmem>>, vector<16x128xbf16>
    tpu.vector_store %arg20[%c96_149, %c0_150], %148 {strides = array<i32>} : memref<432x128xbf16, #tpu.memory_space<vmem>>, vector<16x128xbf16>,
    %c0_151 = arith.constant 0 : index
    %c138_152 = arith.constant 138 : index
    %150 = vector.load %arg18[%c0_151, %c138_152] : memref<16x384xbf16, #tpu.memory_space<vmem>>, vector<16x128xbf16>
    %c112_153 = arith.constant 112 : index
    %c0_154 = arith.constant 0 : index
    %151 = vector.load %arg20[%c112_153, %c0_154] : memref<432x128xbf16, #tpu.memory_space<vmem>>, vector<16x128xbf16>
    tpu.vector_store %arg20[%c112_153, %c0_154], %150 {strides = array<i32>} : memref<432x128xbf16, #tpu.memory_space<vmem>>, vector<16x128xbf16>,
    %c0_155 = arith.constant 0 : index
    %c139_156 = arith.constant 139 : index
    %152 = vector.load %arg18[%c0_155, %c139_156] : memref<16x384xbf16, #tpu.memory_space<vmem>>, vector<16x128xbf16>
    %c128_157 = arith.constant 128 : index
    %c0_158 = arith.constant 0 : index
    %153 = vector.load %arg20[%c128_157, %c0_158] : memref<432x128xbf16, #tpu.memory_space<vmem>>, vector<16x128xbf16>
    tpu.vector_store %arg20[%c128_157, %c0_158], %152 {strides = array<i32>} : memref<432x128xbf16, #tpu.memory_space<vmem>>, vector<16x128xbf16>,
    %c0_159 = arith.constant 0 : index
    %c0_160 = arith.constant 0 : index
    %154 = vector.load %arg20[%c0_159, %c0_160] : memref<432x128xbf16, #tpu.memory_space<vmem>>, vector<144x128xbf16>
    %cst_161 = arith.constant dense<0.000000e+00> : vector<16x128xf32>
    %155 = tpu.matmul %133, %154, %cst_161 {dimension_numbers = #tpu.dot_dimension_numbers<[1], [0], [0], [1], [0, 0, 1, 1], [], []>} : vector<16x144xbf16>, vector<144x128xbf16>, vector<16x128xf32> -> vector<16x128xf32>
    %156 = vector.broadcast %135 : vector<16x1xf32> to vector<16x128xf32>
    %157 = arith.addf %155, %156 : vector<16x128xf32>
    %cst_162 = arith.constant 0.000000e+00 : f32
    %158 = vector.broadcast %cst_162 : f32 to vector<16x128xf32>
    %159 = arith.cmpf oge, %157, %158 : vector<16x128xf32>
    %cst_163 = arith.constant 2.500000e-01 : f32
    %160 = vector.broadcast %cst_163 : f32 to vector<16x128xf32>
    %161 = arith.mulf %160, %157 : vector<16x128xf32>
    %162 = arith.select %159, %157, %161 : vector<16x128xi1>, vector<16x128xf32>
    %cst_164 = arith.constant 0.000000e+00 : f32
    %163 = vector.shape_cast %21 : vector<1x128xi1> to vector<1x128xi1>
    %164 = vector.broadcast %163 : vector<1x128xi1> to vector<16x128xi1>
    %165 = vector.broadcast %cst_164 : f32 to vector<16x128xf32>
    %166 = arith.select %164, %162, %165 : vector<16x128xi1>, vector<16x128xf32>
    %167 = arith.truncf %166 : vector<16x128xf32> to vector<16x128xbf16>
    %c0_165 = arith.constant 0 : index
    %c128_166 = arith.constant 128 : index
    %168 = vector.load %arg19[%c0_165, %c128_166] : memref<16x384xbf16, #tpu.memory_space<vmem>>, vector<16x128xbf16>
    tpu.vector_store %arg19[%c0_165, %c128_166], %167 {strides = array<i32>} : memref<16x384xbf16, #tpu.memory_space<vmem>>, vector<16x128xbf16>,
    %c1 = arith.constant 1 : index
    %c0_167 = arith.constant 0 : index
    %c0_168 = arith.constant 0 : index
    %169 = vector.load %arg8[%c1, %c0_167, %c0_168] : memref<10x16x144xbf16, #tpu.memory_space<vmem>>, vector<1x16x144xbf16>
    %170 = vector.shape_cast %169 : vector<1x16x144xbf16> to vector<16x144xbf16>
    %c1_169 = arith.constant 1 : index
    %c0_170 = arith.constant 0 : index
    %c0_171 = arith.constant 0 : index
    %171 = vector.load %arg9[%c1_169, %c0_170, %c0_171] : memref<10x16x1xf32, #tpu.memory_space<vmem>>, vector<1x16x1xf32>
    %172 = vector.shape_cast %171 : vector<1x16x1xf32> to vector<16x1xf32>
    %c0_172 = arith.constant 0 : index
    %c117_173 = arith.constant 117 : index
    %173 = vector.load %arg19[%c0_172, %c117_173] : memref<16x384xbf16, #tpu.memory_space<vmem>>, vector<16x128xbf16>
    %c0_174 = arith.constant 0 : index
    %c0_175 = arith.constant 0 : index
    %174 = vector.load %arg20[%c0_174, %c0_175] : memref<432x128xbf16, #tpu.memory_space<vmem>>, vector<16x128xbf16>
    tpu.vector_store %arg20[%c0_174, %c0_175], %173 {strides = array<i32>} : memref<432x128xbf16, #tpu.memory_space<vmem>>, vector<16x128xbf16>,
    %c0_176 = arith.constant 0 : index
    %c118_177 = arith.constant 118 : index
    %175 = vector.load %arg19[%c0_176, %c118_177] : memref<16x384xbf16, #tpu.memory_space<vmem>>, vector<16x128xbf16>
    %c16_178 = arith.constant 16 : index
    %c0_179 = arith.constant 0 : index
    %176 = vector.load %arg20[%c16_178, %c0_179] : memref<432x128xbf16, #tpu.memory_space<vmem>>, vector<16x128xbf16>
    tpu.vector_store %arg20[%c16_178, %c0_179], %175 {strides = array<i32>} : memref<432x128xbf16, #tpu.memory_space<vmem>>, vector<16x128xbf16>,
    %c0_180 = arith.constant 0 : index
    %c119_181 = arith.constant 119 : index
    %177 = vector.load %arg19[%c0_180, %c119_181] : memref<16x384xbf16, #tpu.memory_space<vmem>>, vector<16x128xbf16>
    %c32_182 = arith.constant 32 : index
    %c0_183 = arith.constant 0 : index
    %178 = vector.load %arg20[%c32_182, %c0_183] : memref<432x128xbf16, #tpu.memory_space<vmem>>, vector<16x128xbf16>
    tpu.vector_store %arg20[%c32_182, %c0_183], %177 {strides = array<i32>} : memref<432x128xbf16, #tpu.memory_space<vmem>>, vector<16x128xbf16>,
    %c0_184 = arith.constant 0 : index
    %c127_185 = arith.constant 127 : index
    %179 = vector.load %arg19[%c0_184, %c127_185] : memref<16x384xbf16, #tpu.memory_space<vmem>>, vector<16x128xbf16>
    %c48_186 = arith.constant 48 : index
    %c0_187 = arith.constant 0 : index
    %180 = vector.load %arg20[%c48_186, %c0_187] : memref<432x128xbf16, #tpu.memory_space<vmem>>, vector<16x128xbf16>
    tpu.vector_store %arg20[%c48_186, %c0_187], %179 {strides = array<i32>} : memref<432x128xbf16, #tpu.memory_space<vmem>>, vector<16x128xbf16>,
    %c0_188 = arith.constant 0 : index
    %c128_189 = arith.constant 128 : index
    %181 = vector.load %arg19[%c0_188, %c128_189] : memref<16x384xbf16, #tpu.memory_space<vmem>>, vector<16x128xbf16>
    %c64_190 = arith.constant 64 : index
    %c0_191 = arith.constant 0 : index
    %182 = vector.load %arg20[%c64_190, %c0_191] : memref<432x128xbf16, #tpu.memory_space<vmem>>, vector<16x128xbf16>
    tpu.vector_store %arg20[%c64_190, %c0_191], %181 {strides = array<i32>} : memref<432x128xbf16, #tpu.memory_space<vmem>>, vector<16x128xbf16>,
    %c0_192 = arith.constant 0 : index
    %c129_193 = arith.constant 129 : index
    %183 = vector.load %arg19[%c0_192, %c129_193] : memref<16x384xbf16, #tpu.memory_space<vmem>>, vector<16x128xbf16>
    %c80_194 = arith.constant 80 : index
    %c0_195 = arith.constant 0 : index
    %184 = vector.load %arg20[%c80_194, %c0_195] : memref<432x128xbf16, #tpu.memory_space<vmem>>, vector<16x128xbf16>
    tpu.vector_store %arg20[%c80_194, %c0_195], %183 {strides = array<i32>} : memref<432x128xbf16, #tpu.memory_space<vmem>>, vector<16x128xbf16>,
    %c0_196 = arith.constant 0 : index
    %c137_197 = arith.constant 137 : index
    %185 = vector.load %arg19[%c0_196, %c137_197] : memref<16x384xbf16, #tpu.memory_space<vmem>>, vector<16x128xbf16>
    %c96_198 = arith.constant 96 : index
    %c0_199 = arith.constant 0 : index
    %186 = vector.load %arg20[%c96_198, %c0_199] : memref<432x128xbf16, #tpu.memory_space<vmem>>, vector<16x128xbf16>
    tpu.vector_store %arg20[%c96_198, %c0_199], %185 {strides = array<i32>} : memref<432x128xbf16, #tpu.memory_space<vmem>>, vector<16x128xbf16>,
    %c0_200 = arith.constant 0 : index
    %c138_201 = arith.constant 138 : index
    %187 = vector.load %arg19[%c0_200, %c138_201] : memref<16x384xbf16, #tpu.memory_space<vmem>>, vector<16x128xbf16>
    %c112_202 = arith.constant 112 : index
    %c0_203 = arith.constant 0 : index
    %188 = vector.load %arg20[%c112_202, %c0_203] : memref<432x128xbf16, #tpu.memory_space<vmem>>, vector<16x128xbf16>
    tpu.vector_store %arg20[%c112_202, %c0_203], %187 {strides = array<i32>} : memref<432x128xbf16, #tpu.memory_space<vmem>>, vector<16x128xbf16>,
    %c0_204 = arith.constant 0 : index
    %c139_205 = arith.constant 139 : index
    %189 = vector.load %arg19[%c0_204, %c139_205] : memref<16x384xbf16, #tpu.memory_space<vmem>>, vector<16x128xbf16>
    %c128_206 = arith.constant 128 : index
    %c0_207 = arith.constant 0 : index
    %190 = vector.load %arg20[%c128_206, %c0_207] : memref<432x128xbf16, #tpu.memory_space<vmem>>, vector<16x128xbf16>
    tpu.vector_store %arg20[%c128_206, %c0_207], %189 {strides = array<i32>} : memref<432x128xbf16, #tpu.memory_space<vmem>>, vector<16x128xbf16>,
    %c0_208 = arith.constant 0 : index
    %c0_209 = arith.constant 0 : index
    %191 = vector.load %arg20[%c0_208, %c0_209] : memref<432x128xbf16, #tpu.memory_space<vmem>>, vector<144x128xbf16>
    %cst_210 = arith.constant dense<0.000000e+00> : vector<16x128xf32>
    %192 = tpu.matmul %170, %191, %cst_210 {dimension_numbers = #tpu.dot_dimension_numbers<[1], [0], [0], [1], [0, 0, 1, 1], [], []>} : vector<16x144xbf16>, vector<144x128xbf16>, vector<16x128xf32> -> vector<16x128xf32>
    %193 = vector.broadcast %172 : vector<16x1xf32> to vector<16x128xf32>
    %194 = arith.addf %192, %193 : vector<16x128xf32>
    %cst_211 = arith.constant 0.000000e+00 : f32
    %195 = vector.shape_cast %21 : vector<1x128xi1> to vector<1x128xi1>
    %196 = vector.broadcast %195 : vector<1x128xi1> to vector<16x128xi1>
    %197 = vector.broadcast %cst_211 : f32 to vector<16x128xf32>
    %198 = arith.select %196, %194, %197 : vector<16x128xi1>, vector<16x128xf32>
    %c0_212 = arith.constant 0 : index
    %c128_213 = arith.constant 128 : index
    %199 = vector.load %arg18[%c0_212, %c128_213] : memref<16x384xbf16, #tpu.memory_space<vmem>>, vector<16x128xbf16>
    %200 = arith.extf %199 : vector<16x128xbf16> to vector<16x128xf32>
    %201 = arith.addf %198, %200 : vector<16x128xf32>
    %202 = arith.truncf %201 : vector<16x128xf32> to vector<16x128xbf16>
    %c0_214 = arith.constant 0 : index
    %c128_215 = arith.constant 128 : index
    %203 = vector.load %arg18[%c0_214, %c128_215] : memref<16x384xbf16, #tpu.memory_space<vmem>>, vector<16x128xbf16>
    tpu.vector_store %arg18[%c0_214, %c128_215], %202 {strides = array<i32>} : memref<16x384xbf16, #tpu.memory_space<vmem>>, vector<16x128xbf16>,
    %c2 = arith.constant 2 : index
    %c0_216 = arith.constant 0 : index
    %c0_217 = arith.constant 0 : index
    %204 = vector.load %arg8[%c2, %c0_216, %c0_217] : memref<10x16x144xbf16, #tpu.memory_space<vmem>>, vector<1x16x144xbf16>
    %205 = vector.shape_cast %204 : vector<1x16x144xbf16> to vector<16x144xbf16>
    %c2_218 = arith.constant 2 : index
    %c0_219 = arith.constant 0 : index
    %c0_220 = arith.constant 0 : index
    %206 = vector.load %arg9[%c2_218, %c0_219, %c0_220] : memref<10x16x1xf32, #tpu.memory_space<vmem>>, vector<1x16x1xf32>
    %207 = vector.shape_cast %206 : vector<1x16x1xf32> to vector<16x1xf32>
    %c0_221 = arith.constant 0 : index
    %c117_222 = arith.constant 117 : index
    %208 = vector.load %arg18[%c0_221, %c117_222] : memref<16x384xbf16, #tpu.memory_space<vmem>>, vector<16x128xbf16>
    %c0_223 = arith.constant 0 : index
    %c0_224 = arith.constant 0 : index
    %209 = vector.load %arg20[%c0_223, %c0_224] : memref<432x128xbf16, #tpu.memory_space<vmem>>, vector<16x128xbf16>
    tpu.vector_store %arg20[%c0_223, %c0_224], %208 {strides = array<i32>} : memref<432x128xbf16, #tpu.memory_space<vmem>>, vector<16x128xbf16>,
    %c0_225 = arith.constant 0 : index
    %c118_226 = arith.constant 118 : index
    %210 = vector.load %arg18[%c0_225, %c118_226] : memref<16x384xbf16, #tpu.memory_space<vmem>>, vector<16x128xbf16>
    %c16_227 = arith.constant 16 : index
    %c0_228 = arith.constant 0 : index
    %211 = vector.load %arg20[%c16_227, %c0_228] : memref<432x128xbf16, #tpu.memory_space<vmem>>, vector<16x128xbf16>
    tpu.vector_store %arg20[%c16_227, %c0_228], %210 {strides = array<i32>} : memref<432x128xbf16, #tpu.memory_space<vmem>>, vector<16x128xbf16>,
    %c0_229 = arith.constant 0 : index
    %c119_230 = arith.constant 119 : index
    %212 = vector.load %arg18[%c0_229, %c119_230] : memref<16x384xbf16, #tpu.memory_space<vmem>>, vector<16x128xbf16>
    %c32_231 = arith.constant 32 : index
    %c0_232 = arith.constant 0 : index
    %213 = vector.load %arg20[%c32_231, %c0_232] : memref<432x128xbf16, #tpu.memory_space<vmem>>, vector<16x128xbf16>
    tpu.vector_store %arg20[%c32_231, %c0_232], %212 {strides = array<i32>} : memref<432x128xbf16, #tpu.memory_space<vmem>>, vector<16x128xbf16>,
    %c0_233 = arith.constant 0 : index
    %c127_234 = arith.constant 127 : index
    %214 = vector.load %arg18[%c0_233, %c127_234] : memref<16x384xbf16, #tpu.memory_space<vmem>>, vector<16x128xbf16>
    %c48_235 = arith.constant 48 : index
    %c0_236 = arith.constant 0 : index
    %215 = vector.load %arg20[%c48_235, %c0_236] : memref<432x128xbf16, #tpu.memory_space<vmem>>, vector<16x128xbf16>
    tpu.vector_store %arg20[%c48_235, %c0_236], %214 {strides = array<i32>} : memref<432x128xbf16, #tpu.memory_space<vmem>>, vector<16x128xbf16>,
    %c0_237 = arith.constant 0 : index
    %c128_238 = arith.constant 128 : index
    %216 = vector.load %arg18[%c0_237, %c128_238] : memref<16x384xbf16, #tpu.memory_space<vmem>>, vector<16x128xbf16>
    %c64_239 = arith.constant 64 : index
    %c0_240 = arith.constant 0 : index
    %217 = vector.load %arg20[%c64_239, %c0_240] : memref<432x128xbf16, #tpu.memory_space<vmem>>, vector<16x128xbf16>
    tpu.vector_store %arg20[%c64_239, %c0_240], %216 {strides = array<i32>} : memref<432x128xbf16, #tpu.memory_space<vmem>>, vector<16x128xbf16>,
    %c0_241 = arith.constant 0 : index
    %c129_242 = arith.constant 129 : index
    %218 = vector.load %arg18[%c0_241, %c129_242] : memref<16x384xbf16, #tpu.memory_space<vmem>>, vector<16x128xbf16>
    %c80_243 = arith.constant 80 : index
    %c0_244 = arith.constant 0 : index
    %219 = vector.load %arg20[%c80_243, %c0_244] : memref<432x128xbf16, #tpu.memory_space<vmem>>, vector<16x128xbf16>
    tpu.vector_store %arg20[%c80_243, %c0_244], %218 {strides = array<i32>} : memref<432x128xbf16, #tpu.memory_space<vmem>>, vector<16x128xbf16>,
    %c0_245 = arith.constant 0 : index
    %c137_246 = arith.constant 137 : index
    %220 = vector.load %arg18[%c0_245, %c137_246] : memref<16x384xbf16, #tpu.memory_space<vmem>>, vector<16x128xbf16>
    %c96_247 = arith.constant 96 : index
    %c0_248 = arith.constant 0 : index
    %221 = vector.load %arg20[%c96_247, %c0_248] : memref<432x128xbf16, #tpu.memory_space<vmem>>, vector<16x128xbf16>
    tpu.vector_store %arg20[%c96_247, %c0_248], %220 {strides = array<i32>} : memref<432x128xbf16, #tpu.memory_space<vmem>>, vector<16x128xbf16>,
    %c0_249 = arith.constant 0 : index
    %c138_250 = arith.constant 138 : index
    %222 = vector.load %arg18[%c0_249, %c138_250] : memref<16x384xbf16, #tpu.memory_space<vmem>>, vector<16x128xbf16>
    %c112_251 = arith.constant 112 : index
    %c0_252 = arith.constant 0 : index
    %223 = vector.load %arg20[%c112_251, %c0_252] : memref<432x128xbf16, #tpu.memory_space<vmem>>, vector<16x128xbf16>
    tpu.vector_store %arg20[%c112_251, %c0_252], %222 {strides = array<i32>} : memref<432x128xbf16, #tpu.memory_space<vmem>>, vector<16x128xbf16>,
    %c0_253 = arith.constant 0 : index
    %c139_254 = arith.constant 139 : index
    %224 = vector.load %arg18[%c0_253, %c139_254] : memref<16x384xbf16, #tpu.memory_space<vmem>>, vector<16x128xbf16>
    %c128_255 = arith.constant 128 : index
    %c0_256 = arith.constant 0 : index
    %225 = vector.load %arg20[%c128_255, %c0_256] : memref<432x128xbf16, #tpu.memory_space<vmem>>, vector<16x128xbf16>
    tpu.vector_store %arg20[%c128_255, %c0_256], %224 {strides = array<i32>} : memref<432x128xbf16, #tpu.memory_space<vmem>>, vector<16x128xbf16>,
    %c0_257 = arith.constant 0 : index
    %c0_258 = arith.constant 0 : index
    %226 = vector.load %arg20[%c0_257, %c0_258] : memref<432x128xbf16, #tpu.memory_space<vmem>>, vector<144x128xbf16>
    %cst_259 = arith.constant dense<0.000000e+00> : vector<16x128xf32>
    %227 = tpu.matmul %205, %226, %cst_259 {dimension_numbers = #tpu.dot_dimension_numbers<[1], [0], [0], [1], [0, 0, 1, 1], [], []>} : vector<16x144xbf16>, vector<144x128xbf16>, vector<16x128xf32> -> vector<16x128xf32>
    %228 = vector.broadcast %207 : vector<16x1xf32> to vector<16x128xf32>
    %229 = arith.addf %227, %228 : vector<16x128xf32>
    %cst_260 = arith.constant 0.000000e+00 : f32
    %230 = vector.broadcast %cst_260 : f32 to vector<16x128xf32>
    %231 = arith.cmpf oge, %229, %230 : vector<16x128xf32>
    %cst_261 = arith.constant 2.500000e-01 : f32
    %232 = vector.broadcast %cst_261 : f32 to vector<16x128xf32>
    %233 = arith.mulf %232, %229 : vector<16x128xf32>
    %234 = arith.select %231, %229, %233 : vector<16x128xi1>, vector<16x128xf32>
    %cst_262 = arith.constant 0.000000e+00 : f32
    %235 = vector.shape_cast %21 : vector<1x128xi1> to vector<1x128xi1>
    %236 = vector.broadcast %235 : vector<1x128xi1> to vector<16x128xi1>
    %237 = vector.broadcast %cst_262 : f32 to vector<16x128xf32>
    %238 = arith.select %236, %234, %237 : vector<16x128xi1>, vector<16x128xf32>
    %239 = arith.truncf %238 : vector<16x128xf32> to vector<16x128xbf16>
    %c0_263 = arith.constant 0 : index
    %c128_264 = arith.constant 128 : index
    %240 = vector.load %arg19[%c0_263, %c128_264] : memref<16x384xbf16, #tpu.memory_space<vmem>>, vector<16x128xbf16>
    tpu.vector_store %arg19[%c0_263, %c128_264], %239 {strides = array<i32>} : memref<16x384xbf16, #tpu.memory_space<vmem>>, vector<16x128xbf16>,
    %c3 = arith.constant 3 : index
    %c0_265 = arith.constant 0 : index
    %c0_266 = arith.constant 0 : index
    %241 = vector.load %arg8[%c3, %c0_265, %c0_266] : memref<10x16x144xbf16, #tpu.memory_space<vmem>>, vector<1x16x144xbf16>
    %242 = vector.shape_cast %241 : vector<1x16x144xbf16> to vector<16x144xbf16>
    %c3_267 = arith.constant 3 : index
    %c0_268 = arith.constant 0 : index
    %c0_269 = arith.constant 0 : index
    %243 = vector.load %arg9[%c3_267, %c0_268, %c0_269] : memref<10x16x1xf32, #tpu.memory_space<vmem>>, vector<1x16x1xf32>
    %244 = vector.shape_cast %243 : vector<1x16x1xf32> to vector<16x1xf32>
    %c0_270 = arith.constant 0 : index
    %c117_271 = arith.constant 117 : index
    %245 = vector.load %arg19[%c0_270, %c117_271] : memref<16x384xbf16, #tpu.memory_space<vmem>>, vector<16x128xbf16>
    %c0_272 = arith.constant 0 : index
    %c0_273 = arith.constant 0 : index
    %246 = vector.load %arg20[%c0_272, %c0_273] : memref<432x128xbf16, #tpu.memory_space<vmem>>, vector<16x128xbf16>
    tpu.vector_store %arg20[%c0_272, %c0_273], %245 {strides = array<i32>} : memref<432x128xbf16, #tpu.memory_space<vmem>>, vector<16x128xbf16>,
    %c0_274 = arith.constant 0 : index
    %c118_275 = arith.constant 118 : index
    %247 = vector.load %arg19[%c0_274, %c118_275] : memref<16x384xbf16, #tpu.memory_space<vmem>>, vector<16x128xbf16>
    %c16_276 = arith.constant 16 : index
    %c0_277 = arith.constant 0 : index
    %248 = vector.load %arg20[%c16_276, %c0_277] : memref<432x128xbf16, #tpu.memory_space<vmem>>, vector<16x128xbf16>
    tpu.vector_store %arg20[%c16_276, %c0_277], %247 {strides = array<i32>} : memref<432x128xbf16, #tpu.memory_space<vmem>>, vector<16x128xbf16>,
    %c0_278 = arith.constant 0 : index
    %c119_279 = arith.constant 119 : index
    %249 = vector.load %arg19[%c0_278, %c119_279] : memref<16x384xbf16, #tpu.memory_space<vmem>>, vector<16x128xbf16>
    %c32_280 = arith.constant 32 : index
    %c0_281 = arith.constant 0 : index
    %250 = vector.load %arg20[%c32_280, %c0_281] : memref<432x128xbf16, #tpu.memory_space<vmem>>, vector<16x128xbf16>
    tpu.vector_store %arg20[%c32_280, %c0_281], %249 {strides = array<i32>} : memref<432x128xbf16, #tpu.memory_space<vmem>>, vector<16x128xbf16>,
    %c0_282 = arith.constant 0 : index
    %c127_283 = arith.constant 127 : index
    %251 = vector.load %arg19[%c0_282, %c127_283] : memref<16x384xbf16, #tpu.memory_space<vmem>>, vector<16x128xbf16>
    %c48_284 = arith.constant 48 : index
    %c0_285 = arith.constant 0 : index
    %252 = vector.load %arg20[%c48_284, %c0_285] : memref<432x128xbf16, #tpu.memory_space<vmem>>, vector<16x128xbf16>
    tpu.vector_store %arg20[%c48_284, %c0_285], %251 {strides = array<i32>} : memref<432x128xbf16, #tpu.memory_space<vmem>>, vector<16x128xbf16>,
    %c0_286 = arith.constant 0 : index
    %c128_287 = arith.constant 128 : index
    %253 = vector.load %arg19[%c0_286, %c128_287] : memref<16x384xbf16, #tpu.memory_space<vmem>>, vector<16x128xbf16>
    %c64_288 = arith.constant 64 : index
    %c0_289 = arith.constant 0 : index
    %254 = vector.load %arg20[%c64_288, %c0_289] : memref<432x128xbf16, #tpu.memory_space<vmem>>, vector<16x128xbf16>
    tpu.vector_store %arg20[%c64_288, %c0_289], %253 {strides = array<i32>} : memref<432x128xbf16, #tpu.memory_space<vmem>>, vector<16x128xbf16>,
    %c0_290 = arith.constant 0 : index
    %c129_291 = arith.constant 129 : index
    %255 = vector.load %arg19[%c0_290, %c129_291] : memref<16x384xbf16, #tpu.memory_space<vmem>>, vector<16x128xbf16>
    %c80_292 = arith.constant 80 : index
    %c0_293 = arith.constant 0 : index
    %256 = vector.load %arg20[%c80_292, %c0_293] : memref<432x128xbf16, #tpu.memory_space<vmem>>, vector<16x128xbf16>
    tpu.vector_store %arg20[%c80_292, %c0_293], %255 {strides = array<i32>} : memref<432x128xbf16, #tpu.memory_space<vmem>>, vector<16x128xbf16>,
    %c0_294 = arith.constant 0 : index
    %c137_295 = arith.constant 137 : index
    %257 = vector.load %arg19[%c0_294, %c137_295] : memref<16x384xbf16, #tpu.memory_space<vmem>>, vector<16x128xbf16>
    %c96_296 = arith.constant 96 : index
    %c0_297 = arith.constant 0 : index
    %258 = vector.load %arg20[%c96_296, %c0_297] : memref<432x128xbf16, #tpu.memory_space<vmem>>, vector<16x128xbf16>
    tpu.vector_store %arg20[%c96_296, %c0_297], %257 {strides = array<i32>} : memref<432x128xbf16, #tpu.memory_space<vmem>>, vector<16x128xbf16>,
    %c0_298 = arith.constant 0 : index
    %c138_299 = arith.constant 138 : index
    %259 = vector.load %arg19[%c0_298, %c138_299] : memref<16x384xbf16, #tpu.memory_space<vmem>>, vector<16x128xbf16>
    %c112_300 = arith.constant 112 : index
    %c0_301 = arith.constant 0 : index
    %260 = vector.load %arg20[%c112_300, %c0_301] : memref<432x128xbf16, #tpu.memory_space<vmem>>, vector<16x128xbf16>
    tpu.vector_store %arg20[%c112_300, %c0_301], %259 {strides = array<i32>} : memref<432x128xbf16, #tpu.memory_space<vmem>>, vector<16x128xbf16>,
    %c0_302 = arith.constant 0 : index
    %c139_303 = arith.constant 139 : index
    %261 = vector.load %arg19[%c0_302, %c139_303] : memref<16x384xbf16, #tpu.memory_space<vmem>>, vector<16x128xbf16>
    %c128_304 = arith.constant 128 : index
    %c0_305 = arith.constant 0 : index
    %262 = vector.load %arg20[%c128_304, %c0_305] : memref<432x128xbf16, #tpu.memory_space<vmem>>, vector<16x128xbf16>
    tpu.vector_store %arg20[%c128_304, %c0_305], %261 {strides = array<i32>} : memref<432x128xbf16, #tpu.memory_space<vmem>>, vector<16x128xbf16>,
    %c0_306 = arith.constant 0 : index
    %c0_307 = arith.constant 0 : index
    %263 = vector.load %arg20[%c0_306, %c0_307] : memref<432x128xbf16, #tpu.memory_space<vmem>>, vector<144x128xbf16>
    %cst_308 = arith.constant dense<0.000000e+00> : vector<16x128xf32>
    %264 = tpu.matmul %242, %263, %cst_308 {dimension_numbers = #tpu.dot_dimension_numbers<[1], [0], [0], [1], [0, 0, 1, 1], [], []>} : vector<16x144xbf16>, vector<144x128xbf16>, vector<16x128xf32> -> vector<16x128xf32>
    %265 = vector.broadcast %244 : vector<16x1xf32> to vector<16x128xf32>
    %266 = arith.addf %264, %265 : vector<16x128xf32>
    %cst_309 = arith.constant 0.000000e+00 : f32
    %267 = vector.shape_cast %21 : vector<1x128xi1> to vector<1x128xi1>
    %268 = vector.broadcast %267 : vector<1x128xi1> to vector<16x128xi1>
    %269 = vector.broadcast %cst_309 : f32 to vector<16x128xf32>
    %270 = arith.select %268, %266, %269 : vector<16x128xi1>, vector<16x128xf32>
    %c0_310 = arith.constant 0 : index
    %c128_311 = arith.constant 128 : index
    %271 = vector.load %arg18[%c0_310, %c128_311] : memref<16x384xbf16, #tpu.memory_space<vmem>>, vector<16x128xbf16>
    %272 = arith.extf %271 : vector<16x128xbf16> to vector<16x128xf32>
    %273 = arith.addf %270, %272 : vector<16x128xf32>
    %274 = arith.truncf %273 : vector<16x128xf32> to vector<16x128xbf16>
    %c0_312 = arith.constant 0 : index
    %c128_313 = arith.constant 128 : index
    %275 = vector.load %arg18[%c0_312, %c128_313] : memref<16x384xbf16, #tpu.memory_space<vmem>>, vector<16x128xbf16>
    tpu.vector_store %arg18[%c0_312, %c128_313], %274 {strides = array<i32>} : memref<16x384xbf16, #tpu.memory_space<vmem>>, vector<16x128xbf16>,
    %c4 = arith.constant 4 : index
    %c0_314 = arith.constant 0 : index
    %c0_315 = arith.constant 0 : index
    %276 = vector.load %arg8[%c4, %c0_314, %c0_315] : memref<10x16x144xbf16, #tpu.memory_space<vmem>>, vector<1x16x144xbf16>
    %277 = vector.shape_cast %276 : vector<1x16x144xbf16> to vector<16x144xbf16>
    %c4_316 = arith.constant 4 : index
    %c0_317 = arith.constant 0 : index
    %c0_318 = arith.constant 0 : index
    %278 = vector.load %arg9[%c4_316, %c0_317, %c0_318] : memref<10x16x1xf32, #tpu.memory_space<vmem>>, vector<1x16x1xf32>
    %279 = vector.shape_cast %278 : vector<1x16x1xf32> to vector<16x1xf32>
    %c0_319 = arith.constant 0 : index
    %c117_320 = arith.constant 117 : index
    %280 = vector.load %arg18[%c0_319, %c117_320] : memref<16x384xbf16, #tpu.memory_space<vmem>>, vector<16x128xbf16>
    %c0_321 = arith.constant 0 : index
    %c0_322 = arith.constant 0 : index
    %281 = vector.load %arg20[%c0_321, %c0_322] : memref<432x128xbf16, #tpu.memory_space<vmem>>, vector<16x128xbf16>
    tpu.vector_store %arg20[%c0_321, %c0_322], %280 {strides = array<i32>} : memref<432x128xbf16, #tpu.memory_space<vmem>>, vector<16x128xbf16>,
    %c0_323 = arith.constant 0 : index
    %c118_324 = arith.constant 118 : index
    %282 = vector.load %arg18[%c0_323, %c118_324] : memref<16x384xbf16, #tpu.memory_space<vmem>>, vector<16x128xbf16>
    %c16_325 = arith.constant 16 : index
    %c0_326 = arith.constant 0 : index
    %283 = vector.load %arg20[%c16_325, %c0_326] : memref<432x128xbf16, #tpu.memory_space<vmem>>, vector<16x128xbf16>
    tpu.vector_store %arg20[%c16_325, %c0_326], %282 {strides = array<i32>} : memref<432x128xbf16, #tpu.memory_space<vmem>>, vector<16x128xbf16>,
    %c0_327 = arith.constant 0 : index
    %c119_328 = arith.constant 119 : index
    %284 = vector.load %arg18[%c0_327, %c119_328] : memref<16x384xbf16, #tpu.memory_space<vmem>>, vector<16x128xbf16>
    %c32_329 = arith.constant 32 : index
    %c0_330 = arith.constant 0 : index
    %285 = vector.load %arg20[%c32_329, %c0_330] : memref<432x128xbf16, #tpu.memory_space<vmem>>, vector<16x128xbf16>
    tpu.vector_store %arg20[%c32_329, %c0_330], %284 {strides = array<i32>} : memref<432x128xbf16, #tpu.memory_space<vmem>>, vector<16x128xbf16>,
    %c0_331 = arith.constant 0 : index
    %c127_332 = arith.constant 127 : index
    %286 = vector.load %arg18[%c0_331, %c127_332] : memref<16x384xbf16, #tpu.memory_space<vmem>>, vector<16x128xbf16>
    %c48_333 = arith.constant 48 : index
    %c0_334 = arith.constant 0 : index
    %287 = vector.load %arg20[%c48_333, %c0_334] : memref<432x128xbf16, #tpu.memory_space<vmem>>, vector<16x128xbf16>
    tpu.vector_store %arg20[%c48_333, %c0_334], %286 {strides = array<i32>} : memref<432x128xbf16, #tpu.memory_space<vmem>>, vector<16x128xbf16>,
    %c0_335 = arith.constant 0 : index
    %c128_336 = arith.constant 128 : index
    %288 = vector.load %arg18[%c0_335, %c128_336] : memref<16x384xbf16, #tpu.memory_space<vmem>>, vector<16x128xbf16>
    %c64_337 = arith.constant 64 : index
    %c0_338 = arith.constant 0 : index
    %289 = vector.load %arg20[%c64_337, %c0_338] : memref<432x128xbf16, #tpu.memory_space<vmem>>, vector<16x128xbf16>
    tpu.vector_store %arg20[%c64_337, %c0_338], %288 {strides = array<i32>} : memref<432x128xbf16, #tpu.memory_space<vmem>>, vector<16x128xbf16>,
    %c0_339 = arith.constant 0 : index
    %c129_340 = arith.constant 129 : index
    %290 = vector.load %arg18[%c0_339, %c129_340] : memref<16x384xbf16, #tpu.memory_space<vmem>>, vector<16x128xbf16>
    %c80_341 = arith.constant 80 : index
    %c0_342 = arith.constant 0 : index
    %291 = vector.load %arg20[%c80_341, %c0_342] : memref<432x128xbf16, #tpu.memory_space<vmem>>, vector<16x128xbf16>
    tpu.vector_store %arg20[%c80_341, %c0_342], %290 {strides = array<i32>} : memref<432x128xbf16, #tpu.memory_space<vmem>>, vector<16x128xbf16>,
    %c0_343 = arith.constant 0 : index
    %c137_344 = arith.constant 137 : index
    %292 = vector.load %arg18[%c0_343, %c137_344] : memref<16x384xbf16, #tpu.memory_space<vmem>>, vector<16x128xbf16>
    %c96_345 = arith.constant 96 : index
    %c0_346 = arith.constant 0 : index
    %293 = vector.load %arg20[%c96_345, %c0_346] : memref<432x128xbf16, #tpu.memory_space<vmem>>, vector<16x128xbf16>
    tpu.vector_store %arg20[%c96_345, %c0_346], %292 {strides = array<i32>} : memref<432x128xbf16, #tpu.memory_space<vmem>>, vector<16x128xbf16>,
    %c0_347 = arith.constant 0 : index
    %c138_348 = arith.constant 138 : index
    %294 = vector.load %arg18[%c0_347, %c138_348] : memref<16x384xbf16, #tpu.memory_space<vmem>>, vector<16x128xbf16>
    %c112_349 = arith.constant 112 : index
    %c0_350 = arith.constant 0 : index
    %295 = vector.load %arg20[%c112_349, %c0_350] : memref<432x128xbf16, #tpu.memory_space<vmem>>, vector<16x128xbf16>
    tpu.vector_store %arg20[%c112_349, %c0_350], %294 {strides = array<i32>} : memref<432x128xbf16, #tpu.memory_space<vmem>>, vector<16x128xbf16>,
    %c0_351 = arith.constant 0 : index
    %c139_352 = arith.constant 139 : index
    %296 = vector.load %arg18[%c0_351, %c139_352] : memref<16x384xbf16, #tpu.memory_space<vmem>>, vector<16x128xbf16>
    %c128_353 = arith.constant 128 : index
    %c0_354 = arith.constant 0 : index
    %297 = vector.load %arg20[%c128_353, %c0_354] : memref<432x128xbf16, #tpu.memory_space<vmem>>, vector<16x128xbf16>
    tpu.vector_store %arg20[%c128_353, %c0_354], %296 {strides = array<i32>} : memref<432x128xbf16, #tpu.memory_space<vmem>>, vector<16x128xbf16>,
    %c0_355 = arith.constant 0 : index
    %c0_356 = arith.constant 0 : index
    %298 = vector.load %arg20[%c0_355, %c0_356] : memref<432x128xbf16, #tpu.memory_space<vmem>>, vector<144x128xbf16>
    %cst_357 = arith.constant dense<0.000000e+00> : vector<16x128xf32>
    %299 = tpu.matmul %277, %298, %cst_357 {dimension_numbers = #tpu.dot_dimension_numbers<[1], [0], [0], [1], [0, 0, 1, 1], [], []>} : vector<16x144xbf16>, vector<144x128xbf16>, vector<16x128xf32> -> vector<16x128xf32>
    %300 = vector.broadcast %279 : vector<16x1xf32> to vector<16x128xf32>
    %301 = arith.addf %299, %300 : vector<16x128xf32>
    %cst_358 = arith.constant 0.000000e+00 : f32
    %302 = vector.broadcast %cst_358 : f32 to vector<16x128xf32>
    %303 = arith.cmpf oge, %301, %302 : vector<16x128xf32>
    %cst_359 = arith.constant 2.500000e-01 : f32
    %304 = vector.broadcast %cst_359 : f32 to vector<16x128xf32>
    %305 = arith.mulf %304, %301 : vector<16x128xf32>
    %306 = arith.select %303, %301, %305 : vector<16x128xi1>, vector<16x128xf32>
    %cst_360 = arith.constant 0.000000e+00 : f32
    %307 = vector.shape_cast %21 : vector<1x128xi1> to vector<1x128xi1>
    %308 = vector.broadcast %307 : vector<1x128xi1> to vector<16x128xi1>
    %309 = vector.broadcast %cst_360 : f32 to vector<16x128xf32>
    %310 = arith.select %308, %306, %309 : vector<16x128xi1>, vector<16x128xf32>
    %311 = arith.truncf %310 : vector<16x128xf32> to vector<16x128xbf16>
    %c0_361 = arith.constant 0 : index
    %c128_362 = arith.constant 128 : index
    %312 = vector.load %arg19[%c0_361, %c128_362] : memref<16x384xbf16, #tpu.memory_space<vmem>>, vector<16x128xbf16>
    tpu.vector_store %arg19[%c0_361, %c128_362], %311 {strides = array<i32>} : memref<16x384xbf16, #tpu.memory_space<vmem>>, vector<16x128xbf16>,
    %c5 = arith.constant 5 : index
    %c0_363 = arith.constant 0 : index
    %c0_364 = arith.constant 0 : index
    %313 = vector.load %arg8[%c5, %c0_363, %c0_364] : memref<10x16x144xbf16, #tpu.memory_space<vmem>>, vector<1x16x144xbf16>
    %314 = vector.shape_cast %313 : vector<1x16x144xbf16> to vector<16x144xbf16>
    %c5_365 = arith.constant 5 : index
    %c0_366 = arith.constant 0 : index
    %c0_367 = arith.constant 0 : index
    %315 = vector.load %arg9[%c5_365, %c0_366, %c0_367] : memref<10x16x1xf32, #tpu.memory_space<vmem>>, vector<1x16x1xf32>
    %316 = vector.shape_cast %315 : vector<1x16x1xf32> to vector<16x1xf32>
    %c0_368 = arith.constant 0 : index
    %c117_369 = arith.constant 117 : index
    %317 = vector.load %arg19[%c0_368, %c117_369] : memref<16x384xbf16, #tpu.memory_space<vmem>>, vector<16x128xbf16>
    %c0_370 = arith.constant 0 : index
    %c0_371 = arith.constant 0 : index
    %318 = vector.load %arg20[%c0_370, %c0_371] : memref<432x128xbf16, #tpu.memory_space<vmem>>, vector<16x128xbf16>
    tpu.vector_store %arg20[%c0_370, %c0_371], %317 {strides = array<i32>} : memref<432x128xbf16, #tpu.memory_space<vmem>>, vector<16x128xbf16>,
    %c0_372 = arith.constant 0 : index
    %c118_373 = arith.constant 118 : index
    %319 = vector.load %arg19[%c0_372, %c118_373] : memref<16x384xbf16, #tpu.memory_space<vmem>>, vector<16x128xbf16>
    %c16_374 = arith.constant 16 : index
    %c0_375 = arith.constant 0 : index
    %320 = vector.load %arg20[%c16_374, %c0_375] : memref<432x128xbf16, #tpu.memory_space<vmem>>, vector<16x128xbf16>
    tpu.vector_store %arg20[%c16_374, %c0_375], %319 {strides = array<i32>} : memref<432x128xbf16, #tpu.memory_space<vmem>>, vector<16x128xbf16>,
    %c0_376 = arith.constant 0 : index
    %c119_377 = arith.constant 119 : index
    %321 = vector.load %arg19[%c0_376, %c119_377] : memref<16x384xbf16, #tpu.memory_space<vmem>>, vector<16x128xbf16>
    %c32_378 = arith.constant 32 : index
    %c0_379 = arith.constant 0 : index
    %322 = vector.load %arg20[%c32_378, %c0_379] : memref<432x128xbf16, #tpu.memory_space<vmem>>, vector<16x128xbf16>
    tpu.vector_store %arg20[%c32_378, %c0_379], %321 {strides = array<i32>} : memref<432x128xbf16, #tpu.memory_space<vmem>>, vector<16x128xbf16>,
    %c0_380 = arith.constant 0 : index
    %c127_381 = arith.constant 127 : index
    %323 = vector.load %arg19[%c0_380, %c127_381] : memref<16x384xbf16, #tpu.memory_space<vmem>>, vector<16x128xbf16>
    %c48_382 = arith.constant 48 : index
    %c0_383 = arith.constant 0 : index
    %324 = vector.load %arg20[%c48_382, %c0_383] : memref<432x128xbf16, #tpu.memory_space<vmem>>, vector<16x128xbf16>
    tpu.vector_store %arg20[%c48_382, %c0_383], %323 {strides = array<i32>} : memref<432x128xbf16, #tpu.memory_space<vmem>>, vector<16x128xbf16>,
    %c0_384 = arith.constant 0 : index
    %c128_385 = arith.constant 128 : index
    %325 = vector.load %arg19[%c0_384, %c128_385] : memref<16x384xbf16, #tpu.memory_space<vmem>>, vector<16x128xbf16>
    %c64_386 = arith.constant 64 : index
    %c0_387 = arith.constant 0 : index
    %326 = vector.load %arg20[%c64_386, %c0_387] : memref<432x128xbf16, #tpu.memory_space<vmem>>, vector<16x128xbf16>
    tpu.vector_store %arg20[%c64_386, %c0_387], %325 {strides = array<i32>} : memref<432x128xbf16, #tpu.memory_space<vmem>>, vector<16x128xbf16>,
    %c0_388 = arith.constant 0 : index
    %c129_389 = arith.constant 129 : index
    %327 = vector.load %arg19[%c0_388, %c129_389] : memref<16x384xbf16, #tpu.memory_space<vmem>>, vector<16x128xbf16>
    %c80_390 = arith.constant 80 : index
    %c0_391 = arith.constant 0 : index
    %328 = vector.load %arg20[%c80_390, %c0_391] : memref<432x128xbf16, #tpu.memory_space<vmem>>, vector<16x128xbf16>
    tpu.vector_store %arg20[%c80_390, %c0_391], %327 {strides = array<i32>} : memref<432x128xbf16, #tpu.memory_space<vmem>>, vector<16x128xbf16>,
    %c0_392 = arith.constant 0 : index
    %c137_393 = arith.constant 137 : index
    %329 = vector.load %arg19[%c0_392, %c137_393] : memref<16x384xbf16, #tpu.memory_space<vmem>>, vector<16x128xbf16>
    %c96_394 = arith.constant 96 : index
    %c0_395 = arith.constant 0 : index
    %330 = vector.load %arg20[%c96_394, %c0_395] : memref<432x128xbf16, #tpu.memory_space<vmem>>, vector<16x128xbf16>
    tpu.vector_store %arg20[%c96_394, %c0_395], %329 {strides = array<i32>} : memref<432x128xbf16, #tpu.memory_space<vmem>>, vector<16x128xbf16>,
    %c0_396 = arith.constant 0 : index
    %c138_397 = arith.constant 138 : index
    %331 = vector.load %arg19[%c0_396, %c138_397] : memref<16x384xbf16, #tpu.memory_space<vmem>>, vector<16x128xbf16>
    %c112_398 = arith.constant 112 : index
    %c0_399 = arith.constant 0 : index
    %332 = vector.load %arg20[%c112_398, %c0_399] : memref<432x128xbf16, #tpu.memory_space<vmem>>, vector<16x128xbf16>
    tpu.vector_store %arg20[%c112_398, %c0_399], %331 {strides = array<i32>} : memref<432x128xbf16, #tpu.memory_space<vmem>>, vector<16x128xbf16>,
    %c0_400 = arith.constant 0 : index
    %c139_401 = arith.constant 139 : index
    %333 = vector.load %arg19[%c0_400, %c139_401] : memref<16x384xbf16, #tpu.memory_space<vmem>>, vector<16x128xbf16>
    %c128_402 = arith.constant 128 : index
    %c0_403 = arith.constant 0 : index
    %334 = vector.load %arg20[%c128_402, %c0_403] : memref<432x128xbf16, #tpu.memory_space<vmem>>, vector<16x128xbf16>
    tpu.vector_store %arg20[%c128_402, %c0_403], %333 {strides = array<i32>} : memref<432x128xbf16, #tpu.memory_space<vmem>>, vector<16x128xbf16>,
    %c0_404 = arith.constant 0 : index
    %c0_405 = arith.constant 0 : index
    %335 = vector.load %arg20[%c0_404, %c0_405] : memref<432x128xbf16, #tpu.memory_space<vmem>>, vector<144x128xbf16>
    %cst_406 = arith.constant dense<0.000000e+00> : vector<16x128xf32>
    %336 = tpu.matmul %314, %335, %cst_406 {dimension_numbers = #tpu.dot_dimension_numbers<[1], [0], [0], [1], [0, 0, 1, 1], [], []>} : vector<16x144xbf16>, vector<144x128xbf16>, vector<16x128xf32> -> vector<16x128xf32>
    %337 = vector.broadcast %316 : vector<16x1xf32> to vector<16x128xf32>
    %338 = arith.addf %336, %337 : vector<16x128xf32>
    %cst_407 = arith.constant 0.000000e+00 : f32
    %339 = vector.shape_cast %21 : vector<1x128xi1> to vector<1x128xi1>
    %340 = vector.broadcast %339 : vector<1x128xi1> to vector<16x128xi1>
    %341 = vector.broadcast %cst_407 : f32 to vector<16x128xf32>
    %342 = arith.select %340, %338, %341 : vector<16x128xi1>, vector<16x128xf32>
    %c0_408 = arith.constant 0 : index
    %c128_409 = arith.constant 128 : index
    %343 = vector.load %arg18[%c0_408, %c128_409] : memref<16x384xbf16, #tpu.memory_space<vmem>>, vector<16x128xbf16>
    %344 = arith.extf %343 : vector<16x128xbf16> to vector<16x128xf32>
    %345 = arith.addf %342, %344 : vector<16x128xf32>
    %346 = arith.truncf %345 : vector<16x128xf32> to vector<16x128xbf16>
    %c0_410 = arith.constant 0 : index
    %c128_411 = arith.constant 128 : index
    %347 = vector.load %arg18[%c0_410, %c128_411] : memref<16x384xbf16, #tpu.memory_space<vmem>>, vector<16x128xbf16>
    tpu.vector_store %arg18[%c0_410, %c128_411], %346 {strides = array<i32>} : memref<16x384xbf16, #tpu.memory_space<vmem>>, vector<16x128xbf16>,
    %c6 = arith.constant 6 : index
    %c0_412 = arith.constant 0 : index
    %c0_413 = arith.constant 0 : index
    %348 = vector.load %arg8[%c6, %c0_412, %c0_413] : memref<10x16x144xbf16, #tpu.memory_space<vmem>>, vector<1x16x144xbf16>
    %349 = vector.shape_cast %348 : vector<1x16x144xbf16> to vector<16x144xbf16>
    %c6_414 = arith.constant 6 : index
    %c0_415 = arith.constant 0 : index
    %c0_416 = arith.constant 0 : index
    %350 = vector.load %arg9[%c6_414, %c0_415, %c0_416] : memref<10x16x1xf32, #tpu.memory_space<vmem>>, vector<1x16x1xf32>
    %351 = vector.shape_cast %350 : vector<1x16x1xf32> to vector<16x1xf32>
    %c0_417 = arith.constant 0 : index
    %c117_418 = arith.constant 117 : index
    %352 = vector.load %arg18[%c0_417, %c117_418] : memref<16x384xbf16, #tpu.memory_space<vmem>>, vector<16x128xbf16>
    %c0_419 = arith.constant 0 : index
    %c0_420 = arith.constant 0 : index
    %353 = vector.load %arg20[%c0_419, %c0_420] : memref<432x128xbf16, #tpu.memory_space<vmem>>, vector<16x128xbf16>
    tpu.vector_store %arg20[%c0_419, %c0_420], %352 {strides = array<i32>} : memref<432x128xbf16, #tpu.memory_space<vmem>>, vector<16x128xbf16>,
    %c0_421 = arith.constant 0 : index
    %c118_422 = arith.constant 118 : index
    %354 = vector.load %arg18[%c0_421, %c118_422] : memref<16x384xbf16, #tpu.memory_space<vmem>>, vector<16x128xbf16>
    %c16_423 = arith.constant 16 : index
    %c0_424 = arith.constant 0 : index
    %355 = vector.load %arg20[%c16_423, %c0_424] : memref<432x128xbf16, #tpu.memory_space<vmem>>, vector<16x128xbf16>
    tpu.vector_store %arg20[%c16_423, %c0_424], %354 {strides = array<i32>} : memref<432x128xbf16, #tpu.memory_space<vmem>>, vector<16x128xbf16>,
    %c0_425 = arith.constant 0 : index
    %c119_426 = arith.constant 119 : index
    %356 = vector.load %arg18[%c0_425, %c119_426] : memref<16x384xbf16, #tpu.memory_space<vmem>>, vector<16x128xbf16>
    %c32_427 = arith.constant 32 : index
    %c0_428 = arith.constant 0 : index
    %357 = vector.load %arg20[%c32_427, %c0_428] : memref<432x128xbf16, #tpu.memory_space<vmem>>, vector<16x128xbf16>
    tpu.vector_store %arg20[%c32_427, %c0_428], %356 {strides = array<i32>} : memref<432x128xbf16, #tpu.memory_space<vmem>>, vector<16x128xbf16>,
    %c0_429 = arith.constant 0 : index
    %c127_430 = arith.constant 127 : index
    %358 = vector.load %arg18[%c0_429, %c127_430] : memref<16x384xbf16, #tpu.memory_space<vmem>>, vector<16x128xbf16>
    %c48_431 = arith.constant 48 : index
    %c0_432 = arith.constant 0 : index
    %359 = vector.load %arg20[%c48_431, %c0_432] : memref<432x128xbf16, #tpu.memory_space<vmem>>, vector<16x128xbf16>
    tpu.vector_store %arg20[%c48_431, %c0_432], %358 {strides = array<i32>} : memref<432x128xbf16, #tpu.memory_space<vmem>>, vector<16x128xbf16>,
    %c0_433 = arith.constant 0 : index
    %c128_434 = arith.constant 128 : index
    %360 = vector.load %arg18[%c0_433, %c128_434] : memref<16x384xbf16, #tpu.memory_space<vmem>>, vector<16x128xbf16>
    %c64_435 = arith.constant 64 : index
    %c0_436 = arith.constant 0 : index
    %361 = vector.load %arg20[%c64_435, %c0_436] : memref<432x128xbf16, #tpu.memory_space<vmem>>, vector<16x128xbf16>
    tpu.vector_store %arg20[%c64_435, %c0_436], %360 {strides = array<i32>} : memref<432x128xbf16, #tpu.memory_space<vmem>>, vector<16x128xbf16>,
    %c0_437 = arith.constant 0 : index
    %c129_438 = arith.constant 129 : index
    %362 = vector.load %arg18[%c0_437, %c129_438] : memref<16x384xbf16, #tpu.memory_space<vmem>>, vector<16x128xbf16>
    %c80_439 = arith.constant 80 : index
    %c0_440 = arith.constant 0 : index
    %363 = vector.load %arg20[%c80_439, %c0_440] : memref<432x128xbf16, #tpu.memory_space<vmem>>, vector<16x128xbf16>
    tpu.vector_store %arg20[%c80_439, %c0_440], %362 {strides = array<i32>} : memref<432x128xbf16, #tpu.memory_space<vmem>>, vector<16x128xbf16>,
    %c0_441 = arith.constant 0 : index
    %c137_442 = arith.constant 137 : index
    %364 = vector.load %arg18[%c0_441, %c137_442] : memref<16x384xbf16, #tpu.memory_space<vmem>>, vector<16x128xbf16>
    %c96_443 = arith.constant 96 : index
    %c0_444 = arith.constant 0 : index
    %365 = vector.load %arg20[%c96_443, %c0_444] : memref<432x128xbf16, #tpu.memory_space<vmem>>, vector<16x128xbf16>
    tpu.vector_store %arg20[%c96_443, %c0_444], %364 {strides = array<i32>} : memref<432x128xbf16, #tpu.memory_space<vmem>>, vector<16x128xbf16>,
    %c0_445 = arith.constant 0 : index
    %c138_446 = arith.constant 138 : index
    %366 = vector.load %arg18[%c0_445, %c138_446] : memref<16x384xbf16, #tpu.memory_space<vmem>>, vector<16x128xbf16>
    %c112_447 = arith.constant 112 : index
    %c0_448 = arith.constant 0 : index
    %367 = vector.load %arg20[%c112_447, %c0_448] : memref<432x128xbf16, #tpu.memory_space<vmem>>, vector<16x128xbf16>
    tpu.vector_store %arg20[%c112_447, %c0_448], %366 {strides = array<i32>} : memref<432x128xbf16, #tpu.memory_space<vmem>>, vector<16x128xbf16>,
    %c0_449 = arith.constant 0 : index
    %c139_450 = arith.constant 139 : index
    %368 = vector.load %arg18[%c0_449, %c139_450] : memref<16x384xbf16, #tpu.memory_space<vmem>>, vector<16x128xbf16>
    %c128_451 = arith.constant 128 : index
    %c0_452 = arith.constant 0 : index
    %369 = vector.load %arg20[%c128_451, %c0_452] : memref<432x128xbf16, #tpu.memory_space<vmem>>, vector<16x128xbf16>
    tpu.vector_store %arg20[%c128_451, %c0_452], %368 {strides = array<i32>} : memref<432x128xbf16, #tpu.memory_space<vmem>>, vector<16x128xbf16>,
    %c0_453 = arith.constant 0 : index
    %c0_454 = arith.constant 0 : index
    %370 = vector.load %arg20[%c0_453, %c0_454] : memref<432x128xbf16, #tpu.memory_space<vmem>>, vector<144x128xbf16>
    %cst_455 = arith.constant dense<0.000000e+00> : vector<16x128xf32>
    %371 = tpu.matmul %349, %370, %cst_455 {dimension_numbers = #tpu.dot_dimension_numbers<[1], [0], [0], [1], [0, 0, 1, 1], [], []>} : vector<16x144xbf16>, vector<144x128xbf16>, vector<16x128xf32> -> vector<16x128xf32>
    %372 = vector.broadcast %351 : vector<16x1xf32> to vector<16x128xf32>
    %373 = arith.addf %371, %372 : vector<16x128xf32>
    %cst_456 = arith.constant 0.000000e+00 : f32
    %374 = vector.broadcast %cst_456 : f32 to vector<16x128xf32>
    %375 = arith.cmpf oge, %373, %374 : vector<16x128xf32>
    %cst_457 = arith.constant 2.500000e-01 : f32
    %376 = vector.broadcast %cst_457 : f32 to vector<16x128xf32>
    %377 = arith.mulf %376, %373 : vector<16x128xf32>
    %378 = arith.select %375, %373, %377 : vector<16x128xi1>, vector<16x128xf32>
    %cst_458 = arith.constant 0.000000e+00 : f32
    %379 = vector.shape_cast %21 : vector<1x128xi1> to vector<1x128xi1>
    %380 = vector.broadcast %379 : vector<1x128xi1> to vector<16x128xi1>
    %381 = vector.broadcast %cst_458 : f32 to vector<16x128xf32>
    %382 = arith.select %380, %378, %381 : vector<16x128xi1>, vector<16x128xf32>
    %383 = arith.truncf %382 : vector<16x128xf32> to vector<16x128xbf16>
    %c0_459 = arith.constant 0 : index
    %c128_460 = arith.constant 128 : index
    %384 = vector.load %arg19[%c0_459, %c128_460] : memref<16x384xbf16, #tpu.memory_space<vmem>>, vector<16x128xbf16>
    tpu.vector_store %arg19[%c0_459, %c128_460], %383 {strides = array<i32>} : memref<16x384xbf16, #tpu.memory_space<vmem>>, vector<16x128xbf16>,
    %c7 = arith.constant 7 : index
    %c0_461 = arith.constant 0 : index
    %c0_462 = arith.constant 0 : index
    %385 = vector.load %arg8[%c7, %c0_461, %c0_462] : memref<10x16x144xbf16, #tpu.memory_space<vmem>>, vector<1x16x144xbf16>
    %386 = vector.shape_cast %385 : vector<1x16x144xbf16> to vector<16x144xbf16>
    %c7_463 = arith.constant 7 : index
    %c0_464 = arith.constant 0 : index
    %c0_465 = arith.constant 0 : index
    %387 = vector.load %arg9[%c7_463, %c0_464, %c0_465] : memref<10x16x1xf32, #tpu.memory_space<vmem>>, vector<1x16x1xf32>
    %388 = vector.shape_cast %387 : vector<1x16x1xf32> to vector<16x1xf32>
    %c0_466 = arith.constant 0 : index
    %c117_467 = arith.constant 117 : index
    %389 = vector.load %arg19[%c0_466, %c117_467] : memref<16x384xbf16, #tpu.memory_space<vmem>>, vector<16x128xbf16>
    %c0_468 = arith.constant 0 : index
    %c0_469 = arith.constant 0 : index
    %390 = vector.load %arg20[%c0_468, %c0_469] : memref<432x128xbf16, #tpu.memory_space<vmem>>, vector<16x128xbf16>
    tpu.vector_store %arg20[%c0_468, %c0_469], %389 {strides = array<i32>} : memref<432x128xbf16, #tpu.memory_space<vmem>>, vector<16x128xbf16>,
    %c0_470 = arith.constant 0 : index
    %c118_471 = arith.constant 118 : index
    %391 = vector.load %arg19[%c0_470, %c118_471] : memref<16x384xbf16, #tpu.memory_space<vmem>>, vector<16x128xbf16>
    %c16_472 = arith.constant 16 : index
    %c0_473 = arith.constant 0 : index
    %392 = vector.load %arg20[%c16_472, %c0_473] : memref<432x128xbf16, #tpu.memory_space<vmem>>, vector<16x128xbf16>
    tpu.vector_store %arg20[%c16_472, %c0_473], %391 {strides = array<i32>} : memref<432x128xbf16, #tpu.memory_space<vmem>>, vector<16x128xbf16>,
    %c0_474 = arith.constant 0 : index
    %c119_475 = arith.constant 119 : index
    %393 = vector.load %arg19[%c0_474, %c119_475] : memref<16x384xbf16, #tpu.memory_space<vmem>>, vector<16x128xbf16>
    %c32_476 = arith.constant 32 : index
    %c0_477 = arith.constant 0 : index
    %394 = vector.load %arg20[%c32_476, %c0_477] : memref<432x128xbf16, #tpu.memory_space<vmem>>, vector<16x128xbf16>
    tpu.vector_store %arg20[%c32_476, %c0_477], %393 {strides = array<i32>} : memref<432x128xbf16, #tpu.memory_space<vmem>>, vector<16x128xbf16>,
    %c0_478 = arith.constant 0 : index
    %c127_479 = arith.constant 127 : index
    %395 = vector.load %arg19[%c0_478, %c127_479] : memref<16x384xbf16, #tpu.memory_space<vmem>>, vector<16x128xbf16>
    %c48_480 = arith.constant 48 : index
    %c0_481 = arith.constant 0 : index
    %396 = vector.load %arg20[%c48_480, %c0_481] : memref<432x128xbf16, #tpu.memory_space<vmem>>, vector<16x128xbf16>
    tpu.vector_store %arg20[%c48_480, %c0_481], %395 {strides = array<i32>} : memref<432x128xbf16, #tpu.memory_space<vmem>>, vector<16x128xbf16>,
    %c0_482 = arith.constant 0 : index
    %c128_483 = arith.constant 128 : index
    %397 = vector.load %arg19[%c0_482, %c128_483] : memref<16x384xbf16, #tpu.memory_space<vmem>>, vector<16x128xbf16>
    %c64_484 = arith.constant 64 : index
    %c0_485 = arith.constant 0 : index
    %398 = vector.load %arg20[%c64_484, %c0_485] : memref<432x128xbf16, #tpu.memory_space<vmem>>, vector<16x128xbf16>
    tpu.vector_store %arg20[%c64_484, %c0_485], %397 {strides = array<i32>} : memref<432x128xbf16, #tpu.memory_space<vmem>>, vector<16x128xbf16>,
    %c0_486 = arith.constant 0 : index
    %c129_487 = arith.constant 129 : index
    %399 = vector.load %arg19[%c0_486, %c129_487] : memref<16x384xbf16, #tpu.memory_space<vmem>>, vector<16x128xbf16>
    %c80_488 = arith.constant 80 : index
    %c0_489 = arith.constant 0 : index
    %400 = vector.load %arg20[%c80_488, %c0_489] : memref<432x128xbf16, #tpu.memory_space<vmem>>, vector<16x128xbf16>
    tpu.vector_store %arg20[%c80_488, %c0_489], %399 {strides = array<i32>} : memref<432x128xbf16, #tpu.memory_space<vmem>>, vector<16x128xbf16>,
    %c0_490 = arith.constant 0 : index
    %c137_491 = arith.constant 137 : index
    %401 = vector.load %arg19[%c0_490, %c137_491] : memref<16x384xbf16, #tpu.memory_space<vmem>>, vector<16x128xbf16>
    %c96_492 = arith.constant 96 : index
    %c0_493 = arith.constant 0 : index
    %402 = vector.load %arg20[%c96_492, %c0_493] : memref<432x128xbf16, #tpu.memory_space<vmem>>, vector<16x128xbf16>
    tpu.vector_store %arg20[%c96_492, %c0_493], %401 {strides = array<i32>} : memref<432x128xbf16, #tpu.memory_space<vmem>>, vector<16x128xbf16>,
    %c0_494 = arith.constant 0 : index
    %c138_495 = arith.constant 138 : index
    %403 = vector.load %arg19[%c0_494, %c138_495] : memref<16x384xbf16, #tpu.memory_space<vmem>>, vector<16x128xbf16>
    %c112_496 = arith.constant 112 : index
    %c0_497 = arith.constant 0 : index
    %404 = vector.load %arg20[%c112_496, %c0_497] : memref<432x128xbf16, #tpu.memory_space<vmem>>, vector<16x128xbf16>
    tpu.vector_store %arg20[%c112_496, %c0_497], %403 {strides = array<i32>} : memref<432x128xbf16, #tpu.memory_space<vmem>>, vector<16x128xbf16>,
    %c0_498 = arith.constant 0 : index
    %c139_499 = arith.constant 139 : index
    %405 = vector.load %arg19[%c0_498, %c139_499] : memref<16x384xbf16, #tpu.memory_space<vmem>>, vector<16x128xbf16>
    %c128_500 = arith.constant 128 : index
    %c0_501 = arith.constant 0 : index
    %406 = vector.load %arg20[%c128_500, %c0_501] : memref<432x128xbf16, #tpu.memory_space<vmem>>, vector<16x128xbf16>
    tpu.vector_store %arg20[%c128_500, %c0_501], %405 {strides = array<i32>} : memref<432x128xbf16, #tpu.memory_space<vmem>>, vector<16x128xbf16>,
    %c0_502 = arith.constant 0 : index
    %c0_503 = arith.constant 0 : index
    %407 = vector.load %arg20[%c0_502, %c0_503] : memref<432x128xbf16, #tpu.memory_space<vmem>>, vector<144x128xbf16>
    %cst_504 = arith.constant dense<0.000000e+00> : vector<16x128xf32>
    %408 = tpu.matmul %386, %407, %cst_504 {dimension_numbers = #tpu.dot_dimension_numbers<[1], [0], [0], [1], [0, 0, 1, 1], [], []>} : vector<16x144xbf16>, vector<144x128xbf16>, vector<16x128xf32> -> vector<16x128xf32>
    %409 = vector.broadcast %388 : vector<16x1xf32> to vector<16x128xf32>
    %410 = arith.addf %408, %409 : vector<16x128xf32>
    %cst_505 = arith.constant 0.000000e+00 : f32
    %411 = vector.shape_cast %21 : vector<1x128xi1> to vector<1x128xi1>
    %412 = vector.broadcast %411 : vector<1x128xi1> to vector<16x128xi1>
    %413 = vector.broadcast %cst_505 : f32 to vector<16x128xf32>
    %414 = arith.select %412, %410, %413 : vector<16x128xi1>, vector<16x128xf32>
    %c0_506 = arith.constant 0 : index
    %c128_507 = arith.constant 128 : index
    %415 = vector.load %arg18[%c0_506, %c128_507] : memref<16x384xbf16, #tpu.memory_space<vmem>>, vector<16x128xbf16>
    %416 = arith.extf %415 : vector<16x128xbf16> to vector<16x128xf32>
    %417 = arith.addf %414, %416 : vector<16x128xf32>
    %418 = arith.truncf %417 : vector<16x128xf32> to vector<16x128xbf16>
    %c0_508 = arith.constant 0 : index
    %c128_509 = arith.constant 128 : index
    %419 = vector.load %arg18[%c0_508, %c128_509] : memref<16x384xbf16, #tpu.memory_space<vmem>>, vector<16x128xbf16>
    tpu.vector_store %arg18[%c0_508, %c128_509], %418 {strides = array<i32>} : memref<16x384xbf16, #tpu.memory_space<vmem>>, vector<16x128xbf16>,
    %c8 = arith.constant 8 : index
    %c0_510 = arith.constant 0 : index
    %c0_511 = arith.constant 0 : index
    %420 = vector.load %arg8[%c8, %c0_510, %c0_511] : memref<10x16x144xbf16, #tpu.memory_space<vmem>>, vector<1x16x144xbf16>
    %421 = vector.shape_cast %420 : vector<1x16x144xbf16> to vector<16x144xbf16>
    %c8_512 = arith.constant 8 : index
    %c0_513 = arith.constant 0 : index
    %c0_514 = arith.constant 0 : index
    %422 = vector.load %arg9[%c8_512, %c0_513, %c0_514] : memref<10x16x1xf32, #tpu.memory_space<vmem>>, vector<1x16x1xf32>
    %423 = vector.shape_cast %422 : vector<1x16x1xf32> to vector<16x1xf32>
    %c0_515 = arith.constant 0 : index
    %c117_516 = arith.constant 117 : index
    %424 = vector.load %arg18[%c0_515, %c117_516] : memref<16x384xbf16, #tpu.memory_space<vmem>>, vector<16x128xbf16>
    %c0_517 = arith.constant 0 : index
    %c0_518 = arith.constant 0 : index
    %425 = vector.load %arg20[%c0_517, %c0_518] : memref<432x128xbf16, #tpu.memory_space<vmem>>, vector<16x128xbf16>
    tpu.vector_store %arg20[%c0_517, %c0_518], %424 {strides = array<i32>} : memref<432x128xbf16, #tpu.memory_space<vmem>>, vector<16x128xbf16>,
    %c0_519 = arith.constant 0 : index
    %c118_520 = arith.constant 118 : index
    %426 = vector.load %arg18[%c0_519, %c118_520] : memref<16x384xbf16, #tpu.memory_space<vmem>>, vector<16x128xbf16>
    %c16_521 = arith.constant 16 : index
    %c0_522 = arith.constant 0 : index
    %427 = vector.load %arg20[%c16_521, %c0_522] : memref<432x128xbf16, #tpu.memory_space<vmem>>, vector<16x128xbf16>
    tpu.vector_store %arg20[%c16_521, %c0_522], %426 {strides = array<i32>} : memref<432x128xbf16, #tpu.memory_space<vmem>>, vector<16x128xbf16>,
    %c0_523 = arith.constant 0 : index
    %c119_524 = arith.constant 119 : index
    %428 = vector.load %arg18[%c0_523, %c119_524] : memref<16x384xbf16, #tpu.memory_space<vmem>>, vector<16x128xbf16>
    %c32_525 = arith.constant 32 : index
    %c0_526 = arith.constant 0 : index
    %429 = vector.load %arg20[%c32_525, %c0_526] : memref<432x128xbf16, #tpu.memory_space<vmem>>, vector<16x128xbf16>
    tpu.vector_store %arg20[%c32_525, %c0_526], %428 {strides = array<i32>} : memref<432x128xbf16, #tpu.memory_space<vmem>>, vector<16x128xbf16>,
    %c0_527 = arith.constant 0 : index
    %c127_528 = arith.constant 127 : index
    %430 = vector.load %arg18[%c0_527, %c127_528] : memref<16x384xbf16, #tpu.memory_space<vmem>>, vector<16x128xbf16>
    %c48_529 = arith.constant 48 : index
    %c0_530 = arith.constant 0 : index
    %431 = vector.load %arg20[%c48_529, %c0_530] : memref<432x128xbf16, #tpu.memory_space<vmem>>, vector<16x128xbf16>
    tpu.vector_store %arg20[%c48_529, %c0_530], %430 {strides = array<i32>} : memref<432x128xbf16, #tpu.memory_space<vmem>>, vector<16x128xbf16>,
    %c0_531 = arith.constant 0 : index
    %c128_532 = arith.constant 128 : index
    %432 = vector.load %arg18[%c0_531, %c128_532] : memref<16x384xbf16, #tpu.memory_space<vmem>>, vector<16x128xbf16>
    %c64_533 = arith.constant 64 : index
    %c0_534 = arith.constant 0 : index
    %433 = vector.load %arg20[%c64_533, %c0_534] : memref<432x128xbf16, #tpu.memory_space<vmem>>, vector<16x128xbf16>
    tpu.vector_store %arg20[%c64_533, %c0_534], %432 {strides = array<i32>} : memref<432x128xbf16, #tpu.memory_space<vmem>>, vector<16x128xbf16>,
    %c0_535 = arith.constant 0 : index
    %c129_536 = arith.constant 129 : index
    %434 = vector.load %arg18[%c0_535, %c129_536] : memref<16x384xbf16, #tpu.memory_space<vmem>>, vector<16x128xbf16>
    %c80_537 = arith.constant 80 : index
    %c0_538 = arith.constant 0 : index
    %435 = vector.load %arg20[%c80_537, %c0_538] : memref<432x128xbf16, #tpu.memory_space<vmem>>, vector<16x128xbf16>
    tpu.vector_store %arg20[%c80_537, %c0_538], %434 {strides = array<i32>} : memref<432x128xbf16, #tpu.memory_space<vmem>>, vector<16x128xbf16>,
    %c0_539 = arith.constant 0 : index
    %c137_540 = arith.constant 137 : index
    %436 = vector.load %arg18[%c0_539, %c137_540] : memref<16x384xbf16, #tpu.memory_space<vmem>>, vector<16x128xbf16>
    %c96_541 = arith.constant 96 : index
    %c0_542 = arith.constant 0 : index
    %437 = vector.load %arg20[%c96_541, %c0_542] : memref<432x128xbf16, #tpu.memory_space<vmem>>, vector<16x128xbf16>
    tpu.vector_store %arg20[%c96_541, %c0_542], %436 {strides = array<i32>} : memref<432x128xbf16, #tpu.memory_space<vmem>>, vector<16x128xbf16>,
    %c0_543 = arith.constant 0 : index
    %c138_544 = arith.constant 138 : index
    %438 = vector.load %arg18[%c0_543, %c138_544] : memref<16x384xbf16, #tpu.memory_space<vmem>>, vector<16x128xbf16>
    %c112_545 = arith.constant 112 : index
    %c0_546 = arith.constant 0 : index
    %439 = vector.load %arg20[%c112_545, %c0_546] : memref<432x128xbf16, #tpu.memory_space<vmem>>, vector<16x128xbf16>
    tpu.vector_store %arg20[%c112_545, %c0_546], %438 {strides = array<i32>} : memref<432x128xbf16, #tpu.memory_space<vmem>>, vector<16x128xbf16>,
    %c0_547 = arith.constant 0 : index
    %c139_548 = arith.constant 139 : index
    %440 = vector.load %arg18[%c0_547, %c139_548] : memref<16x384xbf16, #tpu.memory_space<vmem>>, vector<16x128xbf16>
    %c128_549 = arith.constant 128 : index
    %c0_550 = arith.constant 0 : index
    %441 = vector.load %arg20[%c128_549, %c0_550] : memref<432x128xbf16, #tpu.memory_space<vmem>>, vector<16x128xbf16>
    tpu.vector_store %arg20[%c128_549, %c0_550], %440 {strides = array<i32>} : memref<432x128xbf16, #tpu.memory_space<vmem>>, vector<16x128xbf16>,
    %c0_551 = arith.constant 0 : index
    %c0_552 = arith.constant 0 : index
    %442 = vector.load %arg20[%c0_551, %c0_552] : memref<432x128xbf16, #tpu.memory_space<vmem>>, vector<144x128xbf16>
    %cst_553 = arith.constant dense<0.000000e+00> : vector<16x128xf32>
    %443 = tpu.matmul %421, %442, %cst_553 {dimension_numbers = #tpu.dot_dimension_numbers<[1], [0], [0], [1], [0, 0, 1, 1], [], []>} : vector<16x144xbf16>, vector<144x128xbf16>, vector<16x128xf32> -> vector<16x128xf32>
    %444 = vector.broadcast %423 : vector<16x1xf32> to vector<16x128xf32>
    %445 = arith.addf %443, %444 : vector<16x128xf32>
    %cst_554 = arith.constant 0.000000e+00 : f32
    %446 = vector.broadcast %cst_554 : f32 to vector<16x128xf32>
    %447 = arith.cmpf oge, %445, %446 : vector<16x128xf32>
    %cst_555 = arith.constant 2.500000e-01 : f32
    %448 = vector.broadcast %cst_555 : f32 to vector<16x128xf32>
    %449 = arith.mulf %448, %445 : vector<16x128xf32>
    %450 = arith.select %447, %445, %449 : vector<16x128xi1>, vector<16x128xf32>
    %cst_556 = arith.constant 0.000000e+00 : f32
    %451 = vector.shape_cast %21 : vector<1x128xi1> to vector<1x128xi1>
    %452 = vector.broadcast %451 : vector<1x128xi1> to vector<16x128xi1>
    %453 = vector.broadcast %cst_556 : f32 to vector<16x128xf32>
    %454 = arith.select %452, %450, %453 : vector<16x128xi1>, vector<16x128xf32>
    %455 = arith.truncf %454 : vector<16x128xf32> to vector<16x128xbf16>
    %c0_557 = arith.constant 0 : index
    %c128_558 = arith.constant 128 : index
    %456 = vector.load %arg19[%c0_557, %c128_558] : memref<16x384xbf16, #tpu.memory_space<vmem>>, vector<16x128xbf16>
    tpu.vector_store %arg19[%c0_557, %c128_558], %455 {strides = array<i32>} : memref<16x384xbf16, #tpu.memory_space<vmem>>, vector<16x128xbf16>,
    %c9 = arith.constant 9 : index
    %c0_559 = arith.constant 0 : index
    %c0_560 = arith.constant 0 : index
    %457 = vector.load %arg8[%c9, %c0_559, %c0_560] : memref<10x16x144xbf16, #tpu.memory_space<vmem>>, vector<1x16x144xbf16>
    %458 = vector.shape_cast %457 : vector<1x16x144xbf16> to vector<16x144xbf16>
    %c9_561 = arith.constant 9 : index
    %c0_562 = arith.constant 0 : index
    %c0_563 = arith.constant 0 : index
    %459 = vector.load %arg9[%c9_561, %c0_562, %c0_563] : memref<10x16x1xf32, #tpu.memory_space<vmem>>, vector<1x16x1xf32>
    %460 = vector.shape_cast %459 : vector<1x16x1xf32> to vector<16x1xf32>
    %c0_564 = arith.constant 0 : index
    %c117_565 = arith.constant 117 : index
    %461 = vector.load %arg19[%c0_564, %c117_565] : memref<16x384xbf16, #tpu.memory_space<vmem>>, vector<16x128xbf16>
    %c0_566 = arith.constant 0 : index
    %c0_567 = arith.constant 0 : index
    %462 = vector.load %arg20[%c0_566, %c0_567] : memref<432x128xbf16, #tpu.memory_space<vmem>>, vector<16x128xbf16>
    tpu.vector_store %arg20[%c0_566, %c0_567], %461 {strides = array<i32>} : memref<432x128xbf16, #tpu.memory_space<vmem>>, vector<16x128xbf16>,
    %c0_568 = arith.constant 0 : index
    %c118_569 = arith.constant 118 : index
    %463 = vector.load %arg19[%c0_568, %c118_569] : memref<16x384xbf16, #tpu.memory_space<vmem>>, vector<16x128xbf16>
    %c16_570 = arith.constant 16 : index
    %c0_571 = arith.constant 0 : index
    %464 = vector.load %arg20[%c16_570, %c0_571] : memref<432x128xbf16, #tpu.memory_space<vmem>>, vector<16x128xbf16>
    tpu.vector_store %arg20[%c16_570, %c0_571], %463 {strides = array<i32>} : memref<432x128xbf16, #tpu.memory_space<vmem>>, vector<16x128xbf16>,
    %c0_572 = arith.constant 0 : index
    %c119_573 = arith.constant 119 : index
    %465 = vector.load %arg19[%c0_572, %c119_573] : memref<16x384xbf16, #tpu.memory_space<vmem>>, vector<16x128xbf16>
    %c32_574 = arith.constant 32 : index
    %c0_575 = arith.constant 0 : index
    %466 = vector.load %arg20[%c32_574, %c0_575] : memref<432x128xbf16, #tpu.memory_space<vmem>>, vector<16x128xbf16>
    tpu.vector_store %arg20[%c32_574, %c0_575], %465 {strides = array<i32>} : memref<432x128xbf16, #tpu.memory_space<vmem>>, vector<16x128xbf16>,
    %c0_576 = arith.constant 0 : index
    %c127_577 = arith.constant 127 : index
    %467 = vector.load %arg19[%c0_576, %c127_577] : memref<16x384xbf16, #tpu.memory_space<vmem>>, vector<16x128xbf16>
    %c48_578 = arith.constant 48 : index
    %c0_579 = arith.constant 0 : index
    %468 = vector.load %arg20[%c48_578, %c0_579] : memref<432x128xbf16, #tpu.memory_space<vmem>>, vector<16x128xbf16>
    tpu.vector_store %arg20[%c48_578, %c0_579], %467 {strides = array<i32>} : memref<432x128xbf16, #tpu.memory_space<vmem>>, vector<16x128xbf16>,
    %c0_580 = arith.constant 0 : index
    %c128_581 = arith.constant 128 : index
    %469 = vector.load %arg19[%c0_580, %c128_581] : memref<16x384xbf16, #tpu.memory_space<vmem>>, vector<16x128xbf16>
    %c64_582 = arith.constant 64 : index
    %c0_583 = arith.constant 0 : index
    %470 = vector.load %arg20[%c64_582, %c0_583] : memref<432x128xbf16, #tpu.memory_space<vmem>>, vector<16x128xbf16>
    tpu.vector_store %arg20[%c64_582, %c0_583], %469 {strides = array<i32>} : memref<432x128xbf16, #tpu.memory_space<vmem>>, vector<16x128xbf16>,
    %c0_584 = arith.constant 0 : index
    %c129_585 = arith.constant 129 : index
    %471 = vector.load %arg19[%c0_584, %c129_585] : memref<16x384xbf16, #tpu.memory_space<vmem>>, vector<16x128xbf16>
    %c80_586 = arith.constant 80 : index
    %c0_587 = arith.constant 0 : index
    %472 = vector.load %arg20[%c80_586, %c0_587] : memref<432x128xbf16, #tpu.memory_space<vmem>>, vector<16x128xbf16>
    tpu.vector_store %arg20[%c80_586, %c0_587], %471 {strides = array<i32>} : memref<432x128xbf16, #tpu.memory_space<vmem>>, vector<16x128xbf16>,
    %c0_588 = arith.constant 0 : index
    %c137_589 = arith.constant 137 : index
    %473 = vector.load %arg19[%c0_588, %c137_589] : memref<16x384xbf16, #tpu.memory_space<vmem>>, vector<16x128xbf16>
    %c96_590 = arith.constant 96 : index
    %c0_591 = arith.constant 0 : index
    %474 = vector.load %arg20[%c96_590, %c0_591] : memref<432x128xbf16, #tpu.memory_space<vmem>>, vector<16x128xbf16>
    tpu.vector_store %arg20[%c96_590, %c0_591], %473 {strides = array<i32>} : memref<432x128xbf16, #tpu.memory_space<vmem>>, vector<16x128xbf16>,
    %c0_592 = arith.constant 0 : index
    %c138_593 = arith.constant 138 : index
    %475 = vector.load %arg19[%c0_592, %c138_593] : memref<16x384xbf16, #tpu.memory_space<vmem>>, vector<16x128xbf16>
    %c112_594 = arith.constant 112 : index
    %c0_595 = arith.constant 0 : index
    %476 = vector.load %arg20[%c112_594, %c0_595] : memref<432x128xbf16, #tpu.memory_space<vmem>>, vector<16x128xbf16>
    tpu.vector_store %arg20[%c112_594, %c0_595], %475 {strides = array<i32>} : memref<432x128xbf16, #tpu.memory_space<vmem>>, vector<16x128xbf16>,
    %c0_596 = arith.constant 0 : index
    %c139_597 = arith.constant 139 : index
    %477 = vector.load %arg19[%c0_596, %c139_597] : memref<16x384xbf16, #tpu.memory_space<vmem>>, vector<16x128xbf16>
    %c128_598 = arith.constant 128 : index
    %c0_599 = arith.constant 0 : index
    %478 = vector.load %arg20[%c128_598, %c0_599] : memref<432x128xbf16, #tpu.memory_space<vmem>>, vector<16x128xbf16>
    tpu.vector_store %arg20[%c128_598, %c0_599], %477 {strides = array<i32>} : memref<432x128xbf16, #tpu.memory_space<vmem>>, vector<16x128xbf16>,
    %c0_600 = arith.constant 0 : index
    %c0_601 = arith.constant 0 : index
    %479 = vector.load %arg20[%c0_600, %c0_601] : memref<432x128xbf16, #tpu.memory_space<vmem>>, vector<144x128xbf16>
    %cst_602 = arith.constant dense<0.000000e+00> : vector<16x128xf32>
    %480 = tpu.matmul %458, %479, %cst_602 {dimension_numbers = #tpu.dot_dimension_numbers<[1], [0], [0], [1], [0, 0, 1, 1], [], []>} : vector<16x144xbf16>, vector<144x128xbf16>, vector<16x128xf32> -> vector<16x128xf32>
    %481 = vector.broadcast %460 : vector<16x1xf32> to vector<16x128xf32>
    %482 = arith.addf %480, %481 : vector<16x128xf32>
    %cst_603 = arith.constant 0.000000e+00 : f32
    %483 = vector.shape_cast %21 : vector<1x128xi1> to vector<1x128xi1>
    %484 = vector.broadcast %483 : vector<1x128xi1> to vector<16x128xi1>
    %485 = vector.broadcast %cst_603 : f32 to vector<16x128xf32>
    %486 = arith.select %484, %482, %485 : vector<16x128xi1>, vector<16x128xf32>
    %c0_604 = arith.constant 0 : index
    %c128_605 = arith.constant 128 : index
    %487 = vector.load %arg18[%c0_604, %c128_605] : memref<16x384xbf16, #tpu.memory_space<vmem>>, vector<16x128xbf16>
    %488 = arith.extf %487 : vector<16x128xbf16> to vector<16x128xf32>
    %489 = arith.addf %486, %488 : vector<16x128xf32>
    %490 = arith.truncf %489 : vector<16x128xf32> to vector<16x128xbf16>
    %c0_606 = arith.constant 0 : index
    %c128_607 = arith.constant 128 : index
    %491 = vector.load %arg18[%c0_606, %c128_607] : memref<16x384xbf16, #tpu.memory_space<vmem>>, vector<16x128xbf16>
    tpu.vector_store %arg18[%c0_606, %c128_607], %490 {strides = array<i32>} : memref<16x384xbf16, #tpu.memory_space<vmem>>, vector<16x128xbf16>,
    %c0_608 = arith.constant 0 : index
    %c0_609 = arith.constant 0 : index
    %492 = vector.load %arg10[%c0_608, %c0_609] : memref<16x144xbf16, #tpu.memory_space<vmem>>, vector<16x144xbf16>
    %c0_610 = arith.constant 0 : index
    %c0_611 = arith.constant 0 : index
    %493 = vector.load %arg11[%c0_610, %c0_611] : memref<16x1xf32, #tpu.memory_space<vmem>>, vector<16x1xf32>
    %c0_612 = arith.constant 0 : index
    %c117_613 = arith.constant 117 : index
    %494 = vector.load %arg18[%c0_612, %c117_613] : memref<16x384xbf16, #tpu.memory_space<vmem>>, vector<16x128xbf16>
    %c0_614 = arith.constant 0 : index
    %c0_615 = arith.constant 0 : index
    %495 = vector.load %arg20[%c0_614, %c0_615] : memref<432x128xbf16, #tpu.memory_space<vmem>>, vector<16x128xbf16>
    tpu.vector_store %arg20[%c0_614, %c0_615], %494 {strides = array<i32>} : memref<432x128xbf16, #tpu.memory_space<vmem>>, vector<16x128xbf16>,
    %c0_616 = arith.constant 0 : index
    %c118_617 = arith.constant 118 : index
    %496 = vector.load %arg18[%c0_616, %c118_617] : memref<16x384xbf16, #tpu.memory_space<vmem>>, vector<16x128xbf16>
    %c16_618 = arith.constant 16 : index
    %c0_619 = arith.constant 0 : index
    %497 = vector.load %arg20[%c16_618, %c0_619] : memref<432x128xbf16, #tpu.memory_space<vmem>>, vector<16x128xbf16>
    tpu.vector_store %arg20[%c16_618, %c0_619], %496 {strides = array<i32>} : memref<432x128xbf16, #tpu.memory_space<vmem>>, vector<16x128xbf16>,
    %c0_620 = arith.constant 0 : index
    %c119_621 = arith.constant 119 : index
    %498 = vector.load %arg18[%c0_620, %c119_621] : memref<16x384xbf16, #tpu.memory_space<vmem>>, vector<16x128xbf16>
    %c32_622 = arith.constant 32 : index
    %c0_623 = arith.constant 0 : index
    %499 = vector.load %arg20[%c32_622, %c0_623] : memref<432x128xbf16, #tpu.memory_space<vmem>>, vector<16x128xbf16>
    tpu.vector_store %arg20[%c32_622, %c0_623], %498 {strides = array<i32>} : memref<432x128xbf16, #tpu.memory_space<vmem>>, vector<16x128xbf16>,
    %c0_624 = arith.constant 0 : index
    %c127_625 = arith.constant 127 : index
    %500 = vector.load %arg18[%c0_624, %c127_625] : memref<16x384xbf16, #tpu.memory_space<vmem>>, vector<16x128xbf16>
    %c48_626 = arith.constant 48 : index
    %c0_627 = arith.constant 0 : index
    %501 = vector.load %arg20[%c48_626, %c0_627] : memref<432x128xbf16, #tpu.memory_space<vmem>>, vector<16x128xbf16>
    tpu.vector_store %arg20[%c48_626, %c0_627], %500 {strides = array<i32>} : memref<432x128xbf16, #tpu.memory_space<vmem>>, vector<16x128xbf16>,
    %c0_628 = arith.constant 0 : index
    %c128_629 = arith.constant 128 : index
    %502 = vector.load %arg18[%c0_628, %c128_629] : memref<16x384xbf16, #tpu.memory_space<vmem>>, vector<16x128xbf16>
    %c64_630 = arith.constant 64 : index
    %c0_631 = arith.constant 0 : index
    %503 = vector.load %arg20[%c64_630, %c0_631] : memref<432x128xbf16, #tpu.memory_space<vmem>>, vector<16x128xbf16>
    tpu.vector_store %arg20[%c64_630, %c0_631], %502 {strides = array<i32>} : memref<432x128xbf16, #tpu.memory_space<vmem>>, vector<16x128xbf16>,
    %c0_632 = arith.constant 0 : index
    %c129_633 = arith.constant 129 : index
    %504 = vector.load %arg18[%c0_632, %c129_633] : memref<16x384xbf16, #tpu.memory_space<vmem>>, vector<16x128xbf16>
    %c80_634 = arith.constant 80 : index
    %c0_635 = arith.constant 0 : index
    %505 = vector.load %arg20[%c80_634, %c0_635] : memref<432x128xbf16, #tpu.memory_space<vmem>>, vector<16x128xbf16>
    tpu.vector_store %arg20[%c80_634, %c0_635], %504 {strides = array<i32>} : memref<432x128xbf16, #tpu.memory_space<vmem>>, vector<16x128xbf16>,
    %c0_636 = arith.constant 0 : index
    %c137_637 = arith.constant 137 : index
    %506 = vector.load %arg18[%c0_636, %c137_637] : memref<16x384xbf16, #tpu.memory_space<vmem>>, vector<16x128xbf16>
    %c96_638 = arith.constant 96 : index
    %c0_639 = arith.constant 0 : index
    %507 = vector.load %arg20[%c96_638, %c0_639] : memref<432x128xbf16, #tpu.memory_space<vmem>>, vector<16x128xbf16>
    tpu.vector_store %arg20[%c96_638, %c0_639], %506 {strides = array<i32>} : memref<432x128xbf16, #tpu.memory_space<vmem>>, vector<16x128xbf16>,
    %c0_640 = arith.constant 0 : index
    %c138_641 = arith.constant 138 : index
    %508 = vector.load %arg18[%c0_640, %c138_641] : memref<16x384xbf16, #tpu.memory_space<vmem>>, vector<16x128xbf16>
    %c112_642 = arith.constant 112 : index
    %c0_643 = arith.constant 0 : index
    %509 = vector.load %arg20[%c112_642, %c0_643] : memref<432x128xbf16, #tpu.memory_space<vmem>>, vector<16x128xbf16>
    tpu.vector_store %arg20[%c112_642, %c0_643], %508 {strides = array<i32>} : memref<432x128xbf16, #tpu.memory_space<vmem>>, vector<16x128xbf16>,
    %c0_644 = arith.constant 0 : index
    %c139_645 = arith.constant 139 : index
    %510 = vector.load %arg18[%c0_644, %c139_645] : memref<16x384xbf16, #tpu.memory_space<vmem>>, vector<16x128xbf16>
    %c128_646 = arith.constant 128 : index
    %c0_647 = arith.constant 0 : index
    %511 = vector.load %arg20[%c128_646, %c0_647] : memref<432x128xbf16, #tpu.memory_space<vmem>>, vector<16x128xbf16>
    tpu.vector_store %arg20[%c128_646, %c0_647], %510 {strides = array<i32>} : memref<432x128xbf16, #tpu.memory_space<vmem>>, vector<16x128xbf16>,
    %c0_648 = arith.constant 0 : index
    %c0_649 = arith.constant 0 : index
    %512 = vector.load %arg20[%c0_648, %c0_649] : memref<432x128xbf16, #tpu.memory_space<vmem>>, vector<144x128xbf16>
    %cst_650 = arith.constant dense<0.000000e+00> : vector<16x128xf32>
    %513 = tpu.matmul %492, %512, %cst_650 {dimension_numbers = #tpu.dot_dimension_numbers<[1], [0], [0], [1], [0, 0, 1, 1], [], []>} : vector<16x144xbf16>, vector<144x128xbf16>, vector<16x128xf32> -> vector<16x128xf32>
    %514 = vector.broadcast %493 : vector<16x1xf32> to vector<16x128xf32>
    %515 = arith.addf %513, %514 : vector<16x128xf32>
    %cst_651 = arith.constant 0.000000e+00 : f32
    %516 = vector.broadcast %cst_651 : f32 to vector<16x128xf32>
    %517 = arith.cmpf oge, %515, %516 : vector<16x128xf32>
    %cst_652 = arith.constant 2.500000e-01 : f32
    %518 = vector.broadcast %cst_652 : f32 to vector<16x128xf32>
    %519 = arith.mulf %518, %515 : vector<16x128xf32>
    %520 = arith.select %517, %515, %519 : vector<16x128xi1>, vector<16x128xf32>
    %cst_653 = arith.constant 0.000000e+00 : f32
    %521 = vector.shape_cast %21 : vector<1x128xi1> to vector<1x128xi1>
    %522 = vector.broadcast %521 : vector<1x128xi1> to vector<16x128xi1>
    %523 = vector.broadcast %cst_653 : f32 to vector<16x128xf32>
    %524 = arith.select %522, %520, %523 : vector<16x128xi1>, vector<16x128xf32>
    %c0_654 = arith.constant 0 : index
    %c128_655 = arith.constant 128 : index
    %525 = vector.load %arg17[%c0_654, %c128_655] : memref<16x384xbf16, #tpu.memory_space<vmem>>, vector<16x128xbf16>
    %526 = arith.extf %525 : vector<16x128xbf16> to vector<16x128xf32>
    %527 = arith.addf %524, %526 : vector<16x128xf32>
    %528 = arith.truncf %527 : vector<16x128xf32> to vector<16x128xbf16>
    %c0_656 = arith.constant 0 : index
    %c128_657 = arith.constant 128 : index
    %529 = vector.load %arg19[%c0_656, %c128_657] : memref<16x384xbf16, #tpu.memory_space<vmem>>, vector<16x128xbf16>
    tpu.vector_store %arg19[%c0_656, %c128_657], %528 {strides = array<i32>} : memref<16x384xbf16, #tpu.memory_space<vmem>>, vector<16x128xbf16>,
    %c0_658 = arith.constant 0 : index
    %c0_659 = arith.constant 0 : index
    %530 = vector.load %arg12[%c0_658, %c0_659] : memref<16x144xbf16, #tpu.memory_space<vmem>>, vector<16x144xbf16>
    %c0_660 = arith.constant 0 : index
    %c0_661 = arith.constant 0 : index
    %531 = vector.load %arg13[%c0_660, %c0_661] : memref<16x1xf32, #tpu.memory_space<vmem>>, vector<16x1xf32>
    %c0_662 = arith.constant 0 : index
    %c117_663 = arith.constant 117 : index
    %532 = vector.load %arg19[%c0_662, %c117_663] : memref<16x384xbf16, #tpu.memory_space<vmem>>, vector<16x128xbf16>
    %c0_664 = arith.constant 0 : index
    %c0_665 = arith.constant 0 : index
    %533 = vector.load %arg20[%c0_664, %c0_665] : memref<432x128xbf16, #tpu.memory_space<vmem>>, vector<16x128xbf16>
    tpu.vector_store %arg20[%c0_664, %c0_665], %532 {strides = array<i32>} : memref<432x128xbf16, #tpu.memory_space<vmem>>, vector<16x128xbf16>,
    %c0_666 = arith.constant 0 : index
    %c118_667 = arith.constant 118 : index
    %534 = vector.load %arg19[%c0_666, %c118_667] : memref<16x384xbf16, #tpu.memory_space<vmem>>, vector<16x128xbf16>
    %c16_668 = arith.constant 16 : index
    %c0_669 = arith.constant 0 : index
    %535 = vector.load %arg20[%c16_668, %c0_669] : memref<432x128xbf16, #tpu.memory_space<vmem>>, vector<16x128xbf16>
    tpu.vector_store %arg20[%c16_668, %c0_669], %534 {strides = array<i32>} : memref<432x128xbf16, #tpu.memory_space<vmem>>, vector<16x128xbf16>,
    %c0_670 = arith.constant 0 : index
    %c119_671 = arith.constant 119 : index
    %536 = vector.load %arg19[%c0_670, %c119_671] : memref<16x384xbf16, #tpu.memory_space<vmem>>, vector<16x128xbf16>
    %c32_672 = arith.constant 32 : index
    %c0_673 = arith.constant 0 : index
    %537 = vector.load %arg20[%c32_672, %c0_673] : memref<432x128xbf16, #tpu.memory_space<vmem>>, vector<16x128xbf16>
    tpu.vector_store %arg20[%c32_672, %c0_673], %536 {strides = array<i32>} : memref<432x128xbf16, #tpu.memory_space<vmem>>, vector<16x128xbf16>,
    %c0_674 = arith.constant 0 : index
    %c127_675 = arith.constant 127 : index
    %538 = vector.load %arg19[%c0_674, %c127_675] : memref<16x384xbf16, #tpu.memory_space<vmem>>, vector<16x128xbf16>
    %c48_676 = arith.constant 48 : index
    %c0_677 = arith.constant 0 : index
    %539 = vector.load %arg20[%c48_676, %c0_677] : memref<432x128xbf16, #tpu.memory_space<vmem>>, vector<16x128xbf16>
    tpu.vector_store %arg20[%c48_676, %c0_677], %538 {strides = array<i32>} : memref<432x128xbf16, #tpu.memory_space<vmem>>, vector<16x128xbf16>,
    %c0_678 = arith.constant 0 : index
    %c128_679 = arith.constant 128 : index
    %540 = vector.load %arg19[%c0_678, %c128_679] : memref<16x384xbf16, #tpu.memory_space<vmem>>, vector<16x128xbf16>
    %c64_680 = arith.constant 64 : index
    %c0_681 = arith.constant 0 : index
    %541 = vector.load %arg20[%c64_680, %c0_681] : memref<432x128xbf16, #tpu.memory_space<vmem>>, vector<16x128xbf16>
    tpu.vector_store %arg20[%c64_680, %c0_681], %540 {strides = array<i32>} : memref<432x128xbf16, #tpu.memory_space<vmem>>, vector<16x128xbf16>,
    %c0_682 = arith.constant 0 : index
    %c129_683 = arith.constant 129 : index
    %542 = vector.load %arg19[%c0_682, %c129_683] : memref<16x384xbf16, #tpu.memory_space<vmem>>, vector<16x128xbf16>
    %c80_684 = arith.constant 80 : index
    %c0_685 = arith.constant 0 : index
    %543 = vector.load %arg20[%c80_684, %c0_685] : memref<432x128xbf16, #tpu.memory_space<vmem>>, vector<16x128xbf16>
    tpu.vector_store %arg20[%c80_684, %c0_685], %542 {strides = array<i32>} : memref<432x128xbf16, #tpu.memory_space<vmem>>, vector<16x128xbf16>,
    %c0_686 = arith.constant 0 : index
    %c137_687 = arith.constant 137 : index
    %544 = vector.load %arg19[%c0_686, %c137_687] : memref<16x384xbf16, #tpu.memory_space<vmem>>, vector<16x128xbf16>
    %c96_688 = arith.constant 96 : index
    %c0_689 = arith.constant 0 : index
    %545 = vector.load %arg20[%c96_688, %c0_689] : memref<432x128xbf16, #tpu.memory_space<vmem>>, vector<16x128xbf16>
    tpu.vector_store %arg20[%c96_688, %c0_689], %544 {strides = array<i32>} : memref<432x128xbf16, #tpu.memory_space<vmem>>, vector<16x128xbf16>,
    %c0_690 = arith.constant 0 : index
    %c138_691 = arith.constant 138 : index
    %546 = vector.load %arg19[%c0_690, %c138_691] : memref<16x384xbf16, #tpu.memory_space<vmem>>, vector<16x128xbf16>
    %c112_692 = arith.constant 112 : index
    %c0_693 = arith.constant 0 : index
    %547 = vector.load %arg20[%c112_692, %c0_693] : memref<432x128xbf16, #tpu.memory_space<vmem>>, vector<16x128xbf16>
    tpu.vector_store %arg20[%c112_692, %c0_693], %546 {strides = array<i32>} : memref<432x128xbf16, #tpu.memory_space<vmem>>, vector<16x128xbf16>,
    %c0_694 = arith.constant 0 : index
    %c139_695 = arith.constant 139 : index
    %548 = vector.load %arg19[%c0_694, %c139_695] : memref<16x384xbf16, #tpu.memory_space<vmem>>, vector<16x128xbf16>
    %c128_696 = arith.constant 128 : index
    %c0_697 = arith.constant 0 : index
    %549 = vector.load %arg20[%c128_696, %c0_697] : memref<432x128xbf16, #tpu.memory_space<vmem>>, vector<16x128xbf16>
    tpu.vector_store %arg20[%c128_696, %c0_697], %548 {strides = array<i32>} : memref<432x128xbf16, #tpu.memory_space<vmem>>, vector<16x128xbf16>,
    %c0_698 = arith.constant 0 : index
    %c0_699 = arith.constant 0 : index
    %550 = vector.load %arg20[%c0_698, %c0_699] : memref<432x128xbf16, #tpu.memory_space<vmem>>, vector<144x128xbf16>
    %cst_700 = arith.constant dense<0.000000e+00> : vector<16x128xf32>
    %551 = tpu.matmul %530, %550, %cst_700 {dimension_numbers = #tpu.dot_dimension_numbers<[1], [0], [0], [1], [0, 0, 1, 1], [], []>} : vector<16x144xbf16>, vector<144x128xbf16>, vector<16x128xf32> -> vector<16x128xf32>
    %552 = vector.broadcast %531 : vector<16x1xf32> to vector<16x128xf32>
    %553 = arith.addf %551, %552 : vector<16x128xf32>
    %cst_701 = arith.constant 0.000000e+00 : f32
    %554 = vector.broadcast %cst_701 : f32 to vector<16x128xf32>
    %555 = arith.cmpf oge, %553, %554 : vector<16x128xf32>
    %cst_702 = arith.constant 2.500000e-01 : f32
    %556 = vector.broadcast %cst_702 : f32 to vector<16x128xf32>
    %557 = arith.mulf %556, %553 : vector<16x128xf32>
    %558 = arith.select %555, %553, %557 : vector<16x128xi1>, vector<16x128xf32>
    %cst_703 = arith.constant 0.000000e+00 : f32
    %559 = vector.shape_cast %21 : vector<1x128xi1> to vector<1x128xi1>
    %560 = vector.broadcast %559 : vector<1x128xi1> to vector<16x128xi1>
    %561 = vector.broadcast %cst_703 : f32 to vector<16x128xf32>
    %562 = arith.select %560, %558, %561 : vector<16x128xi1>, vector<16x128xf32>
    %563 = arith.truncf %562 : vector<16x128xf32> to vector<16x128xbf16>
    %c0_704 = arith.constant 0 : index
    %c0_705 = arith.constant 0 : index
    %c0_706 = arith.constant 0 : index
    %564 = vector.load %arg14[%c0_704, %c0_705, %c0_706] : memref<1x16x128xbf16, #tpu.memory_space<vmem>>, vector<1x16x128xbf16>
    %565 = vector.shape_cast %564 : vector<1x16x128xbf16> to vector<16x128xbf16>
    %566 = vector.shape_cast %563 : vector<16x128xbf16> to vector<1x16x128xbf16>
    tpu.vector_store %arg14[%c0_704, %c0_705, %c0_706], %566 {strides = array<i32>} : memref<1x16x128xbf16, #tpu.memory_space<vmem>>, vector<1x16x128xbf16>,
    return
  }
  func.func @transform_0(%arg0: i32) -> (i32, i32, i32) {
    %c0_i32 = arith.constant 0 : i32
    %c0_i32_0 = arith.constant 0 : i32
    %c0_i32_1 = arith.constant 0 : i32
    return %arg0, %c0_i32, %c0_i32_0 : i32, i32, i32
  }
  func.func @transform_1(%arg0: i32) -> (i32, i32) {
    %c0_i32 = arith.constant 0 : i32
    %c0_i32_0 = arith.constant 0 : i32
    %c0_i32_1 = arith.constant 0 : i32
    return %c0_i32, %c0_i32_0 : i32, i32
  }
  func.func @transform_2(%arg0: i32) -> (i32, i32) {
    %c0_i32 = arith.constant 0 : i32
    %c0_i32_0 = arith.constant 0 : i32
    %c0_i32_1 = arith.constant 0 : i32
    return %c0_i32, %c0_i32_0 : i32, i32
  }
  func.func @transform_3(%arg0: i32) -> (i32, i32) {
    %c0_i32 = arith.constant 0 : i32
    %c0_i32_0 = arith.constant 0 : i32
    %c0_i32_1 = arith.constant 0 : i32
    return %c0_i32, %c0_i32_0 : i32, i32
  }
  func.func @transform_4(%arg0: i32) -> (i32, i32) {
    %c0_i32 = arith.constant 0 : i32
    %c0_i32_0 = arith.constant 0 : i32
    %c0_i32_1 = arith.constant 0 : i32
    return %c0_i32, %c0_i32_0 : i32, i32
  }
  func.func @transform_5(%arg0: i32) -> (i32, i32) {
    %c0_i32 = arith.constant 0 : i32
    %c0_i32_0 = arith.constant 0 : i32
    %c0_i32_1 = arith.constant 0 : i32
    return %c0_i32, %c0_i32_0 : i32, i32
  }
  func.func @transform_6(%arg0: i32) -> (i32, i32) {
    %c0_i32 = arith.constant 0 : i32
    %c0_i32_0 = arith.constant 0 : i32
    %c0_i32_1 = arith.constant 0 : i32
    return %c0_i32, %c0_i32_0 : i32, i32
  }
  func.func @transform_7(%arg0: i32) -> (i32, i32, i32) {
    %c0_i32 = arith.constant 0 : i32
    %c0_i32_0 = arith.constant 0 : i32
    %c0_i32_1 = arith.constant 0 : i32
    %c0_i32_2 = arith.constant 0 : i32
    return %c0_i32, %c0_i32_0, %c0_i32_1 : i32, i32, i32
  }
  func.func @transform_8(%arg0: i32) -> (i32, i32, i32) {
    %c0_i32 = arith.constant 0 : i32
    %c0_i32_0 = arith.constant 0 : i32
    %c0_i32_1 = arith.constant 0 : i32
    %c0_i32_2 = arith.constant 0 : i32
    return %c0_i32, %c0_i32_0, %c0_i32_1 : i32, i32, i32
  }
  func.func @transform_9(%arg0: i32) -> (i32, i32) {
    %c0_i32 = arith.constant 0 : i32
    %c0_i32_0 = arith.constant 0 : i32
    %c0_i32_1 = arith.constant 0 : i32
    return %c0_i32, %c0_i32_0 : i32, i32
  }
  func.func @transform_10(%arg0: i32) -> (i32, i32) {
    %c0_i32 = arith.constant 0 : i32
    %c0_i32_0 = arith.constant 0 : i32
    %c0_i32_1 = arith.constant 0 : i32
    return %c0_i32, %c0_i32_0 : i32, i32
  }
  func.func @transform_11(%arg0: i32) -> (i32, i32) {
    %c0_i32 = arith.constant 0 : i32
    %c0_i32_0 = arith.constant 0 : i32
    %c0_i32_1 = arith.constant 0 : i32
    return %c0_i32, %c0_i32_0 : i32, i32
  }
  func.func @transform_12(%arg0: i32) -> (i32, i32) {
    %c0_i32 = arith.constant 0 : i32
    %c0_i32_0 = arith.constant 0 : i32
    %c0_i32_1 = arith.constant 0 : i32
    return %c0_i32, %c0_i32_0 : i32, i32
  }
  func.func @transform_13(%arg0: i32) -> (i32, i32, i32) {
    %c0_i32 = arith.constant 0 : i32
    %c0_i32_0 = arith.constant 0 : i32
    %c0_i32_1 = arith.constant 0 : i32
    return %arg0, %c0_i32, %c0_i32_0 : i32, i32, i32
  }
}

module attributes {stable_mosaic.version = 11 : i64} {
  func.func @_out_conv_kernel(%arg0: i32, %arg1: memref<1x16x640xbf16, #tpu.memory_space<vmem>>, %arg2: memref<16x144xbf16, #tpu.memory_space<vmem>>, %arg3: memref<1x16x384xbf16, #tpu.memory_space<vmem>>, %arg4: memref<144x384xbf16, #tpu.memory_space<vmem>>) attributes {dimension_semantics = [#tpu.dimension_semantics<parallel>], iteration_bounds = array<i64: 2>, scalar_prefetch = 0 : i64, scratch_operands = 1 : i64, tpu.core_type = #tpu.core_type<tc>, window_params = [{transform_indices = @transform_0, window_bounds = array<i64: 1, 16, 640>}, {pipeline_mode = #tpu.pipeline_mode<synchronous>, transform_indices = @transform_1, window_bounds = array<i64: 16, 144>}, {transform_indices = @transform_2, window_bounds = array<i64: 1, 16, 384>}]} {
    %c0 = arith.constant 0 : index
    %c0_0 = arith.constant 0 : index
    %c109 = arith.constant 109 : index
    %0 = vector.load %arg1[%c0, %c0_0, %c109] : memref<1x16x640xbf16, #tpu.memory_space<vmem>>, vector<1x16x384xbf16>
    %1 = vector.shape_cast %0 : vector<1x16x384xbf16> to vector<16x384xbf16>
    %c0_1 = arith.constant 0 : index
    %c0_2 = arith.constant 0 : index
    %2 = vector.load %arg4[%c0_1, %c0_2] : memref<144x384xbf16, #tpu.memory_space<vmem>>, vector<16x384xbf16>
    tpu.vector_store %arg4[%c0_1, %c0_2], %1 {strides = array<i32>} : memref<144x384xbf16, #tpu.memory_space<vmem>>, vector<16x384xbf16>,
    %c0_3 = arith.constant 0 : index
    %c0_4 = arith.constant 0 : index
    %c110 = arith.constant 110 : index
    %3 = vector.load %arg1[%c0_3, %c0_4, %c110] : memref<1x16x640xbf16, #tpu.memory_space<vmem>>, vector<1x16x384xbf16>
    %4 = vector.shape_cast %3 : vector<1x16x384xbf16> to vector<16x384xbf16>
    %c16 = arith.constant 16 : index
    %c0_5 = arith.constant 0 : index
    %5 = vector.load %arg4[%c16, %c0_5] : memref<144x384xbf16, #tpu.memory_space<vmem>>, vector<16x384xbf16>
    tpu.vector_store %arg4[%c16, %c0_5], %4 {strides = array<i32>} : memref<144x384xbf16, #tpu.memory_space<vmem>>, vector<16x384xbf16>,
    %c0_6 = arith.constant 0 : index
    %c0_7 = arith.constant 0 : index
    %c111 = arith.constant 111 : index
    %6 = vector.load %arg1[%c0_6, %c0_7, %c111] : memref<1x16x640xbf16, #tpu.memory_space<vmem>>, vector<1x16x384xbf16>
    %7 = vector.shape_cast %6 : vector<1x16x384xbf16> to vector<16x384xbf16>
    %c32 = arith.constant 32 : index
    %c0_8 = arith.constant 0 : index
    %8 = vector.load %arg4[%c32, %c0_8] : memref<144x384xbf16, #tpu.memory_space<vmem>>, vector<16x384xbf16>
    tpu.vector_store %arg4[%c32, %c0_8], %7 {strides = array<i32>} : memref<144x384xbf16, #tpu.memory_space<vmem>>, vector<16x384xbf16>,
    %c0_9 = arith.constant 0 : index
    %c0_10 = arith.constant 0 : index
    %c127 = arith.constant 127 : index
    %9 = vector.load %arg1[%c0_9, %c0_10, %c127] : memref<1x16x640xbf16, #tpu.memory_space<vmem>>, vector<1x16x384xbf16>
    %10 = vector.shape_cast %9 : vector<1x16x384xbf16> to vector<16x384xbf16>
    %c48 = arith.constant 48 : index
    %c0_11 = arith.constant 0 : index
    %11 = vector.load %arg4[%c48, %c0_11] : memref<144x384xbf16, #tpu.memory_space<vmem>>, vector<16x384xbf16>
    tpu.vector_store %arg4[%c48, %c0_11], %10 {strides = array<i32>} : memref<144x384xbf16, #tpu.memory_space<vmem>>, vector<16x384xbf16>,
    %c0_12 = arith.constant 0 : index
    %c0_13 = arith.constant 0 : index
    %c128 = arith.constant 128 : index
    %12 = vector.load %arg1[%c0_12, %c0_13, %c128] : memref<1x16x640xbf16, #tpu.memory_space<vmem>>, vector<1x16x384xbf16>
    %13 = vector.shape_cast %12 : vector<1x16x384xbf16> to vector<16x384xbf16>
    %c64 = arith.constant 64 : index
    %c0_14 = arith.constant 0 : index
    %14 = vector.load %arg4[%c64, %c0_14] : memref<144x384xbf16, #tpu.memory_space<vmem>>, vector<16x384xbf16>
    tpu.vector_store %arg4[%c64, %c0_14], %13 {strides = array<i32>} : memref<144x384xbf16, #tpu.memory_space<vmem>>, vector<16x384xbf16>,
    %c0_15 = arith.constant 0 : index
    %c0_16 = arith.constant 0 : index
    %c129 = arith.constant 129 : index
    %15 = vector.load %arg1[%c0_15, %c0_16, %c129] : memref<1x16x640xbf16, #tpu.memory_space<vmem>>, vector<1x16x384xbf16>
    %16 = vector.shape_cast %15 : vector<1x16x384xbf16> to vector<16x384xbf16>
    %c80 = arith.constant 80 : index
    %c0_17 = arith.constant 0 : index
    %17 = vector.load %arg4[%c80, %c0_17] : memref<144x384xbf16, #tpu.memory_space<vmem>>, vector<16x384xbf16>
    tpu.vector_store %arg4[%c80, %c0_17], %16 {strides = array<i32>} : memref<144x384xbf16, #tpu.memory_space<vmem>>, vector<16x384xbf16>,
    %c0_18 = arith.constant 0 : index
    %c0_19 = arith.constant 0 : index
    %c145 = arith.constant 145 : index
    %18 = vector.load %arg1[%c0_18, %c0_19, %c145] : memref<1x16x640xbf16, #tpu.memory_space<vmem>>, vector<1x16x384xbf16>
    %19 = vector.shape_cast %18 : vector<1x16x384xbf16> to vector<16x384xbf16>
    %c96 = arith.constant 96 : index
    %c0_20 = arith.constant 0 : index
    %20 = vector.load %arg4[%c96, %c0_20] : memref<144x384xbf16, #tpu.memory_space<vmem>>, vector<16x384xbf16>
    tpu.vector_store %arg4[%c96, %c0_20], %19 {strides = array<i32>} : memref<144x384xbf16, #tpu.memory_space<vmem>>, vector<16x384xbf16>,
    %c0_21 = arith.constant 0 : index
    %c0_22 = arith.constant 0 : index
    %c146 = arith.constant 146 : index
    %21 = vector.load %arg1[%c0_21, %c0_22, %c146] : memref<1x16x640xbf16, #tpu.memory_space<vmem>>, vector<1x16x384xbf16>
    %22 = vector.shape_cast %21 : vector<1x16x384xbf16> to vector<16x384xbf16>
    %c112 = arith.constant 112 : index
    %c0_23 = arith.constant 0 : index
    %23 = vector.load %arg4[%c112, %c0_23] : memref<144x384xbf16, #tpu.memory_space<vmem>>, vector<16x384xbf16>
    tpu.vector_store %arg4[%c112, %c0_23], %22 {strides = array<i32>} : memref<144x384xbf16, #tpu.memory_space<vmem>>, vector<16x384xbf16>,
    %c0_24 = arith.constant 0 : index
    %c0_25 = arith.constant 0 : index
    %c147 = arith.constant 147 : index
    %24 = vector.load %arg1[%c0_24, %c0_25, %c147] : memref<1x16x640xbf16, #tpu.memory_space<vmem>>, vector<1x16x384xbf16>
    %25 = vector.shape_cast %24 : vector<1x16x384xbf16> to vector<16x384xbf16>
    %c128_26 = arith.constant 128 : index
    %c0_27 = arith.constant 0 : index
    %26 = vector.load %arg4[%c128_26, %c0_27] : memref<144x384xbf16, #tpu.memory_space<vmem>>, vector<16x384xbf16>
    tpu.vector_store %arg4[%c128_26, %c0_27], %25 {strides = array<i32>} : memref<144x384xbf16, #tpu.memory_space<vmem>>, vector<16x384xbf16>,
    %c0_28 = arith.constant 0 : index
    %c0_29 = arith.constant 0 : index
    %27 = vector.load %arg2[%c0_28, %c0_29] : memref<16x144xbf16, #tpu.memory_space<vmem>>, vector<16x144xbf16>
    %c0_30 = arith.constant 0 : index
    %c0_31 = arith.constant 0 : index
    %28 = vector.load %arg4[%c0_30, %c0_31] : memref<144x384xbf16, #tpu.memory_space<vmem>>, vector<144x384xbf16>
    %cst = arith.constant dense<0.000000e+00> : vector<16x384xf32>
    %29 = tpu.matmul %27, %28, %cst {dimension_numbers = #tpu.dot_dimension_numbers<[1], [0], [0], [1], [0, 0, 1, 1], [], []>} : vector<16x144xbf16>, vector<144x384xbf16>, vector<16x384xf32> -> vector<16x384xf32>
    %30 = arith.truncf %29 : vector<16x384xf32> to vector<16x384xbf16>
    %c0_32 = arith.constant 0 : index
    %c0_33 = arith.constant 0 : index
    %c0_34 = arith.constant 0 : index
    %31 = vector.load %arg3[%c0_32, %c0_33, %c0_34] : memref<1x16x384xbf16, #tpu.memory_space<vmem>>, vector<1x16x384xbf16>
    %32 = vector.shape_cast %31 : vector<1x16x384xbf16> to vector<16x384xbf16>
    %33 = vector.shape_cast %30 : vector<16x384xbf16> to vector<1x16x384xbf16>
    tpu.vector_store %arg3[%c0_32, %c0_33, %c0_34], %33 {strides = array<i32>} : memref<1x16x384xbf16, #tpu.memory_space<vmem>>, vector<1x16x384xbf16>,
    return
  }
  func.func @transform_0(%arg0: i32) -> (i32, i32, i32) {
    %c0_i32 = arith.constant 0 : i32
    %c0_i32_0 = arith.constant 0 : i32
    %c0_i32_1 = arith.constant 0 : i32
    return %arg0, %c0_i32, %c0_i32_0 : i32, i32, i32
  }
  func.func @transform_1(%arg0: i32) -> (i32, i32) {
    %c0_i32 = arith.constant 0 : i32
    %c0_i32_0 = arith.constant 0 : i32
    %c0_i32_1 = arith.constant 0 : i32
    return %c0_i32, %c0_i32_0 : i32, i32
  }
  func.func @transform_2(%arg0: i32) -> (i32, i32, i32) {
    %c0_i32 = arith.constant 0 : i32
    %c0_i32_0 = arith.constant 0 : i32
    %c0_i32_1 = arith.constant 0 : i32
    return %arg0, %c0_i32, %c0_i32_0 : i32, i32, i32
  }
}

module attributes {stable_mosaic.version = 11 : i64} {
  func.func @_out_conv_kernel(%arg0: i32, %arg1: memref<1x16x1408xbf16, #tpu.memory_space<vmem>>, %arg2: memref<16x144xbf16, #tpu.memory_space<vmem>>, %arg3: memref<1x16x1152xf32, #tpu.memory_space<vmem>>, %arg4: memref<144x1152xbf16, #tpu.memory_space<vmem>>) attributes {dimension_semantics = [#tpu.dimension_semantics<parallel>], iteration_bounds = array<i64: 2>, scalar_prefetch = 0 : i64, scratch_operands = 1 : i64, tpu.core_type = #tpu.core_type<tc>, window_params = [{transform_indices = @transform_0, window_bounds = array<i64: 1, 16, 1408>}, {pipeline_mode = #tpu.pipeline_mode<synchronous>, transform_indices = @transform_1, window_bounds = array<i64: 16, 144>}, {transform_indices = @transform_2, window_bounds = array<i64: 1, 16, 1152>}]} {
    %c0 = arith.constant 0 : index
    %c0_0 = arith.constant 0 : index
    %c93 = arith.constant 93 : index
    %0 = vector.load %arg1[%c0, %c0_0, %c93] : memref<1x16x1408xbf16, #tpu.memory_space<vmem>>, vector<1x16x1152xbf16>
    %1 = vector.shape_cast %0 : vector<1x16x1152xbf16> to vector<16x1152xbf16>
    %c0_1 = arith.constant 0 : index
    %c0_2 = arith.constant 0 : index
    %2 = vector.load %arg4[%c0_1, %c0_2] : memref<144x1152xbf16, #tpu.memory_space<vmem>>, vector<16x1152xbf16>
    tpu.vector_store %arg4[%c0_1, %c0_2], %1 {strides = array<i32>} : memref<144x1152xbf16, #tpu.memory_space<vmem>>, vector<16x1152xbf16>,
    %c0_3 = arith.constant 0 : index
    %c0_4 = arith.constant 0 : index
    %c94 = arith.constant 94 : index
    %3 = vector.load %arg1[%c0_3, %c0_4, %c94] : memref<1x16x1408xbf16, #tpu.memory_space<vmem>>, vector<1x16x1152xbf16>
    %4 = vector.shape_cast %3 : vector<1x16x1152xbf16> to vector<16x1152xbf16>
    %c16 = arith.constant 16 : index
    %c0_5 = arith.constant 0 : index
    %5 = vector.load %arg4[%c16, %c0_5] : memref<144x1152xbf16, #tpu.memory_space<vmem>>, vector<16x1152xbf16>
    tpu.vector_store %arg4[%c16, %c0_5], %4 {strides = array<i32>} : memref<144x1152xbf16, #tpu.memory_space<vmem>>, vector<16x1152xbf16>,
    %c0_6 = arith.constant 0 : index
    %c0_7 = arith.constant 0 : index
    %c95 = arith.constant 95 : index
    %6 = vector.load %arg1[%c0_6, %c0_7, %c95] : memref<1x16x1408xbf16, #tpu.memory_space<vmem>>, vector<1x16x1152xbf16>
    %7 = vector.shape_cast %6 : vector<1x16x1152xbf16> to vector<16x1152xbf16>
    %c32 = arith.constant 32 : index
    %c0_8 = arith.constant 0 : index
    %8 = vector.load %arg4[%c32, %c0_8] : memref<144x1152xbf16, #tpu.memory_space<vmem>>, vector<16x1152xbf16>
    tpu.vector_store %arg4[%c32, %c0_8], %7 {strides = array<i32>} : memref<144x1152xbf16, #tpu.memory_space<vmem>>, vector<16x1152xbf16>,
    %c0_9 = arith.constant 0 : index
    %c0_10 = arith.constant 0 : index
    %c127 = arith.constant 127 : index
    %9 = vector.load %arg1[%c0_9, %c0_10, %c127] : memref<1x16x1408xbf16, #tpu.memory_space<vmem>>, vector<1x16x1152xbf16>
    %10 = vector.shape_cast %9 : vector<1x16x1152xbf16> to vector<16x1152xbf16>
    %c48 = arith.constant 48 : index
    %c0_11 = arith.constant 0 : index
    %11 = vector.load %arg4[%c48, %c0_11] : memref<144x1152xbf16, #tpu.memory_space<vmem>>, vector<16x1152xbf16>
    tpu.vector_store %arg4[%c48, %c0_11], %10 {strides = array<i32>} : memref<144x1152xbf16, #tpu.memory_space<vmem>>, vector<16x1152xbf16>,
    %c0_12 = arith.constant 0 : index
    %c0_13 = arith.constant 0 : index
    %c128 = arith.constant 128 : index
    %12 = vector.load %arg1[%c0_12, %c0_13, %c128] : memref<1x16x1408xbf16, #tpu.memory_space<vmem>>, vector<1x16x1152xbf16>
    %13 = vector.shape_cast %12 : vector<1x16x1152xbf16> to vector<16x1152xbf16>
    %c64 = arith.constant 64 : index
    %c0_14 = arith.constant 0 : index
    %14 = vector.load %arg4[%c64, %c0_14] : memref<144x1152xbf16, #tpu.memory_space<vmem>>, vector<16x1152xbf16>
    tpu.vector_store %arg4[%c64, %c0_14], %13 {strides = array<i32>} : memref<144x1152xbf16, #tpu.memory_space<vmem>>, vector<16x1152xbf16>,
    %c0_15 = arith.constant 0 : index
    %c0_16 = arith.constant 0 : index
    %c129 = arith.constant 129 : index
    %15 = vector.load %arg1[%c0_15, %c0_16, %c129] : memref<1x16x1408xbf16, #tpu.memory_space<vmem>>, vector<1x16x1152xbf16>
    %16 = vector.shape_cast %15 : vector<1x16x1152xbf16> to vector<16x1152xbf16>
    %c80 = arith.constant 80 : index
    %c0_17 = arith.constant 0 : index
    %17 = vector.load %arg4[%c80, %c0_17] : memref<144x1152xbf16, #tpu.memory_space<vmem>>, vector<16x1152xbf16>
    tpu.vector_store %arg4[%c80, %c0_17], %16 {strides = array<i32>} : memref<144x1152xbf16, #tpu.memory_space<vmem>>, vector<16x1152xbf16>,
    %c0_18 = arith.constant 0 : index
    %c0_19 = arith.constant 0 : index
    %c161 = arith.constant 161 : index
    %18 = vector.load %arg1[%c0_18, %c0_19, %c161] : memref<1x16x1408xbf16, #tpu.memory_space<vmem>>, vector<1x16x1152xbf16>
    %19 = vector.shape_cast %18 : vector<1x16x1152xbf16> to vector<16x1152xbf16>
    %c96 = arith.constant 96 : index
    %c0_20 = arith.constant 0 : index
    %20 = vector.load %arg4[%c96, %c0_20] : memref<144x1152xbf16, #tpu.memory_space<vmem>>, vector<16x1152xbf16>
    tpu.vector_store %arg4[%c96, %c0_20], %19 {strides = array<i32>} : memref<144x1152xbf16, #tpu.memory_space<vmem>>, vector<16x1152xbf16>,
    %c0_21 = arith.constant 0 : index
    %c0_22 = arith.constant 0 : index
    %c162 = arith.constant 162 : index
    %21 = vector.load %arg1[%c0_21, %c0_22, %c162] : memref<1x16x1408xbf16, #tpu.memory_space<vmem>>, vector<1x16x1152xbf16>
    %22 = vector.shape_cast %21 : vector<1x16x1152xbf16> to vector<16x1152xbf16>
    %c112 = arith.constant 112 : index
    %c0_23 = arith.constant 0 : index
    %23 = vector.load %arg4[%c112, %c0_23] : memref<144x1152xbf16, #tpu.memory_space<vmem>>, vector<16x1152xbf16>
    tpu.vector_store %arg4[%c112, %c0_23], %22 {strides = array<i32>} : memref<144x1152xbf16, #tpu.memory_space<vmem>>, vector<16x1152xbf16>,
    %c0_24 = arith.constant 0 : index
    %c0_25 = arith.constant 0 : index
    %c163 = arith.constant 163 : index
    %24 = vector.load %arg1[%c0_24, %c0_25, %c163] : memref<1x16x1408xbf16, #tpu.memory_space<vmem>>, vector<1x16x1152xbf16>
    %25 = vector.shape_cast %24 : vector<1x16x1152xbf16> to vector<16x1152xbf16>
    %c128_26 = arith.constant 128 : index
    %c0_27 = arith.constant 0 : index
    %26 = vector.load %arg4[%c128_26, %c0_27] : memref<144x1152xbf16, #tpu.memory_space<vmem>>, vector<16x1152xbf16>
    tpu.vector_store %arg4[%c128_26, %c0_27], %25 {strides = array<i32>} : memref<144x1152xbf16, #tpu.memory_space<vmem>>, vector<16x1152xbf16>,
    %c0_28 = arith.constant 0 : index
    %c0_29 = arith.constant 0 : index
    %27 = vector.load %arg2[%c0_28, %c0_29] : memref<16x144xbf16, #tpu.memory_space<vmem>>, vector<16x144xbf16>
    %c0_30 = arith.constant 0 : index
    %c0_31 = arith.constant 0 : index
    %28 = vector.load %arg4[%c0_30, %c0_31] : memref<144x1152xbf16, #tpu.memory_space<vmem>>, vector<144x1152xbf16>
    %cst = arith.constant dense<0.000000e+00> : vector<16x1152xf32>
    %29 = tpu.matmul %27, %28, %cst {dimension_numbers = #tpu.dot_dimension_numbers<[1], [0], [0], [1], [0, 0, 1, 1], [], []>} : vector<16x144xbf16>, vector<144x1152xbf16>, vector<16x1152xf32> -> vector<16x1152xf32>
    %c0_32 = arith.constant 0 : index
    %c0_33 = arith.constant 0 : index
    %c0_34 = arith.constant 0 : index
    %30 = vector.load %arg3[%c0_32, %c0_33, %c0_34] : memref<1x16x1152xf32, #tpu.memory_space<vmem>>, vector<1x16x1152xf32>
    %31 = vector.shape_cast %30 : vector<1x16x1152xf32> to vector<16x1152xf32>
    %32 = vector.shape_cast %29 : vector<16x1152xf32> to vector<1x16x1152xf32>
    tpu.vector_store %arg3[%c0_32, %c0_33, %c0_34], %32 {strides = array<i32>} : memref<1x16x1152xf32, #tpu.memory_space<vmem>>, vector<1x16x1152xf32>,
    return
  }
  func.func @transform_0(%arg0: i32) -> (i32, i32, i32) {
    %c0_i32 = arith.constant 0 : i32
    %c0_i32_0 = arith.constant 0 : i32
    %c0_i32_1 = arith.constant 0 : i32
    return %arg0, %c0_i32, %c0_i32_0 : i32, i32, i32
  }
  func.func @transform_1(%arg0: i32) -> (i32, i32) {
    %c0_i32 = arith.constant 0 : i32
    %c0_i32_0 = arith.constant 0 : i32
    %c0_i32_1 = arith.constant 0 : i32
    return %c0_i32, %c0_i32_0 : i32, i32
  }
  func.func @transform_2(%arg0: i32) -> (i32, i32, i32) {
    %c0_i32 = arith.constant 0 : i32
    %c0_i32_0 = arith.constant 0 : i32
    %c0_i32_1 = arith.constant 0 : i32
    return %arg0, %c0_i32, %c0_i32_0 : i32, i32, i32
  }
}

</mosaic_0001>

<bundles_post_ra>
// kernel: srnet_forward.4
= control target key start
LH: loop header
LB: loop body
LE: loop exit
PB: predicated region body
PF: predicated region fallthrough
CT: control target
= control target key end

     0   :  { %s800_s9 = smov 0   ;;  %s861_s0 = inlined_call_operand.vmem [shape: bf16[2,16,640], index: 0, kind: input, shape index: {}]   ;;  %s862_s1 = inlined_call_operand.vmem [shape: bf16[16,144], index: 1, kind: input, shape index: {}]   ;;  %s863_s2 = inlined_call_operand.vmem [shape: bf16[2,16,384], index: 2, kind: output, shape index: {}]  }
   0x1 LB: > { %s677_s10 = sadd.s32 4294967295, %s774_s9   ;;  %p681_p0 = scmp.ge.s32.totalorder %s774_s9, 1  ;;  %s774_s9 = sphi %s800_s9, %s12_s9  }
   0x2   : > { %p112_p1 = scmp.lt.s32.totalorder %s774_s9, 3 }
   0x4   : > { %p113_p2 = pnand %p681_p0, %p112_p1 }
   0x5   : > { %p134_p3 = scmp.lt.s32.totalorder (!%p113_p2), %s677_s10, 1  ;;  %v776_v0 = vmov (!%p113_p2), 0   ;;  %s777_s15 = smov (!%p113_p2), 19   ;;  %v767_v9 = vld [vmem:[%s862_s1 + $0x4] ss:$8 sps:$4 sm:$0xff] (!%p113_p2)   ;;  %vm510_vm0 = vcmask (!%p113_p2), 130048  }
   0x6   : > { %116 = sbr.rel (%p113_p2) target bundleno = 415 (0x19f), region = 28  ;;  %557 = vmatprep.subr.bf16.mxu1 (!%p113_p2), %v776_v0  ;;  %s778_s16 = smov (!%p113_p2), 18   ;;  %721 = vmatprep.mubr.msk.bf16.mxu0 (!%p113_p2), %vm510_vm0, %v767_v9  ;;  %vm173_vm1 = vcmask (!%p113_p2), 154624   ;;  %vm211_vm2 = vcmask (!%p113_p2), 146432   ;;  %vm249_vm3 = vcmask (!%p113_p2), 138240   ;;  %vm287_vm4 = vcmask (!%p113_p2), 7168  }
   0x7   : > { %s779_s17 = smov (!%p113_p2), 17   ;;  %s780_s18 = smov (!%p113_p2), 1   ;;  %722 = vmatprep.mubr.msk.bf16.mxu1 (!%p113_p2), %vm510_vm0, %v767_v9  ;;  %vm348_vm5 = vcmask (!%p113_p2), 1039360   ;;  %vm386_vm6 = vcmask (!%p113_p2), 908288   ;;  %vm424_vm7 = vcmask (!%p113_p2), 900096   ;;  %vm462_vm8 = vcmask (!%p113_p2), 891904  }
   0x8   : > { %s781_s19 = smov (!%p113_p2), 127   ;;  %s782_s20 = smov (!%p113_p2), 111  }
   0x9   : > { %s783_s21 = smov (!%p113_p2), 110   ;;  %s784_s24 = smov (!%p113_p2), 109  }
   0xd   : > { %s865_s10 = smov (!%p134_p3, %s677_s10), 1 }
   0xe   : > { %s733_s11 = smul.u32 40, %s865_s10 }
   0xf   : > { %s734_s27 = smul.u32 24, %s865_s10 }
  0x10   : > { %s815_s14 = scalar_lea.vmem %s861_s0, %s733_s11 }
  0x11   : > { %v752_v1 = vld [vmem:[%s815_s14 + $0x4] ss:$20 sps:$4 sm:$0xff]   ;;  %v754_v2 = vld [vmem:[%s815_s14] ss:$20 sps:$4 sm:$0xff]   ;;  %v755_v3 = vld [vmem:[%s815_s14 + $0x8] ss:$20 sps:$4 sm:$0xff]   ;;  %s143_s30 = scalar_lea.vmem %s863_s2, %s734_s27 }
  0x12   : > { %167 = vrot.lane.b32.xlu0 %v752_v1, %s777_s15  ;;  %165 = vrot.lane.b32.xlu1 %v754_v2, %s777_s15  ;;  %v757_v4 = vld [vmem:[%s815_s14 + $0xc] ss:$20 sps:$4 sm:$0xff]   ;;  %v822_v5 = vld [vmem:[%s815_s14 + $0x8] ss:$20 sps:$4 sm:$0xff]  }
  0x13   : > { %v760_v6 = vld [vmem:[%s815_s14 + $0xc] ss:$20 sps:$4 sm:$0xff]   ;;  %v827_v7 = vld [vmem:[%s815_s14 + $0x4] ss:$20 sps:$4 sm:$0xff]  }
  0x14   : > { %v763_v8 = vld [vmem:[%s815_s14 + $0x10] ss:$20 sps:$4 sm:$0xff]   ;;  %v764_v38 = vld [vmem:[%s815_s14 + $0xc] ss:$20 sps:$4 sm:$0xff]  }
  0x16   : > { %169 = vrot.lane.b32.xlu0 %v755_v3, %s777_s15  ;;  %171 = vrot.lane.b32.xlu1 %v757_v4, %s777_s15 }
  0x1a   : > { %205 = vrot.lane.b32.xlu0 %v752_v1, %s778_s16  ;;  %207 = vrot.lane.b32.xlu1 %v755_v3, %s778_s16 }
  0x1e   : > { %203 = vrot.lane.b32.xlu0 %v754_v2, %s778_s16  ;;  %209 = vrot.lane.b32.xlu1 %v757_v4, %s778_s16 }
  0x22   : > { %243 = vrot.lane.b32.xlu0 %v752_v1, %s779_s17  ;;  %245 = vrot.lane.b32.xlu1 %v755_v3, %s779_s17 }
  0x26   : > { %241 = vrot.lane.b32.xlu0 %v754_v2, %s779_s17  ;;  %247 = vrot.lane.b32.xlu1 %v757_v4, %s779_s17 }
  0x2a   : > { %281 = vrot.lane.b32.xlu0 %v752_v1, %s780_s18  ;;  %283 = vrot.lane.b32.xlu1 %v755_v3, %s780_s18  ;;  %v765_v3 = vld [vmem:[%s862_s1] ss:$8 sps:$4 sm:$0xff]  }
  0x2e   : > { %279 = vrot.lane.b32.xlu0 %v754_v2, %s780_s18  ;;  %285 = vrot.lane.b32.xlu1 %v757_v4, %s780_s18 }
  0x32   : > { %342 = vrot.lane.b32.xlu0 %v822_v5, %s781_s19  ;;  %344 = vrot.lane.b32.xlu1 %v760_v6, %s781_s19 }
  0x36   : > { %340 = vrot.lane.b32.xlu0 %v827_v7, %s781_s19  ;;  %346 = vrot.lane.b32.xlu1 %v763_v8, %s781_s19 }
  0x3a   : > { %380 = vrot.lane.b32.xlu0 %v822_v5, %s782_s20  ;;  %382 = vrot.lane.b32.xlu1 %v760_v6, %s782_s20 }
  0x3e   : > { %378 = vrot.lane.b32.xlu0 %v827_v7, %s782_s20  ;;  %384 = vrot.lane.b32.xlu1 %v763_v8, %s782_s20 }
  0x42   : > { %418 = vrot.lane.b32.xlu0 %v822_v5, %s783_s21  ;;  %420 = vrot.lane.b32.xlu1 %v760_v6, %s783_s21 }
  0x46   : > { %416 = vrot.lane.b32.xlu0 %v827_v7, %s783_s21  ;;  %422 = vrot.lane.b32.xlu1 %v763_v8, %s783_s21 }
  0x4a   : > { %456 = vrot.lane.b32.xlu0 %v822_v5, %s784_s24  ;;  %458 = vrot.lane.b32.xlu1 %v760_v6, %s784_s24 }
  0x4e   : > { %454 = vrot.lane.b32.xlu0 %v827_v7, %s784_s24  ;;  %460 = vrot.lane.b32.xlu1 %v763_v8, %s784_s24 }
  0x84   : > { %v168_v10 = vpop.permute.xlu0 %167  ;;  %v166_v11 = vpop.permute.xlu1 %165 }
  0x85   : > { %v174_v16 = vsel %vm173_vm1, %v166_v11, %v168_v10 }
  0x88   : > { %v170_v12 = vpop.permute.xlu0 %169  ;;  %v172_v13 = vpop.permute.xlu1 %171 }
  0x89   : > { %v175_v14 = vsel %vm173_vm1, %v168_v10, %v170_v12  ;;  %v176_v15 = vsel %vm173_vm1, %v170_v12, %v172_v13 }
  0x8a   : > { %514 = vmatprep.subr.bf16.mxu0 %v175_v14  ;;  %558 = vmatpush1.bf16.msra.mxu1 %v176_v15 }
  0x8b   : > { %515 = vmatpush1.bf16.msra.mxu0 %v174_v16  ;;  %559 = vmatprep.subr.bf16.mxu1 %v776_v0 }
  0x8c   : > { %v206_v17 = vpop.permute.xlu0 %205  ;;  %v208_v18 = vpop.permute.xlu1 %207 }
  0x8d   : > { %v213_v19 = vsel %vm211_vm2, %v206_v17, %v208_v18 }
  0x8e   : > { %516 = vmatprep.subr.bf16.mxu0 %v213_v19 }
  0x90   : > { %v204_v20 = vpop.permute.xlu0 %203  ;;  %v210_v21 = vpop.permute.xlu1 %209 }
  0x91   : > { %v212_v22 = vsel %vm211_vm2, %v204_v20, %v206_v17  ;;  %v214_v23 = vsel %vm211_vm2, %v208_v18, %v210_v21 }
  0x92   : > { %517 = vmatpush1.bf16.msra.mxu0 %v212_v22  ;;  %560 = vmatpush1.bf16.msra.mxu1 %v214_v23 }
  0x93   : > { %561 = vmatprep.subr.bf16.mxu1 %v776_v0 }
  0x94   : > { %v244_v24 = vpop.permute.xlu0 %243  ;;  %v246_v25 = vpop.permute.xlu1 %245 }
  0x95   : > { %v251_v26 = vsel %vm249_vm3, %v244_v24, %v246_v25 }
  0x96   : > { %518 = vmatprep.subr.bf16.mxu0 %v251_v26 }
  0x98   : > { %v242_v27 = vpop.permute.xlu0 %241  ;;  %v248_v28 = vpop.permute.xlu1 %247 }
  0x99   : > { %v250_v29 = vsel %vm249_vm3, %v242_v27, %v244_v24  ;;  %v252_v30 = vsel %vm249_vm3, %v246_v25, %v248_v28 }
  0x9a   : > { %519 = vmatpush1.bf16.msra.mxu0 %v250_v29  ;;  %562 = vmatpush1.bf16.msra.mxu1 %v252_v30 }
  0x9b   : > { %563 = vmatprep.subr.bf16.mxu1 %v776_v0 }
  0x9c   : > { %v282_v31 = vpop.permute.xlu0 %281  ;;  %v284_v32 = vpop.permute.xlu1 %283 }
  0x9d   : > { %v289_v33 = vsel %vm287_vm4, %v282_v31, %v284_v32 }
  0x9e   : > { %520 = vmatprep.subr.bf16.mxu0 %v289_v33 }
  0xa0   : > { %v280_v34 = vpop.permute.xlu0 %279  ;;  %v286_v35 = vpop.permute.xlu1 %285 }
  0xa1   : > { %v288_v36 = vsel %vm287_vm4, %v280_v34, %v282_v31  ;;  %v290_v37 = vsel %vm287_vm4, %v284_v32, %v286_v35 }
  0xa2   : > { %521 = vmatpush1.bf16.msra.mxu0 %v288_v36  ;;  %564 = vmatpush1.bf16.msra.mxu1 %v290_v37 }
  0xa3   : > { %522 = vmatprep.subr.bf16.mxu0 %v822_v5  ;;  %565 = vmatprep.subr.bf16.mxu1 %v776_v0 }
  0xa4   : > { %v343_v39 = vpop.permute.xlu0 %342  ;;  %v345_v40 = vpop.permute.xlu1 %344 }
  0xa5   : > { %v350_v41 = vsel %vm348_vm5, %v343_v39, %v345_v40 }
  0xa6   : > { %523 = vmatpush1.bf16.msra.mxu0 %v827_v7  ;;  %566 = vmatpush1.bf16.msra.mxu1 %v764_v38 }
  0xa7   : > { %524 = vmatprep.subr.bf16.mxu0 %v350_v41  ;;  %567 = vmatprep.subr.bf16.mxu1 %v776_v0 }
  0xa8   : > { %v341_v42 = vpop.permute.xlu0 %340  ;;  %v347_v43 = vpop.permute.xlu1 %346 }
  0xa9   : > { %v349_v44 = vsel %vm348_vm5, %v341_v42, %v343_v39  ;;  %v351_v45 = vsel %vm348_vm5, %v345_v40, %v347_v43 }
  0xaa   : > { %525 = vmatpush1.bf16.msra.mxu0 %v349_v44  ;;  %568 = vmatpush1.bf16.msra.mxu1 %v351_v45 }
  0xab   : > { %569 = vmatprep.subr.bf16.mxu1 %v776_v0 }
  0xac   : > { %v381_v46 = vpop.permute.xlu0 %380  ;;  %v383_v47 = vpop.permute.xlu1 %382 }
  0xad   : > { %v388_v48 = vsel %vm386_vm6, %v381_v46, %v383_v47 }
  0xae   : > { %526 = vmatprep.subr.bf16.mxu0 %v388_v48 }
  0xb0   : > { %v379_v49 = vpop.permute.xlu0 %378  ;;  %v385_v50 = vpop.permute.xlu1 %384 }
  0xb1   : > { %v387_v51 = vsel %vm386_vm6, %v379_v49, %v381_v46  ;;  %v389_v52 = vsel %vm386_vm6, %v383_v47, %v385_v50 }
  0xb2   : > { %527 = vmatpush1.bf16.msra.mxu0 %v387_v51  ;;  %570 = vmatpush1.bf16.msra.mxu1 %v389_v52 }
  0xb3   : > { %571 = vmatprep.subr.bf16.mxu1 %v776_v0 }
  0xb4   : > { %v419_v53 = vpop.permute.xlu0 %418  ;;  %v421_v54 = vpop.permute.xlu1 %420 }
  0xb5   : > { %v426_v55 = vsel %vm424_vm7, %v419_v53, %v421_v54 }
  0xb6   : > { %528 = vmatprep.subr.bf16.mxu0 %v426_v55 }
  0xb8   : > { %v417_v56 = vpop.permute.xlu0 %416  ;;  %v423_v57 = vpop.permute.xlu1 %422 }
  0xb9   : > { %v425_v58 = vsel %vm424_vm7, %v417_v56, %v419_v53  ;;  %v427_v59 = vsel %vm424_vm7, %v421_v54, %v423_v57 }
  0xba   : > { %529 = vmatpush1.bf16.msra.mxu0 %v425_v58  ;;  %572 = vmatpush1.bf16.msra.mxu1 %v427_v59 }
  0xbb   : > { %573 = vmatprep.subr.bf16.mxu1 %v776_v0 }
  0xbc   : > { %v457_v60 = vpop.permute.xlu0 %456  ;;  %v459_v61 = vpop.permute.xlu1 %458 }
  0xbd   : > { %v464_v62 = vsel %vm462_vm8, %v457_v60, %v459_v61 }
  0xbe   : > { %530 = vmatprep.subr.bf16.mxu0 %v464_v62 }
  0xc0   : > { %v455_v63 = vpop.permute.xlu0 %454  ;;  %v461_v1 = vpop.permute.xlu1 %460 }
  0xc1   : > { %v463_v2 = vsel %vm462_vm8, %v455_v63, %v457_v60  ;;  %v465_v4 = vsel %vm462_vm8, %v459_v61, %v461_v1 }
  0xc2   : > { %531 = vmatpush1.bf16.msra.mxu0 %v463_v2  ;;  %574 = vmatpush1.bf16.msra.mxu1 %v465_v4 }
  0xc5   : > { %547 = vmatmul.mubr.bf16.vlgmr.msra.gmra.mrb[0].mxu0 %v765_v3  ;;  %590 = vmatmul.mubr.bf16.vlgmr.msra.gmra.mrb[0].mxu1 %v765_v3 }
 0x198   : > { %v548_v5 = vpop.f32.mrb[0].mxu0  ;;  %v591_v0 = vpop.f32.mrb[0].mxu1 }
 0x199   : > { %v550_v6 = vpop.f32.mrb[1].mxu0  ;;  %v730_v7 = vpack.c.bf16 %v591_v0, %v591_v0  ;;  %v593_v9 = vpop.f32.mrb[1].mxu1 }
 0x19a   : > { %v729_v8 = vpack.c.bf16 %v550_v6, %v548_v5  ;;  %v552_v10 = vpop.f32.mrb[2].mxu0  ;;  %v594_v11 = vpop.f32.mrb[2].mxu1 }
 0x19b   : > { %v554_v12 = vpop.f32.mrb[3].mxu0  ;;  %619 = vst [vmem:[%s143_s30 + $0x8] sm:$0xf] %v730_v7  ;;  %v732_v13 = vpack.c.bf16 %v594_v11, %v594_v11  ;;  %v596_v15 = vpop.f32.mrb[3].mxu1 }
 0x19c   : > { %618 = vst [vmem:[%s143_s30] sm:$0xff] %v729_v8  ;;  %v731_v14 = vpack.c.bf16 %v554_v12, %v552_v10 }
 0x19d   : > { %621 = vst [vmem:[%s143_s30 + $0x14] sm:$0xf] %v732_v13 }
 0x19e   : > { %620 = vst [vmem:[%s143_s30 + $0xc] sm:$0xff] %v731_v14 }
 0x19f PF: > { %s12_s9 = sadd.s32 1, %s774_s9  }
 0x1a0   : > { %p9_p4 = scmp.ge.s32.totalorder %s12_s9, 4  }
 0x1a2   :  { %11 = sbr.rel (!%p9_p4) target bundleno = 1 (0x1), region = 58 }

// kernel: srnet_forward.3
= control target key start
LH: loop header
LB: loop body
LE: loop exit
PB: predicated region body
PF: predicated region fallthrough
CT: control target
= control target key end

     0   :  { %s3978_s25 = smov 0   ;;  %s5032_s0 = inlined_call_operand.vmem [shape: bf16[2,48,384], index: 0, kind: input, shape index: {}]   ;;  %s5033_s1 = inlined_call_operand.vmem [shape: bf16[16,432], index: 1, kind: input, shape index: {}]   ;;  %s5034_s2 = inlined_call_operand.vmem [shape: f32[16,1], index: 2, kind: input, shape index: {}]   ;;  %s5035_s3 = inlined_call_operand.vmem [shape: bf16[32,144], index: 3, kind: input, shape index: {}]   ;;  %s5036_s4 = inlined_call_operand.vmem [shape: f32[32,1], index: 4, kind: input, shape index: {}]   ;;  %s5037_s5 = inlined_call_operand.vmem [shape: bf16[16,32], index: 5, kind: input, shape index: {}]   ;;  %s5038_s6 = inlined_call_operand.vmem [shape: f32[16,1], index: 6, kind: input, shape index: {}]   ;;  %s5039_s7 = inlined_call_operand.vmem [shape: bf16[10,16,144], index: 7, kind: input, shape index: {}]   ;;  %s5040_s8 = inlined_call_operand.vmem [shape: f32[10,16,1], index: 8, kind: input, shape index: {}]   ;;  %s5041_s9 = inlined_call_operand.vmem [shape: bf16[16,144], index: 9, kind: input, shape index: {}]   ;;  %s5042_s10 = inlined_call_operand.vmem [shape: f32[16,1], index: 10, kind: input, shape index: {}]   ;;  %s5043_s11 = inlined_call_operand.vmem [shape: bf16[16,144], index: 11, kind: input, shape index: {}]   ;;  %s5044_s12 = inlined_call_operand.vmem [shape: f32[16,1], index: 12, kind: input, shape index: {}]   ;;  %s5045_s13 = inlined_call_operand.vmem [shape: bf16[2,16,128], index: 13, kind: output, shape index: {}]  }
   0x1 LB: > { %s3579_s26 = sadd.s32 4294967295, %s3895_s25   ;;  %p3583_p0 = scmp.ge.s32.totalorder %s3895_s25, 1  ;;  %s3895_s25 = sphi %s3978_s25, %s23_s25  }
   0x2   : > { %p387_p1 = scmp.lt.s32.totalorder %s3895_s25, 3 }
   0x4   : > { %p388_p2 = pnand %p3583_p0, %p387_p1 }
   0x5   : > { %p431_p3 = scmp.lt.s32.totalorder (!%p388_p2), %s3579_s26, 1  ;;  %v3897_v0 = vmov (!%p388_p2), 0   ;;  %s3898_s14 = smov (!%p388_p2), 127   ;;  %v3842_v13 = vld [vmem:[%s5033_s1 + $0x4] ss:$16 sps:$4 sm:$0xff] (!%p388_p2)   ;;  %vm986_vm0 = vcmask (!%p388_p2), 392192  }
   0x6   : > { %391 = sbr.rel (%p388_p2) target bundleno = 5530 (0x159a), region = 72  ;;  %1031 = vmatprep.subr.bf16.mxu1 (!%p388_p2), %v3897_v0  ;;  %3818 = vset.pattern.permute.xlu1 (!%p388_p2), %v3897_v0  ;;  %s3899_s15 = smov (!%p388_p2), 9   ;;  %v3845_v14 = vld [vmem:[%s5033_s1 + $0xc] ss:$16 sps:$4 sm:$0xff] (!%p388_p2)   ;;  %v485_v16 = vld [vmem:[%s5034_s2] sm:$0xff] (!%p388_p2)  ;;  %vm764_vm1 = vcmask (!%p388_p2), 1039360  }
   0x7   : > { %3817 = vset.pattern.permute.xlu0 (!%p388_p2), %v3897_v0  ;;  %s3900_s16 = smov (!%p388_p2), 11   ;;  %s3901_s17 = smov (!%p388_p2), 119   ;;  %1022 = vmatprep.mubr.bf16.mxu0 (!%p388_p2), %v3842_v13  ;;  %v486_v15 = vld [vmem:[%s5034_s2 + $0x8] sm:$0xff] (!%p388_p2)  ;;  %vm633_vm2 = vcmask (!%p388_p2), 72704   ;;  %vm529_vm3 = vcmask (!%p388_p2), 89088   ;;  %vm816_vm4 = vcmask (!%p388_p2), 973824  }
   0x8   : > { %s3902_s18 = smov (!%p388_p2), 1   ;;  %s3903_s19 = smov (!%p388_p2), 10   ;;  %3642 = vmatprep.mubr.msk.bf16.mxu1 (!%p388_p2), %vm986_vm0, %v3845_v14  ;;  %vm685_vm5 = vcmask (!%p388_p2), 7168   ;;  %vm581_vm6 = vcmask (!%p388_p2), 80896   ;;  %vm868_vm7 = vcmask (!%p388_p2), 965632   ;;  %vm920_vm8 = vcmask (!%p388_p2), 957440  }
   0x9   : > { %s3904_s20 = smov (!%p388_p2), 118   ;;  %s3905_s23 = smov (!%p388_p2), 117  }
   0xd   : > { %s5051_s26 = smov (!%p431_p3, %s3579_s26), 1 }
   0xe   : > { %s3795_s27 = smul.u32 72, %s5051_s26 }
  0x10   : > { %s3995_s30 = scalar_lea.vmem %s5032_s0, %s3795_s27 }
  0x11   : > { %v3998_v1 = vld [vmem:[%s3995_s30 + $0x34] ss:$12 sps:$4 sm:$0xff]   ;;  %v4001_v2 = vld [vmem:[%s3995_s30 + $0x38] ss:$12 sps:$4 sm:$0xff]   ;;  %v4006_v3 = vld [vmem:[%s3995_s30 + $0x1c] ss:$12 sps:$4 sm:$0xff]  }
  0x12   : > { %760 = vrot.lane.b32.xlu1 %v3998_v1, %s3898_s14  ;;  %v4009_v4 = vld [vmem:[%s3995_s30 + $0x20] ss:$12 sps:$4 sm:$0xff]   ;;  %756 = vrot.lane.b32.xlu0 %v4006_v3, %s3898_s14  ;;  %v3827_v6 = vld [vmem:[%s3995_s30 + $0x30] ss:$12 sps:$4 sm:$0xff]  }
  0x13   : > { %v3825_v5 = vld [vmem:[%s3995_s30 + $0x34] ss:$12 sps:$4 sm:$0xff]   ;;  %v3828_v7 = vld [vmem:[%s3995_s30 + $0x4] ss:$12 sps:$4 sm:$0xff]   ;;  %v3834_v11 = vld [vmem:[%s3995_s30 + $0x1c] ss:$12 sps:$4 sm:$0xff]  }
  0x14   : > { %v3830_v8 = vld [vmem:[%s3995_s30] ss:$12 sps:$4 sm:$0xff]   ;;  %v3831_v9 = vld [vmem:[%s3995_s30 + $0x8] ss:$12 sps:$4 sm:$0xff]   ;;  %v3833_v10 = vld [vmem:[%s3995_s30 + $0x4] ss:$12 sps:$4 sm:$0xff]  }
  0x15   : > { %v3836_v12 = vld [vmem:[%s3995_s30 + $0x18] ss:$12 sps:$4 sm:$0xff]   ;;  %v3838_v61 = vld [vmem:[%s3995_s30 + $0x1c] ss:$12 sps:$4 sm:$0xff]  }
  0x16   : > { %762 = vrot.lane.b32.xlu1 %v4001_v2, %s3898_s14  ;;  %758 = vrot.lane.b32.xlu0 %v4009_v4, %s3898_s14  ;;  %v3837_v54 = vld [vmem:[%s3995_s30 + $0x4] ss:$12 sps:$4 sm:$0xff]  }
  0x1a   : > { %631 = vrot.lane.b32.xlu1 %v3825_v5, %s3899_s15  ;;  %629 = vrot.lane.b32.xlu0 %v3827_v6, %s3899_s15 }
  0x1e   : > { %519 = vrot.lane.b32.xlu1 %v3828_v7, %s3900_s16  ;;  %517 = vrot.lane.b32.xlu0 %v3830_v8, %s3900_s16 }
  0x22   : > { %806 = vrot.lane.b32.xlu1 %v3831_v9, %s3901_s17  ;;  %804 = vrot.lane.b32.xlu0 %v3833_v10, %s3901_s17 }
  0x26   : > { %675 = vrot.lane.b32.xlu1 %v3828_v7, %s3902_s18  ;;  %673 = vrot.lane.b32.xlu0 %v3830_v8, %s3902_s18 }
  0x2a   : > { %523 = vrot.lane.b32.xlu1 %v3834_v11, %s3900_s16  ;;  %521 = vrot.lane.b32.xlu0 %v3836_v12, %s3900_s16 }
  0x2e   : > { %810 = vrot.lane.b32.xlu1 %v4009_v4, %s3901_s17  ;;  %808 = vrot.lane.b32.xlu0 %v4006_v3, %s3901_s17 }
  0x32   : > { %679 = vrot.lane.b32.xlu1 %v3834_v11, %s3902_s18  ;;  %677 = vrot.lane.b32.xlu0 %v3836_v12, %s3902_s18 }
  0x36   : > { %527 = vrot.lane.b32.xlu1 %v3825_v5, %s3900_s16  ;;  %525 = vrot.lane.b32.xlu0 %v3827_v6, %s3900_s16 }
  0x3a   : > { %814 = vrot.lane.b32.xlu1 %v4001_v2, %s3901_s17  ;;  %812 = vrot.lane.b32.xlu0 %v3998_v1, %s3901_s17 }
  0x3e   : > { %683 = vrot.lane.b32.xlu1 %v3825_v5, %s3902_s18  ;;  %681 = vrot.lane.b32.xlu0 %v3827_v6, %s3902_s18 }
  0x42   : > { %571 = vrot.lane.b32.xlu1 %v3828_v7, %s3903_s19  ;;  %569 = vrot.lane.b32.xlu0 %v3830_v8, %s3903_s19 }
  0x46   : > { %858 = vrot.lane.b32.xlu1 %v3831_v9, %s3904_s20  ;;  %856 = vrot.lane.b32.xlu0 %v3833_v10, %s3904_s20 }
  0x4a   : > { %575 = vrot.lane.b32.xlu1 %v3834_v11, %s3903_s19  ;;  %573 = vrot.lane.b32.xlu0 %v3836_v12, %s3903_s19 }
  0x4e   : > { %862 = vrot.lane.b32.xlu1 %v4009_v4, %s3904_s20  ;;  %860 = vrot.lane.b32.xlu0 %v4006_v3, %s3904_s20 }
  0x52   : > { %579 = vrot.lane.b32.xlu1 %v3825_v5, %s3903_s19  ;;  %577 = vrot.lane.b32.xlu0 %v3827_v6, %s3903_s19  ;;  %v3839_v5 = vld [vmem:[%s3995_s30 + $0x34] ss:$12 sps:$4 sm:$0xff]  }
  0x56   : > { %866 = vrot.lane.b32.xlu1 %v4001_v2, %s3904_s20  ;;  %864 = vrot.lane.b32.xlu0 %v3998_v1, %s3904_s20 }
  0x5a   : > { %623 = vrot.lane.b32.xlu1 %v3828_v7, %s3899_s15  ;;  %621 = vrot.lane.b32.xlu0 %v3830_v8, %s3899_s15 }
  0x5e   : > { %910 = vrot.lane.b32.xlu1 %v3831_v9, %s3905_s23  ;;  %908 = vrot.lane.b32.xlu0 %v3833_v10, %s3905_s23 }
  0x62   : > { %754 = vrot.lane.b32.xlu1 %v3831_v9, %s3898_s14  ;;  %752 = vrot.lane.b32.xlu0 %v3833_v10, %s3898_s14 }
  0x66   : > { %627 = vrot.lane.b32.xlu1 %v3834_v11, %s3899_s15  ;;  %625 = vrot.lane.b32.xlu0 %v3836_v12, %s3899_s15 }
  0x6a   : > { %914 = vrot.lane.b32.xlu1 %v4009_v4, %s3905_s23  ;;  %912 = vrot.lane.b32.xlu0 %v4006_v3, %s3905_s23 }
  0x6e   : > { %918 = vrot.lane.b32.xlu1 %v4001_v2, %s3905_s23  ;;  %916 = vrot.lane.b32.xlu0 %v3998_v1, %s3905_s23 }
  0x72   : > { %964 = vperm.xlu1 %3818, %v486_v15   ;;  %959 = vperm.xlu0 %3817, %v485_v16  }
  0x76   : > { %1096 = vrot.lane.b32.xlu1 %v3897_v0, %s3900_s16 }
  0x7a   : > { %1107 = vrot.lane.b32.xlu1 %v3897_v0, %s3903_s19 }
  0x7e   : > { %1118 = vrot.lane.b32.xlu1 %v3897_v0, %s3899_s15 }
  0x82   : > { %1129 = vrot.lane.b32.xlu1 %v3897_v0, %s3902_s18 }
  0x84   : > { %v761_v17 = vpop.permute.xlu1 %760  ;;  %v757_v18 = vpop.permute.xlu0 %756 }
  0x88   : > { %v763_v19 = vpop.permute.xlu1 %762  ;;  %v759_v20 = vpop.permute.xlu0 %758 }
  0x89   : > { %v766_v21 = vsel %vm764_vm1, %v757_v18, %v759_v20  ;;  %v767_v25 = vsel %vm764_vm1, %v761_v17, %v763_v19 }
  0x8a   : > { %1032 = vmatpush1.bf16.msra.mxu1 %v766_v21 }
  0x8b   : > { %1033 = vmatprep.subr.bf16.mxu1 %v3897_v0 }
  0x8c   : > { %v632_v22 = vpop.permute.xlu1 %631  ;;  %v630_v23 = vpop.permute.xlu0 %629 }
  0x8d   : > { %v636_v24 = vsel %vm633_vm2, %v630_v23, %v632_v22  ;;  %v3840_v23 = vld [vmem:[%s5033_s1] ss:$16 sps:$4 sm:$0xff]  }
  0x8e   : > { %3762 = vmatprep.subr.bf16.mxu0 %v636_v24  ;;  %1034 = vmatpush1.bf16.msra.mxu1 %v767_v25 }
  0x8f   : > { %1035 = vmatprep.subr.bf16.mxu1 %v3897_v0 }
  0x90   : > { %v520_v26 = vpop.permute.xlu1 %519  ;;  %v518_v27 = vpop.permute.xlu0 %517 }
  0x91   : > { %v530_v28 = vsel %vm529_vm3, %v518_v27, %v520_v26 }
  0x92   : > { %3763 = vmatpush3.bf16.msra.mxu0 %v530_v28 }
  0x94   : > { %v807_v29 = vpop.permute.xlu1 %806  ;;  %v805_v30 = vpop.permute.xlu0 %804 }
  0x95   : > { %v817_v31 = vsel %vm816_vm4, %v805_v30, %v807_v29  ;;  %v3843_v30 = vld [vmem:[%s5033_s1 + $0x8] ss:$16 sps:$4 sm:$0xff]  }
  0x96   : > { %1036 = vmatpush1.bf16.msra.mxu1 %v817_v31  ;;  %v442_v31 = vlaneseq }
  0x97   : > { %1037 = vmatprep.subr.bf16.mxu1 %v3897_v0 }
  0x98   : > { %v676_v32 = vpop.permute.xlu1 %675  ;;  %v674_v33 = vpop.permute.xlu0 %673 }
  0x99   : > { %v686_v34 = vsel %vm685_vm5, %v674_v33, %v676_v32  ;;  %v443_v32 = vand.u32 127, %v442_v31 }
  0x9a   : > { %3764 = vmatprep.subr.bf16.mxu0 %v686_v34 }
  0x9b   : > { %v4145_v33 = vmul.u32.u64.low 3435973837, %v443_v32  ;;  %v4146_v34 = vmul.u32.u64.high 3435973837, %v443_v32, %v4145_v33  ;;  %vm461_vm13 = vcmp.lt.s32.totalorder %v443_v32, 80 }
  0x9c   : > { %v524_v35 = vpop.permute.xlu1 %523  ;;  %v522_v36 = vpop.permute.xlu0 %521 }
  0x9d   : > { %v531_v37 = vsel %vm529_vm3, %v522_v36, %v524_v35  ;;  %v450_v35 = vshrl.u32 %v4146_v34, 3  ;;  %v3848_v34 = vld [vmem:[%s5035_s3] ss:$8 sps:$4 sm:$0xff]  }
  0x9e   : > { %3765 = vmatpush3.bf16.msra.mxu0 %v531_v37 }
  0x9f   : > { %v451_v36 = vmul.u32 10, %v450_v35  ;;  %v3849_v35 = vld [vmem:[%s5035_s3 + $0x14] ss:$8 sps:$4 sm:$0xff]  }
  0xa0   : > { %v811_v38 = vpop.permute.xlu1 %810  ;;  %v809_v39 = vpop.permute.xlu0 %808 }
  0xa1   : > { %v818_v40 = vsel %vm816_vm4, %v809_v39, %v811_v38  ;;  %v452_v37 = vsub.s32 %v443_v32, %v451_v36  ;;  %v3851_v36 = vld [vmem:[%s5035_s3 + $0x10] ss:$8 sps:$4 sm:$0xff]  }
  0xa2   : > { %1038 = vmatpush1.bf16.msra.mxu1 %v818_v40 }
  0xa3   : > { %1039 = vmatprep.subr.bf16.mxu1 %v3897_v0  ;;  %vm455_vm9 = vcmp.ne.s32.totalorder %v452_v37, 0  ;;  %vm456_vm10 = vcmp.lt.s32.totalorder %v452_v37, 0 }
  0xa4   : > { %v680_v41 = vpop.permute.xlu1 %679  ;;  %v678_v42 = vpop.permute.xlu0 %677  ;;  %vm457_vm11 = vmand %vm456_vm10, %vm455_vm9  ;;  %vm1229_vm9 = vcmask 130048  }
  0xa5   : > { %v687_v43 = vsel %vm685_vm5, %v678_v42, %v680_v41 }
  0xa6   : > { %3766 = vmatprep.subr.bf16.mxu0 %v687_v43 }
  0xa8   : > { %v528_v44 = vpop.permute.xlu1 %527  ;;  %v526_v45 = vpop.permute.xlu0 %525 }
  0xa9   : > { %v532_v46 = vsel %vm529_vm3, %v526_v45, %v528_v44  ;;  %v458_v44 = vadd.s32 10, %v452_v37 }
  0xaa   : > { %3767 = vmatpush3.bf16.msra.mxu0 %v532_v46 }
  0xac   : > { %v815_v47 = vpop.permute.xlu1 %814  ;;  %v813_v48 = vpop.permute.xlu0 %812 }
  0xad   : > { %v819_v49 = vsel %vm816_vm4, %v813_v48, %v815_v47  ;;  %v459_v48 = vsel %vm457_vm11, %v458_v44, %v452_v37  ;;  %v3906_v37 = vmov 0.0   ;;  %vm3907_vm11 = vmmov 0  }
  0xae   : > { %1040 = vmatpush1.bf16.msra.mxu1 %v819_v49  ;;  %vm460_vm12 = vcmp.lt.s32.totalorder %v459_v48, 8 }
  0xaf   : > { %1041 = vmatprep.subr.bf16.mxu1 %v3897_v0  ;;  %vm4149_vm15 = vmand %vm460_vm12, %vm461_vm13 }
  0xb0   : > { %v684_v50 = vpop.permute.xlu1 %683  ;;  %v682_v51 = vpop.permute.xlu0 %681  ;;  %vm4218_vm10 = vmpackc.low %vm4149_vm15, %vm4149_vm15 }
  0xb1   : > { %v688_v52 = vsel %vm685_vm5, %v682_v51, %v684_v50 }
  0xb2   : > { %3768 = vmatprep.subr.bf16.mxu0 %v688_v52 }
  0xb4   : > { %v572_v53 = vpop.permute.xlu1 %571  ;;  %v570_v55 = vpop.permute.xlu0 %569 }
  0xb5   : > { %v582_v56 = vsel %vm581_vm6, %v570_v55, %v572_v53 }
  0xb6   : > { %3769 = vmatpush3.bf16.msra.mxu0 %v582_v56 }
  0xb7   : > { %3770 = vmatprep.subr.bf16.mxu0 %v3837_v54 }
  0xb8   : > { %v859_v57 = vpop.permute.xlu1 %858  ;;  %v857_v58 = vpop.permute.xlu0 %856 }
  0xb9   : > { %v869_v59 = vsel %vm868_vm7, %v857_v58, %v859_v57 }
  0xba   : > { %1042 = vmatpush1.bf16.msra.mxu1 %v869_v59 }
  0xbb   : > { %1043 = vmatprep.subr.bf16.mxu1 %v3897_v0 }
  0xbc   : > { %v576_v60 = vpop.permute.xlu1 %575  ;;  %v574_v62 = vpop.permute.xlu0 %573 }
  0xbd   : > { %v583_v63 = vsel %vm581_vm6, %v574_v62, %v576_v60 }
  0xbe   : > { %3771 = vmatpush3.bf16.msra.mxu0 %v583_v63 }
  0xbf   : > { %3772 = vmatprep.subr.bf16.mxu0 %v3838_v61 }
  0xc0   : > { %v863_v1 = vpop.permute.xlu1 %862  ;;  %v861_v2 = vpop.permute.xlu0 %860 }
  0xc1   : > { %v870_v3 = vsel %vm868_vm7, %v861_v2, %v863_v1  ;;  %v1088_v2 = vld [vmem:[%s5036_s4] sm:$0xff] }
  0xc2   : > { %1044 = vmatpush1.bf16.msra.mxu1 %v870_v3  ;;  %v1090_v3 = vld [vmem:[%s5036_s4 + $0x10] sm:$0xff] }
  0xc3   : > { %1045 = vmatprep.subr.bf16.mxu1 %v3897_v0 }
  0xc4   : > { %v580_v4 = vpop.permute.xlu1 %579  ;;  %v578_v6 = vpop.permute.xlu0 %577 }
  0xc5   : > { %v584_v7 = vsel %vm581_vm6, %v578_v6, %v580_v4  ;;  %v3846_v4 = vld [vmem:[%s5035_s3 + $0x4] ss:$8 sps:$4 sm:$0xff]  }
  0xc6   : > { %3773 = vmatpush3.bf16.msra.mxu0 %v584_v7  ;;  %v1089_v6 = vld [vmem:[%s5036_s4 + $0x8] sm:$0xff]  ;;  %v1091_v7 = vld [vmem:[%s5036_s4 + $0x18] sm:$0xff] }
  0xc7   : > { %3774 = vmatprep.subr.bf16.mxu0 %v3839_v5  ;;  %v1307_v5 = vld [vmem:[%s5038_s6] sm:$0xff] }
  0xc8   : > { %v867_v8 = vpop.permute.xlu1 %866  ;;  %v865_v9 = vpop.permute.xlu0 %864 }
  0xc9   : > { %v871_v10 = vsel %vm868_vm7, %v865_v9, %v867_v8  ;;  %v1308_v8 = vld [vmem:[%s5038_s6 + $0x8] sm:$0xff] }
  0xca   : > { %1046 = vmatpush1.bf16.msra.mxu1 %v871_v10 }
  0xcb   : > { %1047 = vmatprep.subr.bf16.mxu1 %v3897_v0 }
  0xcc   : > { %v624_v11 = vpop.permute.xlu1 %623  ;;  %v622_v12 = vpop.permute.xlu0 %621 }
  0xcd   : > { %v634_v13 = vsel %vm633_vm2, %v622_v12, %v624_v11 }
  0xce   : > { %3775 = vmatpush3.bf16.msra.mxu0 %v634_v13 }
  0xd0   : > { %v911_v14 = vpop.permute.xlu1 %910  ;;  %v909_v15 = vpop.permute.xlu0 %908 }
  0xd1   : > { %v921_v16 = vsel %vm920_vm8, %v909_v15, %v911_v14 }
  0xd2   : > { %1048 = vmatpush1.bf16.msra.mxu1 %v921_v16 }
  0xd3   : > { %1049 = vmatprep.subr.bf16.mxu1 %v3897_v0 }
  0xd4   : > { %v755_v17 = vpop.permute.xlu1 %754  ;;  %v753_v18 = vpop.permute.xlu0 %752 }
  0xd5   : > { %v765_v19 = vsel %vm764_vm1, %v753_v18, %v755_v17 }
  0xd6   : > { %3776 = vmatprep.subr.bf16.mxu0 %v765_v19 }
  0xd8   : > { %v628_v20 = vpop.permute.xlu1 %627  ;;  %v626_v21 = vpop.permute.xlu0 %625 }
  0xd9   : > { %v635_v22 = vsel %vm633_vm2, %v626_v21, %v628_v20 }
  0xda   : > { %3777 = vmatpush3.bf16.msra.mxu0 %v635_v22 }
  0xdb   : > { %1236 = vmatprep.subr.bf16.mxu0 %v3897_v0 }
  0xdc   : > { %v915_v24 = vpop.permute.xlu1 %914  ;;  %v913_v25 = vpop.permute.xlu0 %912 }
  0xdd   : > { %1023 = vmatmul.mubr.bf16.vlgmr.msra.gmra.mrb[0].mxu0 %v3840_v23  ;;  %v922_v26 = vsel %vm920_vm8, %v913_v25, %v915_v24 }
  0xde   : > { %1050 = vmatpush1.bf16.msra.mxu1 %v922_v26  ;;  %3647 = vmatprep.mubr.msk.bf16.mxu0 %vm1229_vm9, %v3846_v4 }
  0xdf   : > { %1051 = vmatprep.subr.bf16.mxu1 %v3897_v0 }
  0xe0   : > { %v919_v27 = vpop.permute.xlu1 %918  ;;  %v917_v28 = vpop.permute.xlu0 %916 }
  0xe1   : > { %v923_v29 = vsel %vm920_vm8, %v917_v28, %v919_v27 }
  0xe2   : > { %1052 = vmatpush1.bf16.msra.mxu1 %v923_v29 }
  0xe3   : > { %3787 = vmatprep.subr.bf16.mxu1 %v3906_v37 }
  0xe5   : > { %1064 = vmatmul.mubr.bf16.vlgmr.msra.gmra.mrb[0].mxu1 %v3843_v30 }
  0xe6   : > { %3791 = vmatprep.mubr.msk.bf16.mxu1 %vm3907_vm11, %v3906_v37  ;;  %vm1330_vm11 = vcmask 261120  }
  0xf1   : > { %v960_v42 = vpop.permute.xlu0 %959  ;;  %v965_v47 = vpop.permute.xlu1 %964 }
  0xf5   : > { %v1097_v9 = vpop.permute.xlu1 %1096 }
  0xf9   : > { %v1108_v10 = vpop.permute.xlu1 %1107 }
  0xfd   : > { %v1119_v13 = vpop.permute.xlu1 %1118 }
 0x101   : > { %v1130_v16 = vpop.permute.xlu1 %1129 }
 0x1b0   : > { %v3778_v38 = vpop.f32.mrb[0].mxu0 }
 0x1b1   : > { %v3779_v39 = vpop.f32.mrb[1].mxu0 }
 0x1b2   : > { %v3780_v40 = vadd.f32 %v3779_v39, %v3778_v38  ;;  %v3781_v41 = vpop.f32.mrb[2].mxu0 }
 0x1b3   : > { %v3782_v43 = vpop.f32.mrb[3].mxu0 }
 0x1b4   : > { %v3783_v45 = vadd.f32 %v3782_v43, %v3781_v41  ;;  %v1025_v46 = vadd.f32 %v3780_v40, %v960_v42 }
 0x1b6   : > { %v1028_v50 = vadd.f32 %v3783_v45, %v965_v47 }
 0x1b8   : > { %v1065_v49 = vpop.f32.mrb[0].mxu1 }
 0x1b9   : > { %v1066_v51 = vadd.f32 %v1065_v49, %v1025_v46  ;;  %v1067_v52 = vpop.f32.mrb[1].mxu1 }
 0x1ba   : > { %v1068_v53 = vpop.f32.mrb[2].mxu1 }
 0x1bb   : > { %vm1072_vm14 = vcmp.ge.f32.partialorder %v1066_v51, 0.0  ;;  %v1074_v54 = vmul.f32 0.25, %v1066_v51  ;;  %v1069_v55 = vadd.f32 %v1068_v53, %v1028_v50  ;;  %v1070_v56 = vpop.f32.mrb[3].mxu1 }
 0x1bd   : > { %v4153_v58 = vsel %vm1072_vm14, %v1066_v51, %v1074_v54  ;;  %vm1073_vm0 = vcmp.ge.f32.partialorder %v1069_v55, 0.0  ;;  %v1075_v59 = vmul.f32 0.25, %v1069_v55 }
 0x1be   : > { %v1080_v61 = vsel %vm4149_vm15, %v4153_v58, 0.0 }
 0x1bf   : > { %v1077_v60 = vsel %vm1073_vm0, %v1069_v55, %v1075_v59 }
 0x1c0   : > { %v1081_v62 = vsel %vm4149_vm15, %v1077_v60, 0.0  ;;  %v3736_v63 = vpack.c.bf16 %v1077_v60, %v4153_v58 }
 0x1c1   : > { %v1082_v1 = vpack.c.bf16 %v1081_v62, %v1080_v61 }
 0x1c3   : > { %1142 = vrot.lane.b32.xlu1 %v1082_v1, %s3898_s14  ;;  %1098 = vrot.lane.b32.xlu0 %v1082_v1, %s3900_s16 }
 0x1c7   : > { %1153 = vrot.lane.b32.xlu1 %v1082_v1, %s3901_s17  ;;  %1109 = vrot.lane.b32.xlu0 %v1082_v1, %s3903_s19 }
 0x1cb   : > { %1164 = vrot.lane.b32.xlu1 %v1082_v1, %s3904_s20  ;;  %1120 = vrot.lane.b32.xlu0 %v1082_v1, %s3899_s15 }
 0x1cf   : > { %1175 = vrot.lane.b32.xlu1 %v1082_v1, %s3905_s23  ;;  %1131 = vrot.lane.b32.xlu0 %v1082_v1, %s3902_s18 }
 0x1d3   : > { %1193 = vperm.xlu1 %3818, %v1088_v2   ;;  %1144 = vrot.lane.b32.xlu0 %v3897_v0, %s3898_s14  ;;  %v3852_v2 = vld [vmem:[%s5037_s5] sm:$0xff]  }
 0x1d7   : > { %1203 = vperm.xlu1 %3818, %v1090_v3   ;;  %1155 = vrot.lane.b32.xlu0 %v3897_v0, %s3901_s17 }
 0x1db   : > { %1317 = vperm.xlu1 %3818, %v1307_v5   ;;  %1166 = vrot.lane.b32.xlu0 %v3897_v0, %s3904_s20 }
 0x1df   : > { %1177 = vrot.lane.b32.xlu0 %v3897_v0, %s3905_s23  ;;  %1394 = vrot.lane.b32.xlu1 %v3897_v0, %s3900_s16 }
 0x1e3   : > { %1198 = vperm.xlu0 %3817, %v1089_v6   ;;  %1405 = vrot.lane.b32.xlu1 %v3897_v0, %s3903_s19 }
 0x1e7   : > { %1208 = vperm.xlu0 %3817, %v1091_v7   ;;  %1416 = vrot.lane.b32.xlu1 %v3897_v0, %s3899_s15 }
 0x1eb   : > { %1322 = vperm.xlu0 %3817, %v1308_v8   ;;  %1427 = vrot.lane.b32.xlu1 %v3897_v0, %s3902_s18 }
 0x235   : > { %v1099_v11 = vpop.permute.xlu0 %1098  ;;  %v1143_v21 = vpop.permute.xlu1 %1142 }
 0x236   : > { %v1100_v12 = vsel %vm529_vm3, %v1097_v9, %v1099_v11 }
 0x237   : > { %1237 = vmatpush1.bf16.msra.mxu0 %v1100_v12 }
 0x238   : > { %1238 = vmatprep.subr.bf16.mxu0 %v3897_v0 }
 0x239   : > { %v1110_v14 = vpop.permute.xlu0 %1109  ;;  %v1154_v24 = vpop.permute.xlu1 %1153 }
 0x23a   : > { %v1111_v15 = vsel %vm581_vm6, %v1108_v10, %v1110_v14 }
 0x23b   : > { %1239 = vmatpush1.bf16.msra.mxu0 %v1111_v15 }
 0x23c   : > { %1240 = vmatprep.subr.bf16.mxu0 %v3897_v0 }
 0x23d   : > { %v1121_v17 = vpop.permute.xlu0 %1120  ;;  %v1165_v29 = vpop.permute.xlu1 %1164 }
 0x23e   : > { %v1122_v18 = vsel %vm633_vm2, %v1119_v13, %v1121_v17 }
 0x23f   : > { %1241 = vmatpush1.bf16.msra.mxu0 %v1122_v18 }
 0x240   : > { %1242 = vmatprep.subr.bf16.mxu0 %v3897_v0 }
 0x241   : > { %v1132_v19 = vpop.permute.xlu0 %1131  ;;  %v1176_v32 = vpop.permute.xlu1 %1175 }
 0x242   : > { %v1133_v20 = vsel %vm685_vm5, %v1130_v16, %v1132_v19  ;;  %v1388_v19 = vld [vmem:[%s5040_s8] sm:$0xff] }
 0x243   : > { %1243 = vmatpush1.bf16.msra.mxu0 %v1133_v20  ;;  %v3853_v20 = vld [vmem:[%s5039_s7 + $0x4] ss:$8 sps:$4 sm:$0xff]  }
 0x244   : > { %1244 = vmatprep.subr.bf16.mxu0 %v3897_v0 }
 0x245   : > { %v1145_v23 = vpop.permute.xlu0 %1144 }
 0x246   : > { %v1146_v26 = vsel %vm764_vm1, %v1143_v21, %v1145_v23  ;;  %v1389_v21 = vld [vmem:[%s5040_s8 + $0x8] sm:$0xff] }
 0x247   : > { %3737 = vmatpush1.bf16.msk.msra.mxu0 %vm4218_vm10, %v3736_v63 }
 0x248   : > { %1246 = vmatprep.subr.bf16.mxu0 %v3897_v0 }
 0x249   : > { %v1156_v25 = vpop.permute.xlu0 %1155 }
 0x24a   : > { %v1157_v28 = vsel %vm816_vm4, %v1154_v24, %v1156_v25 }
 0x24b   : > { %1247 = vmatpush1.bf16.msra.mxu0 %v1146_v26 }
 0x24c   : > { %1248 = vmatprep.subr.bf16.mxu0 %v3897_v0 }
 0x24d   : > { %v1167_v27 = vpop.permute.xlu0 %1166 }
 0x24e   : > { %v1168_v30 = vsel %vm868_vm7, %v1165_v29, %v1167_v27 }
 0x24f   : > { %1249 = vmatpush1.bf16.msra.mxu0 %v1157_v28 }
 0x250   : > { %1250 = vmatprep.subr.bf16.mxu0 %v3897_v0 }
 0x251   : > { %v1178_v31 = vpop.permute.xlu0 %1177 }
 0x252   : > { %v1179_v33 = vsel %vm920_vm8, %v1176_v32, %v1178_v31  ;;  %v1194_v38 = vpop.permute.xlu1 %1193 }
 0x253   : > { %1251 = vmatpush1.bf16.msra.mxu0 %v1168_v30 }
 0x254   : > { %1252 = vmatprep.subr.bf16.mxu0 %v3897_v0 }
 0x256   : > { %v1204_v50 = vpop.permute.xlu1 %1203 }
 0x257   : > { %1253 = vmatpush1.bf16.msra.mxu0 %v1179_v33 }
 0x258   : > { %1689 = vmatprep.subr.bf16.mxu0 %v3897_v0 }
 0x25a   : > { %1269 = vmatmul.mubr.bf16.vlgmr.msra.gmra.mrb[4].mxu0 %v3848_v34  ;;  %v1318_v3 = vpop.permute.xlu1 %1317 }
 0x25b   : > { %3648 = vmatprep.mubr.msk.bf16.mxu0 %vm1229_vm9, %v3849_v35 }
 0x25e   : > { %v1395_v23 = vpop.permute.xlu1 %1394 }
 0x262   : > { %1277 = vmatmul.mubr.bf16.gmra.mrb[8].mxu0 %v3851_v36  ;;  %v1199_v42 = vpop.permute.xlu0 %1198  ;;  %v1406_v24 = vpop.permute.xlu1 %1405 }
 0x266   : > { %v1209_v55 = vpop.permute.xlu0 %1208  ;;  %v1417_v27 = vpop.permute.xlu1 %1416 }
 0x26a   : > { %v1323_v7 = vpop.permute.xlu0 %1322  ;;  %v1428_v30 = vpop.permute.xlu1 %1427 }
 0x32d   : > { %v1270_v39 = vpop.f32.mrb[4].mxu0 }
 0x32e   : > { %v1271_v40 = vadd.f32 %v1270_v39, %v1194_v38  ;;  %v1272_v41 = vpop.f32.mrb[5].mxu0 }
 0x32f   : > { %v1273_v43 = vpop.f32.mrb[6].mxu0 }
 0x330   : > { %v1289_v44 = vmul.f32 0.25, %v1271_v40  ;;  %v1274_v45 = vadd.f32 %v1273_v43, %v1199_v42  ;;  %v1275_v46 = vpop.f32.mrb[7].mxu0  ;;  %vm1285_vm12 = vcmp.ge.f32.partialorder %v1271_v40, 0.0 }
 0x332   : > { %vm1286_vm13 = vcmp.ge.f32.partialorder %v1274_v45, 0.0  ;;  %v1290_v47 = vmul.f32 0.25, %v1274_v45  ;;  %v1293_v48 = vsel %vm1285_vm12, %v1271_v40, %v1289_v44 }
 0x334   : > { %v1294_v49 = vsel %vm1286_vm13, %v1274_v45, %v1290_v47  ;;  %v3855_v47 = vld [vmem:[%s5039_s7] ss:$8 sps:$4 sm:$0xff]  }
 0x335   : > { %v3739_v51 = vpack.c.bf16 %v1294_v49, %v1293_v48  ;;  %v1278_v52 = vpop.f32.mrb[8].mxu0 }
 0x336   : > { %v1279_v53 = vadd.f32 %v1278_v52, %v1204_v50  ;;  %v1280_v54 = vpop.f32.mrb[9].mxu0 }
 0x337   : > { %v1281_v56 = vpop.f32.mrb[10].mxu0  ;;  %3788 = vmatpush3.bf16.msk.msra.mxu1 %vm4218_vm10, %v3739_v51 }
 0x338   : > { %v1291_v58 = vmul.f32 0.25, %v1279_v53  ;;  %v1282_v59 = vadd.f32 %v1281_v56, %v1209_v55  ;;  %v1283_v60 = vpop.f32.mrb[11].mxu0  ;;  %3789 = vmatprep.subr.bf16.mxu1 %v3906_v37  ;;  %vm1287_vm14 = vcmp.ge.f32.partialorder %v1279_v53, 0.0 }
 0x33a   : > { %vm1288_vm0 = vcmp.ge.f32.partialorder %v1282_v59, 0.0  ;;  %v1292_v61 = vmul.f32 0.25, %v1282_v59  ;;  %v1295_v62 = vsel %vm1287_vm14, %v1279_v53, %v1291_v58 }
 0x33c   : > { %v1296_v63 = vsel %vm1288_vm0, %v1282_v59, %v1292_v61 }
 0x33d   : > { %v3742_v1 = vpack.c.bf16 %v1296_v63, %v1295_v62 }
 0x33f   : > { %3790 = vmatpush3.bf16.msk.msra.mxu1 %vm4218_vm10, %v3742_v1 }
 0x340   : > { %1511 = vmatprep.subr.bf16.mxu1 %v3897_v0 }
 0x342   : > { %3792 = vmatmul.mubr.msk.bf16.vlgmr.msra.gmra.mrb[4].mxu1 %vm1330_vm11, %v3852_v2  ;;  %v3656_v2 = vld [vmem:[%s5040_s8 + $0x10] sm:$0xff] }
 0x343   : > { %3653 = vmatprep.mubr.msk.bf16.mxu1 %vm1229_vm9, %v3853_v20 }
 0x415   : > { %v1368_v4 = vpop.f32.mrb[4].mxu1 }
 0x416   : > { %v1369_v5 = vadd.f32 %v1368_v4, %v1318_v3  ;;  %v3793_v6 = vpop.f32.mrb[5].mxu1  ;;  %v3858_v3 = vld [vmem:[%s5039_s7 + $0x14] ss:$8 sps:$4 sm:$0xff]  }
 0x417   : > { %v1371_v8 = vpop.f32.mrb[6].mxu1  ;;  %3660 = vmatprep.mubr.msk.bf16.mxu0 %vm1229_vm9, %v3858_v3  ;;  %v3657_v4 = vld [vmem:[%s5040_s8 + $0x18] sm:$0xff] }
 0x418   : > { %vm1375_vm12 = vcmp.ge.f32.partialorder %v1369_v5, 0.0  ;;  %v1377_v9 = vmul.f32 0.25, %v1369_v5  ;;  %v1372_v10 = vadd.f32 %v1371_v8, %v1323_v7  ;;  %v3794_v11 = vpop.f32.mrb[7].mxu1 }
 0x41a   : > { %v1379_v12 = vsel %vm1375_vm12, %v1369_v5, %v1377_v9  ;;  %vm1376_vm13 = vcmp.ge.f32.partialorder %v1372_v10, 0.0  ;;  %v1378_v13 = vmul.f32 0.25, %v1372_v10 }
 0x41b   : > { %v1381_v15 = vsel %vm4149_vm15, %v1379_v12, 0.0 }
 0x41c   : > { %v1380_v14 = vsel %vm1376_vm13, %v1372_v10, %v1378_v13 }
 0x41d   : > { %v1382_v16 = vsel %vm4149_vm15, %v1380_v14, 0.0  ;;  %v3745_v17 = vpack.c.bf16 %v1380_v14, %v1379_v12 }
 0x41e   : > { %v4255_v18 = vpack.c.bf16 %v1382_v16, %v1381_v15 }
 0x420   : > { %1440 = vrot.lane.b32.xlu1 %v4255_v18, %s3898_s14  ;;  %1396 = vrot.lane.b32.xlu0 %v4255_v18, %s3900_s16 }
 0x424   : > { %1451 = vrot.lane.b32.xlu1 %v4255_v18, %s3901_s17  ;;  %1407 = vrot.lane.b32.xlu0 %v4255_v18, %s3903_s19 }
 0x428   : > { %1462 = vrot.lane.b32.xlu1 %v4255_v18, %s3904_s20  ;;  %1418 = vrot.lane.b32.xlu0 %v4255_v18, %s3899_s15 }
 0x42c   : > { %1473 = vrot.lane.b32.xlu1 %v4255_v18, %s3905_s23  ;;  %1429 = vrot.lane.b32.xlu0 %v4255_v18, %s3902_s18 }
 0x430   : > { %1491 = vperm.xlu1 %3818, %v1388_v19   ;;  %1442 = vrot.lane.b32.xlu0 %v3897_v0, %s3898_s14 }
 0x434   : > { %1453 = vrot.lane.b32.xlu0 %v3897_v0, %s3901_s17  ;;  %1572 = vrot.lane.b32.xlu1 %v3897_v0, %s3900_s16 }
 0x438   : > { %1464 = vrot.lane.b32.xlu0 %v3897_v0, %s3904_s20  ;;  %1583 = vrot.lane.b32.xlu1 %v3897_v0, %s3903_s19 }
 0x43c   : > { %1475 = vrot.lane.b32.xlu0 %v3897_v0, %s3905_s23  ;;  %1594 = vrot.lane.b32.xlu1 %v3897_v0, %s3899_s15 }
 0x440   : > { %1496 = vperm.xlu0 %3817, %v1389_v21   ;;  %1605 = vrot.lane.b32.xlu1 %v3897_v0, %s3902_s18 }
 0x492   : > { %v1397_v25 = vpop.permute.xlu0 %1396  ;;  %v1441_v35 = vpop.permute.xlu1 %1440 }
 0x493   : > { %v1398_v26 = vsel %vm529_vm3, %v1395_v23, %v1397_v25 }
 0x494   : > { %1512 = vmatpush1.bf16.msra.mxu1 %v1398_v26 }
 0x495   : > { %1513 = vmatprep.subr.bf16.mxu1 %v3897_v0 }
 0x496   : > { %v1408_v28 = vpop.permute.xlu0 %1407  ;;  %v1452_v37 = vpop.permute.xlu1 %1451 }
 0x497   : > { %v1409_v29 = vsel %vm581_vm6, %v1406_v24, %v1408_v28 }
 0x498   : > { %1514 = vmatpush1.bf16.msra.mxu1 %v1409_v29 }
 0x499   : > { %1515 = vmatprep.subr.bf16.mxu1 %v3897_v0 }
 0x49a   : > { %v1419_v31 = vpop.permute.xlu0 %1418  ;;  %v1463_v42 = vpop.permute.xlu1 %1462 }
 0x49b   : > { %v1420_v32 = vsel %vm633_vm2, %v1417_v27, %v1419_v31  ;;  %v3856_v31 = vld [vmem:[%s5039_s7 + $0x10] ss:$8 sps:$4 sm:$0xff]  }
 0x49c   : > { %1516 = vmatpush1.bf16.msra.mxu1 %v1420_v32 }
 0x49d   : > { %1517 = vmatprep.subr.bf16.mxu1 %v3897_v0 }
 0x49e   : > { %v1430_v33 = vpop.permute.xlu0 %1429  ;;  %v1474_v45 = vpop.permute.xlu1 %1473 }
 0x49f   : > { %v1431_v34 = vsel %vm685_vm5, %v1428_v30, %v1430_v33 }
 0x4a0   : > { %1518 = vmatpush1.bf16.msra.mxu1 %v1431_v34 }
 0x4a1   : > { %1519 = vmatprep.subr.bf16.mxu1 %v3897_v0 }
 0x4a2   : > { %v1443_v36 = vpop.permute.xlu0 %1442 }
 0x4a3   : > { %v1444_v39 = vsel %vm764_vm1, %v1441_v35, %v1443_v36 }
 0x4a4   : > { %3746 = vmatpush1.bf16.msk.msra.mxu1 %vm4218_vm10, %v3745_v17 }
 0x4a5   : > { %1521 = vmatprep.subr.bf16.mxu1 %v3897_v0 }
 0x4a6   : > { %v1454_v38 = vpop.permute.xlu0 %1453 }
 0x4a7   : > { %v1455_v41 = vsel %vm816_vm4, %v1452_v37, %v1454_v38 }
 0x4a8   : > { %1522 = vmatpush1.bf16.msra.mxu1 %v1444_v39 }
 0x4a9   : > { %1523 = vmatprep.subr.bf16.mxu1 %v3897_v0 }
 0x4aa   : > { %v1465_v40 = vpop.permute.xlu0 %1464 }
 0x4ab   : > { %v1466_v43 = vsel %vm868_vm7, %v1463_v42, %v1465_v40  ;;  %v1734_v42 = vunpack.c.h.bf16 %v4255_v18 }
 0x4ac   : > { %1524 = vmatpush1.bf16.msra.mxu1 %v1455_v41  ;;  %v1733_v41 = vunpack.c.l.bf16 %v4255_v18  ;;  %v3342_v18 = vld [vmem:[%s5044_s12] sm:$0xff] }
 0x4ad   : > { %1525 = vmatprep.subr.bf16.mxu1 %v3897_v0 }
 0x4ae   : > { %v1476_v44 = vpop.permute.xlu0 %1475 }
 0x4af   : > { %v1477_v46 = vsel %vm920_vm8, %v1474_v45, %v1476_v44  ;;  %v1492_v48 = vpop.permute.xlu1 %1491 }
 0x4b0   : > { %1526 = vmatpush1.bf16.msra.mxu1 %v1466_v43 }
 0x4b1   : > { %1527 = vmatprep.subr.bf16.mxu1 %v3897_v0 }
 0x4b3   : > { %v1573_v5 = vpop.permute.xlu1 %1572 }
 0x4b4   : > { %1528 = vmatpush1.bf16.msra.mxu1 %v1477_v46 }
 0x4b5   : > { %1866 = vmatprep.subr.bf16.mxu1 %v3897_v0 }
 0x4b7   : > { %1544 = vmatmul.mubr.bf16.vlgmr.msra.gmra.mrb[8].mxu1 %v3855_v47  ;;  %v1584_v6 = vpop.permute.xlu1 %1583  ;;  %v3663_v47 = vld [vmem:[%s5040_s8 + $0x20] sm:$0xff] }
 0x4bb   : > { %v1595_v9 = vpop.permute.xlu1 %1594 }
 0x4bf   : > { %v1497_v52 = vpop.permute.xlu0 %1496  ;;  %v1606_v12 = vpop.permute.xlu1 %1605 }
 0x58a   : > { %v1545_v49 = vpop.f32.mrb[8].mxu1 }
 0x58b   : > { %v1546_v50 = vadd.f32 %v1545_v49, %v1492_v48  ;;  %v1547_v51 = vpop.f32.mrb[9].mxu1  ;;  %v3859_v48 = vld [vmem:[%s5039_s7 + $0x24] ss:$8 sps:$4 sm:$0xff]  }
 0x58c   : > { %v1548_v53 = vpop.f32.mrb[10].mxu1  ;;  %3667 = vmatprep.mubr.msk.bf16.mxu1 %vm1229_vm9, %v3859_v48  ;;  %v3664_v49 = vld [vmem:[%s5040_s8 + $0x28] sm:$0xff] }
 0x58d   : > { %vm1552_vm14 = vcmp.ge.f32.partialorder %v1546_v50, 0.0  ;;  %v1554_v54 = vmul.f32 0.25, %v1546_v50  ;;  %v1549_v55 = vadd.f32 %v1548_v53, %v1497_v52  ;;  %v1550_v56 = vpop.f32.mrb[11].mxu1 }
 0x58f   : > { %v1556_v58 = vsel %vm1552_vm14, %v1546_v50, %v1554_v54  ;;  %vm1553_vm0 = vcmp.ge.f32.partialorder %v1549_v55, 0.0  ;;  %v1555_v59 = vmul.f32 0.25, %v1549_v55 }
 0x590   : > { %v1558_v61 = vsel %vm4149_vm15, %v1556_v58, 0.0 }
 0x591   : > { %v1557_v60 = vsel %vm1553_vm0, %v1549_v55, %v1555_v59 }
 0x592   : > { %v1559_v62 = vsel %vm4149_vm15, %v1557_v60, 0.0  ;;  %v3748_v63 = vpack.c.bf16 %v1557_v60, %v1556_v58 }
 0x593   : > { %v1560_v1 = vpack.c.bf16 %v1559_v62, %v1558_v61 }
 0x595   : > { %1618 = vrot.lane.b32.xlu1 %v1560_v1, %s3898_s14  ;;  %1574 = vrot.lane.b32.xlu0 %v1560_v1, %s3900_s16 }
 0x599   : > { %1629 = vrot.lane.b32.xlu1 %v1560_v1, %s3901_s17  ;;  %1585 = vrot.lane.b32.xlu0 %v1560_v1, %s3903_s19 }
 0x59d   : > { %1640 = vrot.lane.b32.xlu1 %v1560_v1, %s3904_s20  ;;  %1596 = vrot.lane.b32.xlu0 %v1560_v1, %s3899_s15 }
 0x5a1   : > { %1651 = vrot.lane.b32.xlu1 %v1560_v1, %s3905_s23  ;;  %1607 = vrot.lane.b32.xlu0 %v1560_v1, %s3902_s18 }
 0x5a5   : > { %1669 = vperm.xlu1 %3818, %v3656_v2   ;;  %1620 = vrot.lane.b32.xlu0 %v3897_v0, %s3898_s14 }
 0x5a9   : > { %1631 = vrot.lane.b32.xlu0 %v3897_v0, %s3901_s17  ;;  %1749 = vrot.lane.b32.xlu1 %v3897_v0, %s3900_s16 }
 0x5ad   : > { %1642 = vrot.lane.b32.xlu0 %v3897_v0, %s3904_s20  ;;  %1760 = vrot.lane.b32.xlu1 %v3897_v0, %s3903_s19 }
 0x5b1   : > { %1653 = vrot.lane.b32.xlu0 %v3897_v0, %s3905_s23  ;;  %1771 = vrot.lane.b32.xlu1 %v3897_v0, %s3899_s15 }
 0x5b5   : > { %1674 = vperm.xlu0 %3817, %v3657_v4   ;;  %1782 = vrot.lane.b32.xlu1 %v3897_v0, %s3902_s18 }
 0x607   : > { %v1575_v7 = vpop.permute.xlu0 %1574  ;;  %v1619_v17 = vpop.permute.xlu1 %1618 }
 0x608   : > { %v1576_v8 = vsel %vm529_vm3, %v1573_v5, %v1575_v7 }
 0x609   : > { %1690 = vmatpush1.bf16.msra.mxu0 %v1576_v8 }
 0x60a   : > { %1691 = vmatprep.subr.bf16.mxu0 %v3897_v0 }
 0x60b   : > { %v1586_v10 = vpop.permute.xlu0 %1585  ;;  %v1630_v20 = vpop.permute.xlu1 %1629 }
 0x60c   : > { %v1587_v11 = vsel %vm581_vm6, %v1584_v6, %v1586_v10 }
 0x60d   : > { %1692 = vmatpush1.bf16.msra.mxu0 %v1587_v11 }
 0x60e   : > { %1693 = vmatprep.subr.bf16.mxu0 %v3897_v0 }
 0x60f   : > { %v1597_v13 = vpop.permute.xlu0 %1596  ;;  %v1641_v26 = vpop.permute.xlu1 %1640 }
 0x610   : > { %v1598_v14 = vsel %vm633_vm2, %v1595_v9, %v1597_v13 }
 0x611   : > { %1694 = vmatpush1.bf16.msra.mxu0 %v1598_v14 }
 0x612   : > { %1695 = vmatprep.subr.bf16.mxu0 %v3897_v0 }
 0x613   : > { %v1608_v15 = vpop.permute.xlu0 %1607  ;;  %v1652_v29 = vpop.permute.xlu1 %1651 }
 0x614   : > { %v1609_v16 = vsel %vm685_vm5, %v1606_v12, %v1608_v15  ;;  %v3861_v12 = vld [vmem:[%s5039_s7 + $0x20] ss:$8 sps:$4 sm:$0xff]  }
 0x615   : > { %1696 = vmatpush1.bf16.msra.mxu0 %v1609_v16 }
 0x616   : > { %1697 = vmatprep.subr.bf16.mxu0 %v3897_v0 }
 0x617   : > { %v1621_v19 = vpop.permute.xlu0 %1620 }
 0x618   : > { %v1622_v23 = vsel %vm764_vm1, %v1619_v17, %v1621_v19 }
 0x619   : > { %3749 = vmatpush1.bf16.msk.msra.mxu0 %vm4218_vm10, %v3748_v63 }
 0x61a   : > { %1699 = vmatprep.subr.bf16.mxu0 %v3897_v0 }
 0x61b   : > { %v1632_v21 = vpop.permute.xlu0 %1631 }
 0x61c   : > { %v1633_v25 = vsel %vm816_vm4, %v1630_v20, %v1632_v21 }
 0x61d   : > { %1700 = vmatpush1.bf16.msra.mxu0 %v1622_v23 }
 0x61e   : > { %1701 = vmatprep.subr.bf16.mxu0 %v3897_v0 }
 0x61f   : > { %v1643_v24 = vpop.permute.xlu0 %1642 }
 0x620   : > { %v1644_v27 = vsel %vm868_vm7, %v1641_v26, %v1643_v24 }
 0x621   : > { %1702 = vmatpush1.bf16.msra.mxu0 %v1633_v25 }
 0x622   : > { %1703 = vmatprep.subr.bf16.mxu0 %v3897_v0 }
 0x623   : > { %v1654_v28 = vpop.permute.xlu0 %1653 }
 0x624   : > { %v1655_v30 = vsel %vm920_vm8, %v1652_v29, %v1654_v28  ;;  %v1670_v32 = vpop.permute.xlu1 %1669 }
 0x625   : > { %1704 = vmatpush1.bf16.msra.mxu0 %v1644_v27 }
 0x626   : > { %1705 = vmatprep.subr.bf16.mxu0 %v3897_v0 }
 0x628   : > { %v1750_v50 = vpop.permute.xlu1 %1749 }
 0x629   : > { %1706 = vmatpush1.bf16.msra.mxu0 %v1655_v30 }
 0x62a   : > { %2044 = vmatprep.subr.bf16.mxu0 %v3897_v0 }
 0x62c   : > { %1722 = vmatmul.mubr.bf16.vlgmr.msra.gmra.mrb[12].mxu0 %v3856_v31  ;;  %v1761_v51 = vpop.permute.xlu1 %1760  ;;  %v3670_v31 = vld [vmem:[%s5040_s8 + $0x30] sm:$0xff] }
 0x630   : > { %v1772_v54 = vpop.permute.xlu1 %1771 }
 0x634   : > { %v1675_v36 = vpop.permute.xlu0 %1674  ;;  %v1783_v58 = vpop.permute.xlu1 %1782 }
 0x6ff   : > { %v1723_v33 = vpop.f32.mrb[12].mxu0 }
 0x700   : > { %v1724_v34 = vadd.f32 %v1723_v33, %v1670_v32  ;;  %v1725_v35 = vpop.f32.mrb[13].mxu0  ;;  %v3862_v32 = vld [vmem:[%s5039_s7 + $0x34] ss:$8 sps:$4 sm:$0xff]  }
 0x701   : > { %v1726_v37 = vpop.f32.mrb[14].mxu0  ;;  %3674 = vmatprep.mubr.msk.bf16.mxu0 %vm1229_vm9, %v3862_v32  ;;  %v3671_v33 = vld [vmem:[%s5040_s8 + $0x38] sm:$0xff] }
 0x702   : > { %v1730_v38 = vsel %vm4149_vm15, %v1724_v34, 0.0  ;;  %v1727_v39 = vadd.f32 %v1726_v37, %v1675_v36  ;;  %v1728_v40 = vpop.f32.mrb[15].mxu0 }
 0x703   : > { %v1735_v44 = vadd.f32 %v1733_v41, %v1730_v38 }
 0x704   : > { %v1731_v43 = vsel %vm4149_vm15, %v1727_v39, 0.0 }
 0x705   : > { %v1736_v45 = vadd.f32 %v1734_v42, %v1731_v43 }
 0x707   : > { %v4391_v46 = vpack.c.bf16 %v1736_v45, %v1735_v44 }
 0x709   : > { %1795 = vrot.lane.b32.xlu1 %v4391_v46, %s3898_s14  ;;  %1751 = vrot.lane.b32.xlu0 %v4391_v46, %s3900_s16 }
 0x70d   : > { %1806 = vrot.lane.b32.xlu1 %v4391_v46, %s3901_s17  ;;  %1762 = vrot.lane.b32.xlu0 %v4391_v46, %s3903_s19 }
 0x711   : > { %1817 = vrot.lane.b32.xlu1 %v4391_v46, %s3904_s20  ;;  %1773 = vrot.lane.b32.xlu0 %v4391_v46, %s3899_s15 }
 0x715   : > { %1828 = vrot.lane.b32.xlu1 %v4391_v46, %s3905_s23  ;;  %1784 = vrot.lane.b32.xlu0 %v4391_v46, %s3902_s18 }
 0x719   : > { %1846 = vperm.xlu1 %3818, %v3663_v47   ;;  %1797 = vrot.lane.b32.xlu0 %v3897_v0, %s3898_s14 }
 0x71d   : > { %1808 = vrot.lane.b32.xlu0 %v3897_v0, %s3901_s17  ;;  %1927 = vrot.lane.b32.xlu1 %v3897_v0, %s3900_s16 }
 0x721   : > { %1819 = vrot.lane.b32.xlu0 %v3897_v0, %s3904_s20  ;;  %1938 = vrot.lane.b32.xlu1 %v3897_v0, %s3903_s19 }
 0x725   : > { %1830 = vrot.lane.b32.xlu0 %v3897_v0, %s3905_s23  ;;  %1949 = vrot.lane.b32.xlu1 %v3897_v0, %s3899_s15 }
 0x729   : > { %1851 = vperm.xlu0 %3817, %v3664_v49   ;;  %1960 = vrot.lane.b32.xlu1 %v3897_v0, %s3902_s18 }
 0x77b   : > { %v1752_v52 = vpop.permute.xlu0 %1751  ;;  %v1796_v63 = vpop.permute.xlu1 %1795 }
 0x77c   : > { %v1753_v53 = vsel %vm529_vm3, %v1750_v50, %v1752_v52 }
 0x77d   : > { %1867 = vmatpush1.bf16.msra.mxu1 %v1753_v53 }
 0x77e   : > { %1868 = vmatprep.subr.bf16.mxu1 %v3897_v0 }
 0x77f   : > { %v1763_v55 = vpop.permute.xlu0 %1762  ;;  %v1807_v2 = vpop.permute.xlu1 %1806 }
 0x780   : > { %v1764_v56 = vsel %vm581_vm6, %v1761_v51, %v1763_v55 }
 0x781   : > { %1869 = vmatpush1.bf16.msra.mxu1 %v1764_v56 }
 0x782   : > { %1870 = vmatprep.subr.bf16.mxu1 %v3897_v0 }
 0x783   : > { %v1774_v59 = vpop.permute.xlu0 %1773  ;;  %v1818_v7 = vpop.permute.xlu1 %1817 }
 0x784   : > { %v1775_v60 = vsel %vm633_vm2, %v1772_v54, %v1774_v59 }
 0x785   : > { %1871 = vmatpush1.bf16.msra.mxu1 %v1775_v60 }
 0x786   : > { %1872 = vmatprep.subr.bf16.mxu1 %v3897_v0 }
 0x787   : > { %v1785_v61 = vpop.permute.xlu0 %1784  ;;  %v1829_v10 = vpop.permute.xlu1 %1828 }
 0x788   : > { %v1786_v62 = vsel %vm685_vm5, %v1783_v58, %v1785_v61 }
 0x789   : > { %1873 = vmatpush1.bf16.msra.mxu1 %v1786_v62  ;;  %v3864_v62 = vld [vmem:[%s5039_s7 + $0x30] ss:$8 sps:$4 sm:$0xff]  }
 0x78a   : > { %1874 = vmatprep.subr.bf16.mxu1 %v3897_v0 }
 0x78b   : > { %v1798_v1 = vpop.permute.xlu0 %1797 }
 0x78c   : > { %v1799_v4 = vsel %vm764_vm1, %v1796_v63, %v1798_v1 }
 0x78d   : > { %1875 = vmatpush1.bf16.msra.mxu1 %v4391_v46 }
 0x78e   : > { %1876 = vmatprep.subr.bf16.mxu1 %v3897_v0 }
 0x78f   : > { %v1809_v3 = vpop.permute.xlu0 %1808 }
 0x790   : > { %v1810_v6 = vsel %vm816_vm4, %v1807_v2, %v1809_v3 }
 0x791   : > { %1877 = vmatpush1.bf16.msra.mxu1 %v1799_v4 }
 0x792   : > { %1878 = vmatprep.subr.bf16.mxu1 %v3897_v0 }
 0x793   : > { %v1820_v5 = vpop.permute.xlu0 %1819 }
 0x794   : > { %v1821_v8 = vsel %vm868_vm7, %v1818_v7, %v1820_v5 }
 0x795   : > { %1879 = vmatpush1.bf16.msra.mxu1 %v1810_v6 }
 0x796   : > { %1880 = vmatprep.subr.bf16.mxu1 %v3897_v0 }
 0x797   : > { %v1831_v9 = vpop.permute.xlu0 %1830 }
 0x798   : > { %v1832_v11 = vsel %vm920_vm8, %v1829_v10, %v1831_v9  ;;  %v1847_v13 = vpop.permute.xlu1 %1846  ;;  %v2088_v9 = vunpack.c.l.bf16 %v4391_v46  ;;  %v2089_v10 = vunpack.c.h.bf16 %v4391_v46  ;;  %v3677_v46 = vld [vmem:[%s5040_s8 + $0x40] sm:$0xff] }
 0x799   : > { %1881 = vmatpush1.bf16.msra.mxu1 %v1821_v8 }
 0x79a   : > { %1882 = vmatprep.subr.bf16.mxu1 %v3897_v0 }
 0x79c   : > { %v1928_v34 = vpop.permute.xlu1 %1927 }
 0x79d   : > { %1883 = vmatpush1.bf16.msra.mxu1 %v1832_v11 }
 0x79e   : > { %2221 = vmatprep.subr.bf16.mxu1 %v3897_v0 }
 0x7a0   : > { %1899 = vmatmul.mubr.bf16.vlgmr.msra.gmra.mrb[12].mxu1 %v3861_v12  ;;  %v1939_v35 = vpop.permute.xlu1 %1938 }
 0x7a4   : > { %v1950_v38 = vpop.permute.xlu1 %1949 }
 0x7a8   : > { %v1852_v17 = vpop.permute.xlu0 %1851  ;;  %v1961_v43 = vpop.permute.xlu1 %1960 }
 0x873   : > { %v1900_v14 = vpop.f32.mrb[12].mxu1 }
 0x874   : > { %v1901_v15 = vadd.f32 %v1900_v14, %v1847_v13  ;;  %v1902_v16 = vpop.f32.mrb[13].mxu1 }
 0x875   : > { %v1903_v19 = vpop.f32.mrb[14].mxu1  ;;  %v3678_v16 = vld [vmem:[%s5040_s8 + $0x48] sm:$0xff] }
 0x876   : > { %vm1907_vm11 = vcmp.ge.f32.partialorder %v1901_v15, 0.0  ;;  %v1909_v20 = vmul.f32 0.25, %v1901_v15  ;;  %v1904_v21 = vadd.f32 %v1903_v19, %v1852_v17  ;;  %v1905_v23 = vpop.f32.mrb[15].mxu1 }
 0x878   : > { %v1911_v24 = vsel %vm1907_vm11, %v1901_v15, %v1909_v20  ;;  %vm1908_vm12 = vcmp.ge.f32.partialorder %v1904_v21, 0.0  ;;  %v1910_v25 = vmul.f32 0.25, %v1904_v21  ;;  %v3865_v15 = vld [vmem:[%s5039_s7 + $0x44] ss:$8 sps:$4 sm:$0xff]  }
 0x879   : > { %v1913_v27 = vsel %vm4149_vm15, %v1911_v24, 0.0  ;;  %3681 = vmatprep.mubr.msk.bf16.mxu1 %vm1229_vm9, %v3865_v15 }
 0x87a   : > { %v1912_v26 = vsel %vm1908_vm12, %v1904_v21, %v1910_v25 }
 0x87b   : > { %v1914_v28 = vsel %vm4149_vm15, %v1912_v26, 0.0  ;;  %v3751_v29 = vpack.c.bf16 %v1912_v26, %v1911_v24 }
 0x87c   : > { %v1915_v30 = vpack.c.bf16 %v1914_v28, %v1913_v27 }
 0x87e   : > { %1973 = vrot.lane.b32.xlu1 %v1915_v30, %s3898_s14  ;;  %1929 = vrot.lane.b32.xlu0 %v1915_v30, %s3900_s16 }
 0x882   : > { %1984 = vrot.lane.b32.xlu1 %v1915_v30, %s3901_s17  ;;  %1940 = vrot.lane.b32.xlu0 %v1915_v30, %s3903_s19 }
 0x886   : > { %1995 = vrot.lane.b32.xlu1 %v1915_v30, %s3904_s20  ;;  %1951 = vrot.lane.b32.xlu0 %v1915_v30, %s3899_s15 }
 0x88a   : > { %2006 = vrot.lane.b32.xlu1 %v1915_v30, %s3905_s23  ;;  %1962 = vrot.lane.b32.xlu0 %v1915_v30, %s3902_s18 }
 0x88e   : > { %2024 = vperm.xlu1 %3818, %v3670_v31   ;;  %1975 = vrot.lane.b32.xlu0 %v3897_v0, %s3898_s14 }
 0x892   : > { %1986 = vrot.lane.b32.xlu0 %v3897_v0, %s3901_s17  ;;  %2104 = vrot.lane.b32.xlu1 %v3897_v0, %s3900_s16 }
 0x896   : > { %1997 = vrot.lane.b32.xlu0 %v3897_v0, %s3904_s20  ;;  %2115 = vrot.lane.b32.xlu1 %v3897_v0, %s3903_s19 }
 0x89a   : > { %2008 = vrot.lane.b32.xlu0 %v3897_v0, %s3905_s23  ;;  %2126 = vrot.lane.b32.xlu1 %v3897_v0, %s3899_s15 }
 0x89e   : > { %2029 = vperm.xlu0 %3817, %v3671_v33   ;;  %2137 = vrot.lane.b32.xlu1 %v3897_v0, %s3902_s18 }
 0x8f0   : > { %v1930_v36 = vpop.permute.xlu0 %1929  ;;  %v1974_v49 = vpop.permute.xlu1 %1973 }
 0x8f1   : > { %v1931_v37 = vsel %vm529_vm3, %v1928_v34, %v1930_v36 }
 0x8f2   : > { %2045 = vmatpush1.bf16.msra.mxu0 %v1931_v37 }
 0x8f3   : > { %2046 = vmatprep.subr.bf16.mxu0 %v3897_v0 }
 0x8f4   : > { %v1941_v39 = vpop.permute.xlu0 %1940  ;;  %v1985_v51 = vpop.permute.xlu1 %1984 }
 0x8f5   : > { %v1942_v40 = vsel %vm581_vm6, %v1939_v35, %v1941_v39 }
 0x8f6   : > { %2047 = vmatpush1.bf16.msra.mxu0 %v1942_v40 }
 0x8f7   : > { %2048 = vmatprep.subr.bf16.mxu0 %v3897_v0 }
 0x8f8   : > { %v1952_v44 = vpop.permute.xlu0 %1951  ;;  %v1996_v56 = vpop.permute.xlu1 %1995 }
 0x8f9   : > { %v1953_v45 = vsel %vm633_vm2, %v1950_v38, %v1952_v44 }
 0x8fa   : > { %2049 = vmatpush1.bf16.msra.mxu0 %v1953_v45  ;;  %v3867_v45 = vld [vmem:[%s5039_s7 + $0x40] ss:$8 sps:$4 sm:$0xff]  }
 0x8fb   : > { %2050 = vmatprep.subr.bf16.mxu0 %v3897_v0 }
 0x8fc   : > { %v1963_v47 = vpop.permute.xlu0 %1962  ;;  %v2007_v60 = vpop.permute.xlu1 %2006 }
 0x8fd   : > { %v1964_v48 = vsel %vm685_vm5, %v1961_v43, %v1963_v47 }
 0x8fe   : > { %2051 = vmatpush1.bf16.msra.mxu0 %v1964_v48 }
 0x8ff   : > { %2052 = vmatprep.subr.bf16.mxu0 %v3897_v0 }
 0x900   : > { %v1976_v50 = vpop.permute.xlu0 %1975 }
 0x901   : > { %v1977_v53 = vsel %vm764_vm1, %v1974_v49, %v1976_v50 }
 0x902   : > { %3752 = vmatpush1.bf16.msk.msra.mxu0 %vm4218_vm10, %v3751_v29 }
 0x903   : > { %2054 = vmatprep.subr.bf16.mxu0 %v3897_v0 }
 0x904   : > { %v1987_v52 = vpop.permute.xlu0 %1986 }
 0x905   : > { %v1988_v55 = vsel %vm816_vm4, %v1985_v51, %v1987_v52 }
 0x906   : > { %2055 = vmatpush1.bf16.msra.mxu0 %v1977_v53 }
 0x907   : > { %2056 = vmatprep.subr.bf16.mxu0 %v3897_v0 }
 0x908   : > { %v1998_v54 = vpop.permute.xlu0 %1997 }
 0x909   : > { %v1999_v58 = vsel %vm868_vm7, %v1996_v56, %v1998_v54 }
 0x90a   : > { %2057 = vmatpush1.bf16.msra.mxu0 %v1988_v55 }
 0x90b   : > { %2058 = vmatprep.subr.bf16.mxu0 %v3897_v0 }
 0x90c   : > { %v2009_v59 = vpop.permute.xlu0 %2008 }
 0x90d   : > { %v2010_v61 = vsel %vm920_vm8, %v2007_v60, %v2009_v59  ;;  %v2025_v63 = vpop.permute.xlu1 %2024 }
 0x90e   : > { %2059 = vmatpush1.bf16.msra.mxu0 %v1999_v58 }
 0x90f   : > { %2060 = vmatprep.subr.bf16.mxu0 %v3897_v0 }
 0x911   : > { %v2105_v17 = vpop.permute.xlu1 %2104 }
 0x912   : > { %2061 = vmatpush1.bf16.msra.mxu0 %v2010_v61 }
 0x913   : > { %2399 = vmatprep.subr.bf16.mxu0 %v3897_v0 }
 0x915   : > { %2077 = vmatmul.mubr.bf16.vlgmr.msra.gmra.mrb[16].mxu0 %v3864_v62  ;;  %v2116_v19 = vpop.permute.xlu1 %2115 }
 0x919   : > { %v2127_v23 = vpop.permute.xlu1 %2126 }
 0x91d   : > { %v2030_v4 = vpop.permute.xlu0 %2029  ;;  %v2138_v26 = vpop.permute.xlu1 %2137 }
 0x9e8   : > { %v2078_v1 = vpop.f32.mrb[16].mxu0 }
 0x9e9   : > { %v2079_v2 = vadd.f32 %v2078_v1, %v2025_v63  ;;  %v2080_v3 = vpop.f32.mrb[17].mxu0  ;;  %v3684_v1 = vld [vmem:[%s5040_s8 + $0x50] sm:$0xff] }
 0x9ea   : > { %v2081_v5 = vpop.f32.mrb[18].mxu0  ;;  %v3685_v3 = vld [vmem:[%s5040_s8 + $0x58] sm:$0xff] }
 0x9eb   : > { %v2085_v6 = vsel %vm4149_vm15, %v2079_v2, 0.0  ;;  %v2082_v7 = vadd.f32 %v2081_v5, %v2030_v4  ;;  %v2083_v8 = vpop.f32.mrb[19].mxu0  ;;  %v3868_v2 = vld [vmem:[%s5039_s7 + $0x54] ss:$8 sps:$4 sm:$0xff]  }
 0x9ec   : > { %v2090_v12 = vadd.f32 %v2088_v9, %v2085_v6  ;;  %3688 = vmatprep.mubr.msk.bf16.mxu0 %vm1229_vm9, %v3868_v2 }
 0x9ed   : > { %v2086_v11 = vsel %vm4149_vm15, %v2082_v7, 0.0 }
 0x9ee   : > { %v2091_v13 = vadd.f32 %v2089_v10, %v2086_v11 }
 0x9f0   : > { %v4522_v14 = vpack.c.bf16 %v2091_v13, %v2090_v12 }
 0x9f2   : > { %2150 = vrot.lane.b32.xlu1 %v4522_v14, %s3898_s14  ;;  %2106 = vrot.lane.b32.xlu0 %v4522_v14, %s3900_s16 }
 0x9f6   : > { %2161 = vrot.lane.b32.xlu1 %v4522_v14, %s3901_s17  ;;  %2117 = vrot.lane.b32.xlu0 %v4522_v14, %s3903_s19 }
 0x9fa   : > { %2172 = vrot.lane.b32.xlu1 %v4522_v14, %s3904_s20  ;;  %2128 = vrot.lane.b32.xlu0 %v4522_v14, %s3899_s15 }
 0x9fe   : > { %2183 = vrot.lane.b32.xlu1 %v4522_v14, %s3905_s23  ;;  %2139 = vrot.lane.b32.xlu0 %v4522_v14, %s3902_s18 }
 0xa02   : > { %2201 = vperm.xlu1 %3818, %v3677_v46   ;;  %2152 = vrot.lane.b32.xlu0 %v3897_v0, %s3898_s14 }
 0xa06   : > { %2163 = vrot.lane.b32.xlu0 %v3897_v0, %s3901_s17  ;;  %2282 = vrot.lane.b32.xlu1 %v3897_v0, %s3900_s16 }
 0xa0a   : > { %2174 = vrot.lane.b32.xlu0 %v3897_v0, %s3904_s20  ;;  %2293 = vrot.lane.b32.xlu1 %v3897_v0, %s3903_s19 }
 0xa0e   : > { %2185 = vrot.lane.b32.xlu0 %v3897_v0, %s3905_s23  ;;  %2304 = vrot.lane.b32.xlu1 %v3897_v0, %s3899_s15 }
 0xa12   : > { %2206 = vperm.xlu0 %3817, %v3678_v16   ;;  %2315 = vrot.lane.b32.xlu1 %v3897_v0, %s3902_s18 }
 0xa64   : > { %v2107_v20 = vpop.permute.xlu0 %2106  ;;  %v2151_v31 = vpop.permute.xlu1 %2150 }
 0xa65   : > { %v2108_v21 = vsel %vm529_vm3, %v2105_v17, %v2107_v20 }
 0xa66   : > { %2222 = vmatpush1.bf16.msra.mxu1 %v2108_v21 }
 0xa67   : > { %2223 = vmatprep.subr.bf16.mxu1 %v3897_v0 }
 0xa68   : > { %v2118_v24 = vpop.permute.xlu0 %2117  ;;  %v2162_v33 = vpop.permute.xlu1 %2161 }
 0xa69   : > { %v2119_v25 = vsel %vm581_vm6, %v2116_v19, %v2118_v24 }
 0xa6a   : > { %2224 = vmatpush1.bf16.msra.mxu1 %v2119_v25 }
 0xa6b   : > { %2225 = vmatprep.subr.bf16.mxu1 %v3897_v0 }
 0xa6c   : > { %v2129_v27 = vpop.permute.xlu0 %2128  ;;  %v2173_v38 = vpop.permute.xlu1 %2172 }
 0xa6d   : > { %v2130_v28 = vsel %vm633_vm2, %v2127_v23, %v2129_v27 }
 0xa6e   : > { %2226 = vmatpush1.bf16.msra.mxu1 %v2130_v28 }
 0xa6f   : > { %2227 = vmatprep.subr.bf16.mxu1 %v3897_v0 }
 0xa70   : > { %v2140_v29 = vpop.permute.xlu0 %2139  ;;  %v2184_v43 = vpop.permute.xlu1 %2183 }
 0xa71   : > { %v2141_v30 = vsel %vm685_vm5, %v2138_v26, %v2140_v29 }
 0xa72   : > { %2228 = vmatpush1.bf16.msra.mxu1 %v2141_v30  ;;  %v3870_v30 = vld [vmem:[%s5039_s7 + $0x50] ss:$8 sps:$4 sm:$0xff]  }
 0xa73   : > { %2229 = vmatprep.subr.bf16.mxu1 %v3897_v0 }
 0xa74   : > { %v2153_v32 = vpop.permute.xlu0 %2152 }
 0xa75   : > { %v2154_v35 = vsel %vm764_vm1, %v2151_v31, %v2153_v32 }
 0xa76   : > { %2230 = vmatpush1.bf16.msra.mxu1 %v4522_v14 }
 0xa77   : > { %2231 = vmatprep.subr.bf16.mxu1 %v3897_v0 }
 0xa78   : > { %v2164_v34 = vpop.permute.xlu0 %2163 }
 0xa79   : > { %v2165_v37 = vsel %vm816_vm4, %v2162_v33, %v2164_v34 }
 0xa7a   : > { %2232 = vmatpush1.bf16.msra.mxu1 %v2154_v35 }
 0xa7b   : > { %2233 = vmatprep.subr.bf16.mxu1 %v3897_v0 }
 0xa7c   : > { %v2175_v36 = vpop.permute.xlu0 %2174 }
 0xa7d   : > { %v2176_v39 = vsel %vm868_vm7, %v2173_v38, %v2175_v36 }
 0xa7e   : > { %2234 = vmatpush1.bf16.msra.mxu1 %v2165_v37 }
 0xa7f   : > { %2235 = vmatprep.subr.bf16.mxu1 %v3897_v0 }
 0xa80   : > { %v2186_v40 = vpop.permute.xlu0 %2185 }
 0xa81   : > { %v2187_v44 = vsel %vm920_vm8, %v2184_v43, %v2186_v40  ;;  %v2202_v47 = vpop.permute.xlu1 %2201  ;;  %v2443_v40 = vunpack.c.l.bf16 %v4522_v14  ;;  %v2444_v43 = vunpack.c.h.bf16 %v4522_v14  ;;  %v3691_v14 = vld [vmem:[%s5040_s8 + $0x60] sm:$0xff] }
 0xa82   : > { %2236 = vmatpush1.bf16.msra.mxu1 %v2176_v39 }
 0xa83   : > { %2237 = vmatprep.subr.bf16.mxu1 %v3897_v0 }
 0xa85   : > { %v2283_v4 = vpop.permute.xlu1 %2282 }
 0xa86   : > { %2238 = vmatpush1.bf16.msra.mxu1 %v2187_v44 }
 0xa87   : > { %2576 = vmatprep.subr.bf16.mxu1 %v3897_v0 }
 0xa89   : > { %2254 = vmatmul.mubr.bf16.vlgmr.msra.gmra.mrb[16].mxu1 %v3867_v45  ;;  %v2294_v5 = vpop.permute.xlu1 %2293 }
 0xa8d   : > { %v2305_v8 = vpop.permute.xlu1 %2304 }
 0xa91   : > { %v2207_v51 = vpop.permute.xlu0 %2206  ;;  %v2316_v11 = vpop.permute.xlu1 %2315 }
 0xb5c   : > { %v2255_v48 = vpop.f32.mrb[16].mxu1 }
 0xb5d   : > { %v2256_v49 = vadd.f32 %v2255_v48, %v2202_v47  ;;  %v2257_v50 = vpop.f32.mrb[17].mxu1 }
 0xb5e   : > { %v2258_v52 = vpop.f32.mrb[18].mxu1  ;;  %v3692_v50 = vld [vmem:[%s5040_s8 + $0x68] sm:$0xff] }
 0xb5f   : > { %vm2262_vm13 = vcmp.ge.f32.partialorder %v2256_v49, 0.0  ;;  %v2264_v53 = vmul.f32 0.25, %v2256_v49  ;;  %v2259_v54 = vadd.f32 %v2258_v52, %v2207_v51  ;;  %v2260_v55 = vpop.f32.mrb[19].mxu1 }
 0xb61   : > { %v2266_v56 = vsel %vm2262_vm13, %v2256_v49, %v2264_v53  ;;  %vm2263_vm14 = vcmp.ge.f32.partialorder %v2259_v54, 0.0  ;;  %v2265_v58 = vmul.f32 0.25, %v2259_v54  ;;  %v3871_v49 = vld [vmem:[%s5039_s7 + $0x64] ss:$8 sps:$4 sm:$0xff]  }
 0xb62   : > { %v2268_v60 = vsel %vm4149_vm15, %v2266_v56, 0.0  ;;  %3695 = vmatprep.mubr.msk.bf16.mxu1 %vm1229_vm9, %v3871_v49 }
 0xb63   : > { %v2267_v59 = vsel %vm2263_vm14, %v2259_v54, %v2265_v58 }
 0xb64   : > { %v2269_v61 = vsel %vm4149_vm15, %v2267_v59, 0.0  ;;  %v3754_v62 = vpack.c.bf16 %v2267_v59, %v2266_v56 }
 0xb65   : > { %v2270_v63 = vpack.c.bf16 %v2269_v61, %v2268_v60 }
 0xb67   : > { %2328 = vrot.lane.b32.xlu1 %v2270_v63, %s3898_s14  ;;  %2284 = vrot.lane.b32.xlu0 %v2270_v63, %s3900_s16 }
 0xb6b   : > { %2339 = vrot.lane.b32.xlu1 %v2270_v63, %s3901_s17  ;;  %2295 = vrot.lane.b32.xlu0 %v2270_v63, %s3903_s19 }
 0xb6f   : > { %2350 = vrot.lane.b32.xlu1 %v2270_v63, %s3904_s20  ;;  %2306 = vrot.lane.b32.xlu0 %v2270_v63, %s3899_s15 }
 0xb73   : > { %2361 = vrot.lane.b32.xlu1 %v2270_v63, %s3905_s23  ;;  %2317 = vrot.lane.b32.xlu0 %v2270_v63, %s3902_s18 }
 0xb77   : > { %2379 = vperm.xlu1 %3818, %v3684_v1   ;;  %2330 = vrot.lane.b32.xlu0 %v3897_v0, %s3898_s14 }
 0xb7b   : > { %2341 = vrot.lane.b32.xlu0 %v3897_v0, %s3901_s17  ;;  %2459 = vrot.lane.b32.xlu1 %v3897_v0, %s3900_s16 }
 0xb7f   : > { %2352 = vrot.lane.b32.xlu0 %v3897_v0, %s3904_s20  ;;  %2470 = vrot.lane.b32.xlu1 %v3897_v0, %s3903_s19 }
 0xb83   : > { %2363 = vrot.lane.b32.xlu0 %v3897_v0, %s3905_s23  ;;  %2481 = vrot.lane.b32.xlu1 %v3897_v0, %s3899_s15 }
 0xb87   : > { %2384 = vperm.xlu0 %3817, %v3685_v3   ;;  %2492 = vrot.lane.b32.xlu1 %v3897_v0, %s3902_s18 }
 0xbd9   : > { %v2285_v6 = vpop.permute.xlu0 %2284  ;;  %v2329_v16 = vpop.permute.xlu1 %2328 }
 0xbda   : > { %v2286_v7 = vsel %vm529_vm3, %v2283_v4, %v2285_v6 }
 0xbdb   : > { %2400 = vmatpush1.bf16.msra.mxu0 %v2286_v7 }
 0xbdc   : > { %2401 = vmatprep.subr.bf16.mxu0 %v3897_v0 }
 0xbdd   : > { %v2296_v9 = vpop.permute.xlu0 %2295  ;;  %v2340_v19 = vpop.permute.xlu1 %2339 }
 0xbde   : > { %v2297_v10 = vsel %vm581_vm6, %v2294_v5, %v2296_v9 }
 0xbdf   : > { %2402 = vmatpush1.bf16.msra.mxu0 %v2297_v10 }
 0xbe0   : > { %2403 = vmatprep.subr.bf16.mxu0 %v3897_v0 }
 0xbe1   : > { %v2307_v12 = vpop.permute.xlu0 %2306  ;;  %v2351_v25 = vpop.permute.xlu1 %2350 }
 0xbe2   : > { %v2308_v13 = vsel %vm633_vm2, %v2305_v8, %v2307_v12 }
 0xbe3   : > { %2404 = vmatpush1.bf16.msra.mxu0 %v2308_v13  ;;  %v3873_v13 = vld [vmem:[%s5039_s7 + $0x60] ss:$8 sps:$4 sm:$0xff]  }
 0xbe4   : > { %2405 = vmatprep.subr.bf16.mxu0 %v3897_v0 }
 0xbe5   : > { %v2318_v46 = vpop.permute.xlu0 %2317  ;;  %v2362_v28 = vpop.permute.xlu1 %2361 }
 0xbe6   : > { %v2319_v15 = vsel %vm685_vm5, %v2316_v11, %v2318_v46 }
 0xbe7   : > { %2406 = vmatpush1.bf16.msra.mxu0 %v2319_v15 }
 0xbe8   : > { %2407 = vmatprep.subr.bf16.mxu0 %v3897_v0 }
 0xbe9   : > { %v2331_v17 = vpop.permute.xlu0 %2330 }
 0xbea   : > { %v2332_v21 = vsel %vm764_vm1, %v2329_v16, %v2331_v17 }
 0xbeb   : > { %3755 = vmatpush1.bf16.msk.msra.mxu0 %vm4218_vm10, %v3754_v62 }
 0xbec   : > { %2409 = vmatprep.subr.bf16.mxu0 %v3897_v0 }
 0xbed   : > { %v2342_v20 = vpop.permute.xlu0 %2341 }
 0xbee   : > { %v2343_v24 = vsel %vm816_vm4, %v2340_v19, %v2342_v20 }
 0xbef   : > { %2410 = vmatpush1.bf16.msra.mxu0 %v2332_v21 }
 0xbf0   : > { %2411 = vmatprep.subr.bf16.mxu0 %v3897_v0 }
 0xbf1   : > { %v2353_v23 = vpop.permute.xlu0 %2352 }
 0xbf2   : > { %v2354_v26 = vsel %vm868_vm7, %v2351_v25, %v2353_v23 }
 0xbf3   : > { %2412 = vmatpush1.bf16.msra.mxu0 %v2343_v24 }
 0xbf4   : > { %2413 = vmatprep.subr.bf16.mxu0 %v3897_v0 }
 0xbf5   : > { %v2364_v27 = vpop.permute.xlu0 %2363 }
 0xbf6   : > { %v2365_v29 = vsel %vm920_vm8, %v2362_v28, %v2364_v27  ;;  %v2380_v31 = vpop.permute.xlu1 %2379 }
 0xbf7   : > { %2414 = vmatpush1.bf16.msra.mxu0 %v2354_v26 }
 0xbf8   : > { %2415 = vmatprep.subr.bf16.mxu0 %v3897_v0 }
 0xbfa   : > { %v2460_v51 = vpop.permute.xlu1 %2459 }
 0xbfb   : > { %2416 = vmatpush1.bf16.msra.mxu0 %v2365_v29 }
 0xbfc   : > { %2754 = vmatprep.subr.bf16.mxu0 %v3897_v0 }
 0xbfe   : > { %2432 = vmatmul.mubr.bf16.vlgmr.msra.gmra.mrb[20].mxu0 %v3870_v30  ;;  %v2471_v52 = vpop.permute.xlu1 %2470 }
 0xc02   : > { %v2482_v55 = vpop.permute.xlu1 %2481 }
 0xc06   : > { %v2385_v35 = vpop.permute.xlu0 %2384  ;;  %v2493_v59 = vpop.permute.xlu1 %2492 }
 0xcd1   : > { %v2433_v32 = vpop.f32.mrb[20].mxu0 }
 0xcd2   : > { %v2434_v33 = vadd.f32 %v2433_v32, %v2380_v31  ;;  %v2435_v34 = vpop.f32.mrb[21].mxu0  ;;  %v3698_v32 = vld [vmem:[%s5040_s8 + $0x70] sm:$0xff] }
 0xcd3   : > { %v2436_v36 = vpop.f32.mrb[22].mxu0  ;;  %v3699_v34 = vld [vmem:[%s5040_s8 + $0x78] sm:$0xff] }
 0xcd4   : > { %v2440_v37 = vsel %vm4149_vm15, %v2434_v33, 0.0  ;;  %v2437_v38 = vadd.f32 %v2436_v36, %v2385_v35  ;;  %v2438_v39 = vpop.f32.mrb[23].mxu0  ;;  %v3874_v33 = vld [vmem:[%s5039_s7 + $0x74] ss:$8 sps:$4 sm:$0xff]  }
 0xcd5   : > { %v2445_v45 = vadd.f32 %v2443_v40, %v2440_v37  ;;  %3702 = vmatprep.mubr.msk.bf16.mxu0 %vm1229_vm9, %v3874_v33 }
 0xcd6   : > { %v2441_v44 = vsel %vm4149_vm15, %v2437_v38, 0.0 }
 0xcd7   : > { %v2446_v47 = vadd.f32 %v2444_v43, %v2441_v44 }
 0xcd9   : > { %v4653_v48 = vpack.c.bf16 %v2446_v47, %v2445_v45 }
 0xcdb   : > { %2505 = vrot.lane.b32.xlu1 %v4653_v48, %s3898_s14  ;;  %2461 = vrot.lane.b32.xlu0 %v4653_v48, %s3900_s16 }
 0xcdf   : > { %2516 = vrot.lane.b32.xlu1 %v4653_v48, %s3901_s17  ;;  %2472 = vrot.lane.b32.xlu0 %v4653_v48, %s3903_s19 }
 0xce3   : > { %2527 = vrot.lane.b32.xlu1 %v4653_v48, %s3904_s20  ;;  %2483 = vrot.lane.b32.xlu0 %v4653_v48, %s3899_s15 }
 0xce7   : > { %2538 = vrot.lane.b32.xlu1 %v4653_v48, %s3905_s23  ;;  %2494 = vrot.lane.b32.xlu0 %v4653_v48, %s3902_s18 }
 0xceb   : > { %2556 = vperm.xlu1 %3818, %v3691_v14   ;;  %2507 = vrot.lane.b32.xlu0 %v3897_v0, %s3898_s14 }
 0xcef   : > { %2518 = vrot.lane.b32.xlu0 %v3897_v0, %s3901_s17  ;;  %2637 = vrot.lane.b32.xlu1 %v3897_v0, %s3900_s16 }
 0xcf3   : > { %2529 = vrot.lane.b32.xlu0 %v3897_v0, %s3904_s20  ;;  %2648 = vrot.lane.b32.xlu1 %v3897_v0, %s3903_s19 }
 0xcf7   : > { %2540 = vrot.lane.b32.xlu0 %v3897_v0, %s3905_s23  ;;  %2659 = vrot.lane.b32.xlu1 %v3897_v0, %s3899_s15 }
 0xcfb   : > { %2561 = vperm.xlu0 %3817, %v3692_v50   ;;  %2670 = vrot.lane.b32.xlu1 %v3897_v0, %s3902_s18 }
 0xd4d   : > { %v2462_v53 = vpop.permute.xlu0 %2461  ;;  %v2506_v1 = vpop.permute.xlu1 %2505 }
 0xd4e   : > { %v2463_v54 = vsel %vm529_vm3, %v2460_v51, %v2462_v53 }
 0xd4f   : > { %2577 = vmatpush1.bf16.msra.mxu1 %v2463_v54 }
 0xd50   : > { %2578 = vmatprep.subr.bf16.mxu1 %v3897_v0 }
 0xd51   : > { %v2473_v56 = vpop.permute.xlu0 %2472  ;;  %v2517_v3 = vpop.permute.xlu1 %2516 }
 0xd52   : > { %v2474_v58 = vsel %vm581_vm6, %v2471_v52, %v2473_v56 }
 0xd53   : > { %2579 = vmatpush1.bf16.msra.mxu1 %v2474_v58 }
 0xd54   : > { %2580 = vmatprep.subr.bf16.mxu1 %v3897_v0 }
 0xd55   : > { %v2484_v60 = vpop.permute.xlu0 %2483  ;;  %v2528_v8 = vpop.permute.xlu1 %2527 }
 0xd56   : > { %v2485_v61 = vsel %vm633_vm2, %v2482_v55, %v2484_v60 }
 0xd57   : > { %2581 = vmatpush1.bf16.msra.mxu1 %v2485_v61 }
 0xd58   : > { %2582 = vmatprep.subr.bf16.mxu1 %v3897_v0 }
 0xd59   : > { %v2495_v62 = vpop.permute.xlu0 %2494  ;;  %v2539_v11 = vpop.permute.xlu1 %2538 }
 0xd5a   : > { %v2496_v63 = vsel %vm685_vm5, %v2493_v59, %v2495_v62 }
 0xd5b   : > { %2583 = vmatpush1.bf16.msra.mxu1 %v2496_v63  ;;  %v3876_v63 = vld [vmem:[%s5039_s7 + $0x70] ss:$8 sps:$4 sm:$0xff]  }
 0xd5c   : > { %2584 = vmatprep.subr.bf16.mxu1 %v3897_v0 }
 0xd5d   : > { %v2508_v2 = vpop.permute.xlu0 %2507 }
 0xd5e   : > { %v2509_v5 = vsel %vm764_vm1, %v2506_v1, %v2508_v2 }
 0xd5f   : > { %2585 = vmatpush1.bf16.msra.mxu1 %v4653_v48 }
 0xd60   : > { %2586 = vmatprep.subr.bf16.mxu1 %v3897_v0 }
 0xd61   : > { %v2519_v4 = vpop.permute.xlu0 %2518 }
 0xd62   : > { %v2520_v7 = vsel %vm816_vm4, %v2517_v3, %v2519_v4 }
 0xd63   : > { %2587 = vmatpush1.bf16.msra.mxu1 %v2509_v5 }
 0xd64   : > { %2588 = vmatprep.subr.bf16.mxu1 %v3897_v0 }
 0xd65   : > { %v2530_v6 = vpop.permute.xlu0 %2529 }
 0xd66   : > { %v2531_v9 = vsel %vm868_vm7, %v2528_v8, %v2530_v6 }
 0xd67   : > { %2589 = vmatpush1.bf16.msra.mxu1 %v2520_v7 }
 0xd68   : > { %2590 = vmatprep.subr.bf16.mxu1 %v3897_v0 }
 0xd69   : > { %v2541_v10 = vpop.permute.xlu0 %2540 }
 0xd6a   : > { %v2542_v12 = vsel %vm920_vm8, %v2539_v11, %v2541_v10  ;;  %v2557_v46 = vpop.permute.xlu1 %2556  ;;  %v2798_v10 = vunpack.c.l.bf16 %v4653_v48  ;;  %v2799_v11 = vunpack.c.h.bf16 %v4653_v48  ;;  %v3705_v48 = vld [vmem:[%s5040_s8 + $0x80] sm:$0xff] }
 0xd6b   : > { %2591 = vmatpush1.bf16.msra.mxu1 %v2531_v9 }
 0xd6c   : > { %2592 = vmatprep.subr.bf16.mxu1 %v3897_v0 }
 0xd6e   : > { %v2638_v35 = vpop.permute.xlu1 %2637 }
 0xd6f   : > { %2593 = vmatpush1.bf16.msra.mxu1 %v2542_v12 }
 0xd70   : > { %2931 = vmatprep.subr.bf16.mxu1 %v3897_v0 }
 0xd72   : > { %2609 = vmatmul.mubr.bf16.vlgmr.msra.gmra.mrb[20].mxu1 %v3873_v13  ;;  %v2649_v36 = vpop.permute.xlu1 %2648 }
 0xd76   : > { %v2660_v39 = vpop.permute.xlu1 %2659 }
 0xd7a   : > { %v2562_v19 = vpop.permute.xlu0 %2561  ;;  %v2671_v44 = vpop.permute.xlu1 %2670 }
 0xe45   : > { %v2610_v15 = vpop.f32.mrb[20].mxu1 }
 0xe46   : > { %v2611_v16 = vadd.f32 %v2610_v15, %v2557_v46  ;;  %v2612_v17 = vpop.f32.mrb[21].mxu1 }
 0xe47   : > { %v2613_v20 = vpop.f32.mrb[22].mxu1  ;;  %v3706_v17 = vld [vmem:[%s5040_s8 + $0x88] sm:$0xff] }
 0xe48   : > { %vm2617_vm0 = vcmp.ge.f32.partialorder %v2611_v16, 0.0  ;;  %v2619_v21 = vmul.f32 0.25, %v2611_v16  ;;  %v2614_v23 = vadd.f32 %v2613_v20, %v2562_v19  ;;  %v2615_v24 = vpop.f32.mrb[23].mxu1 }
 0xe4a   : > { %v2621_v25 = vsel %vm2617_vm0, %v2611_v16, %v2619_v21  ;;  %vm2618_vm11 = vcmp.ge.f32.partialorder %v2614_v23, 0.0  ;;  %v2620_v26 = vmul.f32 0.25, %v2614_v23  ;;  %v3877_v16 = vld [vmem:[%s5039_s7 + $0x84] ss:$8 sps:$4 sm:$0xff]  }
 0xe4b   : > { %v2623_v28 = vsel %vm4149_vm15, %v2621_v25, 0.0  ;;  %3709 = vmatprep.mubr.msk.bf16.mxu1 %vm1229_vm9, %v3877_v16 }
 0xe4c   : > { %v2622_v27 = vsel %vm2618_vm11, %v2614_v23, %v2620_v26 }
 0xe4d   : > { %v2624_v29 = vsel %vm4149_vm15, %v2622_v27, 0.0  ;;  %v3757_v30 = vpack.c.bf16 %v2622_v27, %v2621_v25 }
 0xe4e   : > { %v2625_v31 = vpack.c.bf16 %v2624_v29, %v2623_v28 }
 0xe50   : > { %2683 = vrot.lane.b32.xlu1 %v2625_v31, %s3898_s14  ;;  %2639 = vrot.lane.b32.xlu0 %v2625_v31, %s3900_s16 }
 0xe54   : > { %2694 = vrot.lane.b32.xlu1 %v2625_v31, %s3901_s17  ;;  %2650 = vrot.lane.b32.xlu0 %v2625_v31, %s3903_s19 }
 0xe58   : > { %2705 = vrot.lane.b32.xlu1 %v2625_v31, %s3904_s20  ;;  %2661 = vrot.lane.b32.xlu0 %v2625_v31, %s3899_s15 }
 0xe5c   : > { %2716 = vrot.lane.b32.xlu1 %v2625_v31, %s3905_s23  ;;  %2672 = vrot.lane.b32.xlu0 %v2625_v31, %s3902_s18 }
 0xe60   : > { %2734 = vperm.xlu1 %3818, %v3698_v32   ;;  %2685 = vrot.lane.b32.xlu0 %v3897_v0, %s3898_s14 }
 0xe64   : > { %2696 = vrot.lane.b32.xlu0 %v3897_v0, %s3901_s17  ;;  %2814 = vrot.lane.b32.xlu1 %v3897_v0, %s3900_s16 }
 0xe68   : > { %2707 = vrot.lane.b32.xlu0 %v3897_v0, %s3904_s20  ;;  %2825 = vrot.lane.b32.xlu1 %v3897_v0, %s3903_s19 }
 0xe6c   : > { %2718 = vrot.lane.b32.xlu0 %v3897_v0, %s3905_s23  ;;  %2836 = vrot.lane.b32.xlu1 %v3897_v0, %s3899_s15 }
 0xe70   : > { %2739 = vperm.xlu0 %3817, %v3699_v34   ;;  %2847 = vrot.lane.b32.xlu1 %v3897_v0, %s3902_s18 }
 0xec2   : > { %v2640_v37 = vpop.permute.xlu0 %2639  ;;  %v2684_v50 = vpop.permute.xlu1 %2683 }
 0xec3   : > { %v2641_v38 = vsel %vm529_vm3, %v2638_v35, %v2640_v37 }
 0xec4   : > { %2755 = vmatpush1.bf16.msra.mxu0 %v2641_v38 }
 0xec5   : > { %2756 = vmatprep.subr.bf16.mxu0 %v3897_v0 }
 0xec6   : > { %v2651_v40 = vpop.permute.xlu0 %2650  ;;  %v2695_v52 = vpop.permute.xlu1 %2694 }
 0xec7   : > { %v2652_v43 = vsel %vm581_vm6, %v2649_v36, %v2651_v40 }
 0xec8   : > { %2757 = vmatpush1.bf16.msra.mxu0 %v2652_v43 }
 0xec9   : > { %2758 = vmatprep.subr.bf16.mxu0 %v3897_v0 }
 0xeca   : > { %v2662_v45 = vpop.permute.xlu0 %2661  ;;  %v2706_v58 = vpop.permute.xlu1 %2705 }
 0xecb   : > { %v2663_v47 = vsel %vm633_vm2, %v2660_v39, %v2662_v45 }
 0xecc   : > { %2759 = vmatpush1.bf16.msra.mxu0 %v2663_v47  ;;  %v3879_v47 = vld [vmem:[%s5039_s7 + $0x80] ss:$8 sps:$4 sm:$0xff]  }
 0xecd   : > { %2760 = vmatprep.subr.bf16.mxu0 %v3897_v0 }
 0xece   : > { %v2673_v14 = vpop.permute.xlu0 %2672  ;;  %v2717_v61 = vpop.permute.xlu1 %2716 }
 0xecf   : > { %v2674_v49 = vsel %vm685_vm5, %v2671_v44, %v2673_v14 }
 0xed0   : > { %2761 = vmatpush1.bf16.msra.mxu0 %v2674_v49 }
 0xed1   : > { %2762 = vmatprep.subr.bf16.mxu0 %v3897_v0 }
 0xed2   : > { %v2686_v51 = vpop.permute.xlu0 %2685 }
 0xed3   : > { %v2687_v54 = vsel %vm764_vm1, %v2684_v50, %v2686_v51 }
 0xed4   : > { %3758 = vmatpush1.bf16.msk.msra.mxu0 %vm4218_vm10, %v3757_v30 }
 0xed5   : > { %2764 = vmatprep.subr.bf16.mxu0 %v3897_v0 }
 0xed6   : > { %v2697_v53 = vpop.permute.xlu0 %2696 }
 0xed7   : > { %v2698_v56 = vsel %vm816_vm4, %v2695_v52, %v2697_v53 }
 0xed8   : > { %2765 = vmatpush1.bf16.msra.mxu0 %v2687_v54 }
 0xed9   : > { %2766 = vmatprep.subr.bf16.mxu0 %v3897_v0 }
 0xeda   : > { %v2708_v55 = vpop.permute.xlu0 %2707 }
 0xedb   : > { %v2709_v59 = vsel %vm868_vm7, %v2706_v58, %v2708_v55 }
 0xedc   : > { %2767 = vmatpush1.bf16.msra.mxu0 %v2698_v56 }
 0xedd   : > { %2768 = vmatprep.subr.bf16.mxu0 %v3897_v0 }
 0xede   : > { %v2719_v60 = vpop.permute.xlu0 %2718 }
 0xedf   : > { %v2720_v62 = vsel %vm920_vm8, %v2717_v61, %v2719_v60  ;;  %v2735_v1 = vpop.permute.xlu1 %2734 }
 0xee0   : > { %2769 = vmatpush1.bf16.msra.mxu0 %v2709_v59 }
 0xee1   : > { %2770 = vmatprep.subr.bf16.mxu0 %v3897_v0 }
 0xee3   : > { %v2815_v19 = vpop.permute.xlu1 %2814 }
 0xee4   : > { %2771 = vmatpush1.bf16.msra.mxu0 %v2720_v62 }
 0xee5   : > { %3109 = vmatprep.subr.bf16.mxu0 %v3897_v0 }
 0xee7   : > { %2787 = vmatmul.mubr.bf16.vlgmr.msra.gmra.mrb[24].mxu0 %v3876_v63  ;;  %v2826_v20 = vpop.permute.xlu1 %2825 }
 0xeeb   : > { %v2837_v24 = vpop.permute.xlu1 %2836 }
 0xeef   : > { %v2740_v5 = vpop.permute.xlu0 %2739  ;;  %v2848_v27 = vpop.permute.xlu1 %2847 }
 0xfba   : > { %v2788_v2 = vpop.f32.mrb[24].mxu0 }
 0xfbb   : > { %v2789_v3 = vadd.f32 %v2788_v2, %v2735_v1  ;;  %v2790_v4 = vpop.f32.mrb[25].mxu0  ;;  %v3712_v2 = vld [vmem:[%s5040_s8 + $0x90] sm:$0xff] }
 0xfbc   : > { %v2791_v6 = vpop.f32.mrb[26].mxu0  ;;  %v3713_v4 = vld [vmem:[%s5040_s8 + $0x98] sm:$0xff] }
 0xfbd   : > { %v2795_v7 = vsel %vm4149_vm15, %v2789_v3, 0.0  ;;  %v2792_v8 = vadd.f32 %v2791_v6, %v2740_v5  ;;  %v2793_v9 = vpop.f32.mrb[27].mxu0  ;;  %v3880_v3 = vld [vmem:[%s5039_s7 + $0x94] ss:$8 sps:$4 sm:$0xff]  }
 0xfbe   : > { %v2800_v13 = vadd.f32 %v2798_v10, %v2795_v7  ;;  %3716 = vmatprep.mubr.msk.bf16.mxu0 %vm1229_vm9, %v3880_v3 }
 0xfbf   : > { %v2796_v12 = vsel %vm4149_vm15, %v2792_v8, 0.0 }
 0xfc0   : > { %v2801_v46 = vadd.f32 %v2799_v11, %v2796_v12 }
 0xfc2   : > { %v4784_v15 = vpack.c.bf16 %v2801_v46, %v2800_v13 }
 0xfc4   : > { %2860 = vrot.lane.b32.xlu1 %v4784_v15, %s3898_s14  ;;  %2816 = vrot.lane.b32.xlu0 %v4784_v15, %s3900_s16 }
 0xfc8   : > { %2871 = vrot.lane.b32.xlu1 %v4784_v15, %s3901_s17  ;;  %2827 = vrot.lane.b32.xlu0 %v4784_v15, %s3903_s19 }
 0xfcc   : > { %2882 = vrot.lane.b32.xlu1 %v4784_v15, %s3904_s20  ;;  %2838 = vrot.lane.b32.xlu0 %v4784_v15, %s3899_s15 }
 0xfd0   : > { %2893 = vrot.lane.b32.xlu1 %v4784_v15, %s3905_s23  ;;  %2849 = vrot.lane.b32.xlu0 %v4784_v15, %s3902_s18 }
 0xfd4   : > { %2911 = vperm.xlu1 %3818, %v3705_v48   ;;  %2862 = vrot.lane.b32.xlu0 %v3897_v0, %s3898_s14 }
 0xfd8   : > { %2873 = vrot.lane.b32.xlu0 %v3897_v0, %s3901_s17  ;;  %2992 = vrot.lane.b32.xlu1 %v3897_v0, %s3900_s16 }
 0xfdc   : > { %2884 = vrot.lane.b32.xlu0 %v3897_v0, %s3904_s20  ;;  %3003 = vrot.lane.b32.xlu1 %v3897_v0, %s3903_s19 }
 0xfe0   : > { %2895 = vrot.lane.b32.xlu0 %v3897_v0, %s3905_s23  ;;  %3014 = vrot.lane.b32.xlu1 %v3897_v0, %s3899_s15 }
 0xfe4   : > { %2916 = vperm.xlu0 %3817, %v3706_v17   ;;  %3025 = vrot.lane.b32.xlu1 %v3897_v0, %s3902_s18 }
0x1036   : > { %v2817_v21 = vpop.permute.xlu0 %2816  ;;  %v2861_v32 = vpop.permute.xlu1 %2860 }
0x1037   : > { %v2818_v23 = vsel %vm529_vm3, %v2815_v19, %v2817_v21 }
0x1038   : > { %2932 = vmatpush1.bf16.msra.mxu1 %v2818_v23 }
0x1039   : > { %2933 = vmatprep.subr.bf16.mxu1 %v3897_v0 }
0x103a   : > { %v2828_v25 = vpop.permute.xlu0 %2827  ;;  %v2872_v34 = vpop.permute.xlu1 %2871 }
0x103b   : > { %v2829_v26 = vsel %vm581_vm6, %v2826_v20, %v2828_v25 }
0x103c   : > { %2934 = vmatpush1.bf16.msra.mxu1 %v2829_v26 }
0x103d   : > { %2935 = vmatprep.subr.bf16.mxu1 %v3897_v0 }
0x103e   : > { %v2839_v28 = vpop.permute.xlu0 %2838  ;;  %v2883_v39 = vpop.permute.xlu1 %2882 }
0x103f   : > { %v2840_v29 = vsel %vm633_vm2, %v2837_v24, %v2839_v28 }
0x1040   : > { %2936 = vmatpush1.bf16.msra.mxu1 %v2840_v29 }
0x1041   : > { %2937 = vmatprep.subr.bf16.mxu1 %v3897_v0 }
0x1042   : > { %v2850_v30 = vpop.permute.xlu0 %2849  ;;  %v2894_v44 = vpop.permute.xlu1 %2893 }
0x1043   : > { %v2851_v31 = vsel %vm685_vm5, %v2848_v27, %v2850_v30  ;;  %v3882_v30 = vld [vmem:[%s5039_s7 + $0x90] ss:$8 sps:$4 sm:$0xff]  }
0x1044   : > { %2938 = vmatpush1.bf16.msra.mxu1 %v2851_v31 }
0x1045   : > { %2939 = vmatprep.subr.bf16.mxu1 %v3897_v0 }
0x1046   : > { %v2863_v33 = vpop.permute.xlu0 %2862 }
0x1047   : > { %v2864_v36 = vsel %vm764_vm1, %v2861_v32, %v2863_v33 }
0x1048   : > { %2940 = vmatpush1.bf16.msra.mxu1 %v4784_v15 }
0x1049   : > { %2941 = vmatprep.subr.bf16.mxu1 %v3897_v0 }
0x104a   : > { %v2874_v35 = vpop.permute.xlu0 %2873 }
0x104b   : > { %v2875_v38 = vsel %vm816_vm4, %v2872_v34, %v2874_v35 }
0x104c   : > { %2942 = vmatpush1.bf16.msra.mxu1 %v2864_v36 }
0x104d   : > { %2943 = vmatprep.subr.bf16.mxu1 %v3897_v0 }
0x104e   : > { %v2885_v37 = vpop.permute.xlu0 %2884 }
0x104f   : > { %v2886_v40 = vsel %vm868_vm7, %v2883_v39, %v2885_v37 }
0x1050   : > { %2944 = vmatpush1.bf16.msra.mxu1 %v2875_v38 }
0x1051   : > { %2945 = vmatprep.subr.bf16.mxu1 %v3897_v0 }
0x1052   : > { %v2896_v43 = vpop.permute.xlu0 %2895 }
0x1053   : > { %v2897_v45 = vsel %vm920_vm8, %v2894_v44, %v2896_v43  ;;  %v2912_v14 = vpop.permute.xlu1 %2911  ;;  %v3154_v43 = vunpack.c.h.bf16 %v4784_v15 }
0x1054   : > { %2946 = vmatpush1.bf16.msra.mxu1 %v2886_v40  ;;  %v3153_v40 = vunpack.c.l.bf16 %v4784_v15  ;;  %v3161_v15 = vld [vmem:[%s5042_s10] sm:$0xff] }
0x1055   : > { %2947 = vmatprep.subr.bf16.mxu1 %v3897_v0 }
0x1057   : > { %v2993_v5 = vpop.permute.xlu1 %2992 }
0x1058   : > { %2948 = vmatpush1.bf16.msra.mxu1 %v2897_v45 }
0x1059   : > { %3284 = vmatprep.subr.bf16.mxu1 %v3897_v0 }
0x105b   : > { %2964 = vmatmul.mubr.bf16.vlgmr.msra.gmra.mrb[24].mxu1 %v3879_v47  ;;  %v3004_v6 = vpop.permute.xlu1 %3003 }
0x105f   : > { %v3015_v9 = vpop.permute.xlu1 %3014 }
0x1063   : > { %v2917_v52 = vpop.permute.xlu0 %2916  ;;  %v3026_v12 = vpop.permute.xlu1 %3025 }
0x112e   : > { %v2965_v49 = vpop.f32.mrb[24].mxu1 }
0x112f   : > { %v2966_v50 = vadd.f32 %v2965_v49, %v2912_v14  ;;  %v2967_v51 = vpop.f32.mrb[25].mxu1  ;;  %v3883_v49 = vld [vmem:[%s5041_s9 + $0x4] ss:$8 sps:$4 sm:$0xff]  }
0x1130   : > { %v2968_v53 = vpop.f32.mrb[26].mxu1  ;;  %3719 = vmatprep.mubr.msk.bf16.mxu1 %vm1229_vm9, %v3883_v49 }
0x1131   : > { %vm2972_vm12 = vcmp.ge.f32.partialorder %v2966_v50, 0.0  ;;  %v2974_v54 = vmul.f32 0.25, %v2966_v50  ;;  %v2969_v55 = vadd.f32 %v2968_v53, %v2917_v52  ;;  %v2970_v56 = vpop.f32.mrb[27].mxu1 }
0x1133   : > { %v2976_v58 = vsel %vm2972_vm12, %v2966_v50, %v2974_v54  ;;  %vm2973_vm13 = vcmp.ge.f32.partialorder %v2969_v55, 0.0  ;;  %v2975_v59 = vmul.f32 0.25, %v2969_v55  ;;  %v3162_v50 = vld [vmem:[%s5042_s10 + $0x8] sm:$0xff] }
0x1134   : > { %v2978_v61 = vsel %vm4149_vm15, %v2976_v58, 0.0 }
0x1135   : > { %v2977_v60 = vsel %vm2973_vm13, %v2969_v55, %v2975_v59 }
0x1136   : > { %v2979_v62 = vsel %vm4149_vm15, %v2977_v60, 0.0  ;;  %v3760_v63 = vpack.c.bf16 %v2977_v60, %v2976_v58 }
0x1137   : > { %v2980_v1 = vpack.c.bf16 %v2979_v62, %v2978_v61 }
0x1139   : > { %3038 = vrot.lane.b32.xlu1 %v2980_v1, %s3898_s14  ;;  %2994 = vrot.lane.b32.xlu0 %v2980_v1, %s3900_s16 }
0x113d   : > { %3049 = vrot.lane.b32.xlu1 %v2980_v1, %s3901_s17  ;;  %3005 = vrot.lane.b32.xlu0 %v2980_v1, %s3903_s19 }
0x1141   : > { %3060 = vrot.lane.b32.xlu1 %v2980_v1, %s3904_s20  ;;  %3016 = vrot.lane.b32.xlu0 %v2980_v1, %s3899_s15 }
0x1145   : > { %3071 = vrot.lane.b32.xlu1 %v2980_v1, %s3905_s23  ;;  %3027 = vrot.lane.b32.xlu0 %v2980_v1, %s3902_s18 }
0x1149   : > { %3089 = vperm.xlu1 %3818, %v3712_v2   ;;  %3040 = vrot.lane.b32.xlu0 %v3897_v0, %s3898_s14 }
0x114d   : > { %3051 = vrot.lane.b32.xlu0 %v3897_v0, %s3901_s17  ;;  %3167 = vrot.lane.b32.xlu1 %v3897_v0, %s3900_s16 }
0x1151   : > { %3062 = vrot.lane.b32.xlu0 %v3897_v0, %s3904_s20  ;;  %3178 = vrot.lane.b32.xlu1 %v3897_v0, %s3903_s19 }
0x1155   : > { %3073 = vrot.lane.b32.xlu0 %v3897_v0, %s3905_s23  ;;  %3189 = vrot.lane.b32.xlu1 %v3897_v0, %s3899_s15 }
0x1159   : > { %3094 = vperm.xlu0 %3817, %v3713_v4   ;;  %3200 = vrot.lane.b32.xlu1 %v3897_v0, %s3902_s18 }
0x11ab   : > { %v2995_v7 = vpop.permute.xlu0 %2994  ;;  %v3039_v17 = vpop.permute.xlu1 %3038 }
0x11ac   : > { %v2996_v8 = vsel %vm529_vm3, %v2993_v5, %v2995_v7 }
0x11ad   : > { %3110 = vmatpush1.bf16.msra.mxu0 %v2996_v8 }
0x11ae   : > { %3111 = vmatprep.subr.bf16.mxu0 %v3897_v0 }
0x11af   : > { %v3006_v10 = vpop.permute.xlu0 %3005  ;;  %v3050_v20 = vpop.permute.xlu1 %3049 }
0x11b0   : > { %v3007_v11 = vsel %vm581_vm6, %v3004_v6, %v3006_v10 }
0x11b1   : > { %3112 = vmatpush1.bf16.msra.mxu0 %v3007_v11 }
0x11b2   : > { %3113 = vmatprep.subr.bf16.mxu0 %v3897_v0 }
0x11b3   : > { %v3017_v13 = vpop.permute.xlu0 %3016  ;;  %v3061_v26 = vpop.permute.xlu1 %3060 }
0x11b4   : > { %v3018_v46 = vsel %vm633_vm2, %v3015_v9, %v3017_v13  ;;  %v3885_v13 = vld [vmem:[%s5041_s9] ss:$8 sps:$4 sm:$0xff]  }
0x11b5   : > { %3114 = vmatpush1.bf16.msra.mxu0 %v3018_v46 }
0x11b6   : > { %3115 = vmatprep.subr.bf16.mxu0 %v3897_v0 }
0x11b7   : > { %v3028_v48 = vpop.permute.xlu0 %3027  ;;  %v3072_v28 = vpop.permute.xlu1 %3071 }
0x11b8   : > { %v3029_v16 = vsel %vm685_vm5, %v3026_v12, %v3028_v48 }
0x11b9   : > { %3116 = vmatpush1.bf16.msra.mxu0 %v3029_v16 }
0x11ba   : > { %3117 = vmatprep.subr.bf16.mxu0 %v3897_v0 }
0x11bb   : > { %v3041_v19 = vpop.permute.xlu0 %3040 }
0x11bc   : > { %v3042_v23 = vsel %vm764_vm1, %v3039_v17, %v3041_v19 }
0x11bd   : > { %3761 = vmatpush1.bf16.msk.msra.mxu0 %vm4218_vm10, %v3760_v63 }
0x11be   : > { %3119 = vmatprep.subr.bf16.mxu0 %v3897_v0 }
0x11bf   : > { %v3052_v21 = vpop.permute.xlu0 %3051 }
0x11c0   : > { %v3053_v25 = vsel %vm816_vm4, %v3050_v20, %v3052_v21 }
0x11c1   : > { %3120 = vmatpush1.bf16.msra.mxu0 %v3042_v23 }
0x11c2   : > { %3121 = vmatprep.subr.bf16.mxu0 %v3897_v0 }
0x11c3   : > { %v3063_v24 = vpop.permute.xlu0 %3062 }
0x11c4   : > { %v3064_v27 = vsel %vm868_vm7, %v3061_v26, %v3063_v24 }
0x11c5   : > { %3122 = vmatpush1.bf16.msra.mxu0 %v3053_v25 }
0x11c6   : > { %3123 = vmatprep.subr.bf16.mxu0 %v3897_v0 }
0x11c7   : > { %v3074_v22 = vpop.permute.xlu0 %3073 }
0x11c8   : > { %v3075_v29 = vsel %vm920_vm8, %v3072_v28, %v3074_v22  ;;  %v3090_v31 = vpop.permute.xlu1 %3089 }
0x11c9   : > { %3124 = vmatpush1.bf16.msra.mxu0 %v3064_v27 }
0x11ca   : > { %3125 = vmatprep.subr.bf16.mxu0 %v3897_v0 }
0x11cc   : > { %v3168_v51 = vpop.permute.xlu1 %3167 }
0x11cd   : > { %3126 = vmatpush1.bf16.msra.mxu0 %v3075_v29 }
0x11ce   : > { %3465 = vmatprep.subr.bf16.mxu0 %v3897_v0 }
0x11d0   : > { %3142 = vmatmul.mubr.bf16.vlgmr.msra.gmra.mrb[28].mxu0 %v3882_v30  ;;  %v3179_v52 = vpop.permute.xlu1 %3178 }
0x11d4   : > { %v3190_v55 = vpop.permute.xlu1 %3189 }
0x11d8   : > { %v3095_v35 = vpop.permute.xlu0 %3094  ;;  %v3201_v59 = vpop.permute.xlu1 %3200 }
0x12a3   : > { %v3143_v32 = vpop.f32.mrb[28].mxu0 }
0x12a4   : > { %v3144_v33 = vadd.f32 %v3143_v32, %v3090_v31  ;;  %v3145_v34 = vpop.f32.mrb[29].mxu0 }
0x12a5   : > { %v3146_v36 = vpop.f32.mrb[30].mxu0 }
0x12a6   : > { %v3150_v37 = vsel %vm4149_vm15, %v3144_v33, 0.0  ;;  %v3147_v38 = vadd.f32 %v3146_v36, %v3095_v35  ;;  %v3148_v39 = vpop.f32.mrb[31].mxu0 }
0x12a7   : > { %v3155_v45 = vadd.f32 %v3153_v40, %v3150_v37 }
0x12a8   : > { %v3151_v44 = vsel %vm4149_vm15, %v3147_v38, 0.0 }
0x12a9   : > { %v3156_v47 = vadd.f32 %v3154_v43, %v3151_v44 }
0x12ab   : > { %v3157_v14 = vpack.c.bf16 %v3156_v47, %v3155_v45 }
0x12ad   : > { %3213 = vrot.lane.b32.xlu1 %v3157_v14, %s3898_s14  ;;  %3169 = vrot.lane.b32.xlu0 %v3157_v14, %s3900_s16 }
0x12b1   : > { %3224 = vrot.lane.b32.xlu1 %v3157_v14, %s3901_s17  ;;  %3180 = vrot.lane.b32.xlu0 %v3157_v14, %s3903_s19 }
0x12b5   : > { %3235 = vrot.lane.b32.xlu1 %v3157_v14, %s3904_s20  ;;  %3191 = vrot.lane.b32.xlu0 %v3157_v14, %s3899_s15 }
0x12b9   : > { %3246 = vrot.lane.b32.xlu1 %v3157_v14, %s3905_s23  ;;  %3202 = vrot.lane.b32.xlu0 %v3157_v14, %s3902_s18 }
0x12bd   : > { %3264 = vperm.xlu1 %3818, %v3161_v15   ;;  %3215 = vrot.lane.b32.xlu0 %v3897_v0, %s3898_s14 }
0x12c1   : > { %3226 = vrot.lane.b32.xlu0 %v3897_v0, %s3901_s17  ;;  %3348 = vrot.lane.b32.xlu1 %v3897_v0, %s3900_s16 }
0x12c5   : > { %3237 = vrot.lane.b32.xlu0 %v3897_v0, %s3904_s20  ;;  %3359 = vrot.lane.b32.xlu1 %v3897_v0, %s3903_s19 }
0x12c9   : > { %3248 = vrot.lane.b32.xlu0 %v3897_v0, %s3905_s23  ;;  %3370 = vrot.lane.b32.xlu1 %v3897_v0, %s3899_s15 }
0x12cd   : > { %3269 = vperm.xlu0 %3817, %v3162_v50   ;;  %3381 = vrot.lane.b32.xlu1 %v3897_v0, %s3902_s18 }
0x131f   : > { %v3170_v53 = vpop.permute.xlu0 %3169  ;;  %v3214_v1 = vpop.permute.xlu1 %3213 }
0x1320   : > { %v3171_v54 = vsel %vm529_vm3, %v3168_v51, %v3170_v53 }
0x1321   : > { %3285 = vmatpush1.bf16.msra.mxu1 %v3171_v54 }
0x1322   : > { %3286 = vmatprep.subr.bf16.mxu1 %v3897_v0 }
0x1323   : > { %v3181_v56 = vpop.permute.xlu0 %3180  ;;  %v3225_v3 = vpop.permute.xlu1 %3224 }
0x1324   : > { %v3182_v58 = vsel %vm581_vm6, %v3179_v52, %v3181_v56 }
0x1325   : > { %3287 = vmatpush1.bf16.msra.mxu1 %v3182_v58 }
0x1326   : > { %3288 = vmatprep.subr.bf16.mxu1 %v3897_v0 }
0x1327   : > { %v3192_v60 = vpop.permute.xlu0 %3191  ;;  %v3236_v8 = vpop.permute.xlu1 %3235 }
0x1328   : > { %v3193_v61 = vsel %vm633_vm2, %v3190_v55, %v3192_v60 }
0x1329   : > { %3289 = vmatpush1.bf16.msra.mxu1 %v3193_v61 }
0x132a   : > { %3290 = vmatprep.subr.bf16.mxu1 %v3897_v0 }
0x132b   : > { %v3203_v62 = vpop.permute.xlu0 %3202  ;;  %v3247_v11 = vpop.permute.xlu1 %3246 }
0x132c   : > { %v3204_v63 = vsel %vm685_vm5, %v3201_v59, %v3203_v62  ;;  %v3888_v59 = vld [vmem:[%s5043_s11] ss:$8 sps:$4 sm:$0xff]  }
0x132d   : > { %3291 = vmatpush1.bf16.msra.mxu1 %v3204_v63 }
0x132e   : > { %3292 = vmatprep.subr.bf16.mxu1 %v3897_v0 }
0x132f   : > { %v3216_v2 = vpop.permute.xlu0 %3215 }
0x1330   : > { %v3217_v5 = vsel %vm764_vm1, %v3214_v1, %v3216_v2 }
0x1331   : > { %3293 = vmatpush1.bf16.msra.mxu1 %v3157_v14 }
0x1332   : > { %3294 = vmatprep.subr.bf16.mxu1 %v3897_v0 }
0x1333   : > { %v3227_v4 = vpop.permute.xlu0 %3226 }
0x1334   : > { %v3228_v7 = vsel %vm816_vm4, %v3225_v3, %v3227_v4 }
0x1335   : > { %3295 = vmatpush1.bf16.msra.mxu1 %v3217_v5 }
0x1336   : > { %3296 = vmatprep.subr.bf16.mxu1 %v3897_v0 }
0x1337   : > { %v3238_v6 = vpop.permute.xlu0 %3237 }
0x1338   : > { %v3239_v9 = vsel %vm868_vm7, %v3236_v8, %v3238_v6 }
0x1339   : > { %3297 = vmatpush1.bf16.msra.mxu1 %v3228_v7 }
0x133a   : > { %3298 = vmatprep.subr.bf16.mxu1 %v3897_v0 }
0x133b   : > { %v3249_v10 = vpop.permute.xlu0 %3248 }
0x133c   : > { %v3250_v12 = vsel %vm920_vm8, %v3247_v11, %v3249_v10  ;;  %v3265_v46 = vpop.permute.xlu1 %3264 }
0x133d   : > { %3299 = vmatpush1.bf16.msra.mxu1 %v3239_v9 }
0x133e   : > { %3300 = vmatprep.subr.bf16.mxu1 %v3897_v0 }
0x1340   : > { %v3349_v32 = vpop.permute.xlu1 %3348 }
0x1341   : > { %3301 = vmatpush1.bf16.msra.mxu1 %v3250_v12 }
0x1344   : > { %3317 = vmatmul.mubr.bf16.vlgmr.msra.gmra.mrb[28].mxu1 %v3885_v13  ;;  %v3360_v33 = vpop.permute.xlu1 %3359 }
0x1348   : > { %v3371_v36 = vpop.permute.xlu1 %3370 }
0x134c   : > { %v3270_v19 = vpop.permute.xlu0 %3269  ;;  %v3382_v39 = vpop.permute.xlu1 %3381 }
0x1417   : > { %v3318_v48 = vpop.f32.mrb[28].mxu1 }
0x1418   : > { %v3319_v16 = vadd.f32 %v3318_v48, %v3265_v46  ;;  %v3320_v17 = vpop.f32.mrb[29].mxu1 }
0x1419   : > { %v3321_v20 = vpop.f32.mrb[30].mxu1 }
0x141a   : > { %vm3325_vm10 = vcmp.ge.f32.partialorder %v3319_v16, 0.0  ;;  %v3327_v21 = vmul.f32 0.25, %v3319_v16  ;;  %v3322_v23 = vadd.f32 %v3321_v20, %v3270_v19  ;;  %v3323_v24 = vpop.f32.mrb[31].mxu1 }
0x141c   : > { %v3329_v25 = vsel %vm3325_vm10, %v3319_v16, %v3327_v21  ;;  %vm3326_vm14 = vcmp.ge.f32.partialorder %v3322_v23, 0.0  ;;  %v3328_v26 = vmul.f32 0.25, %v3322_v23 }
0x141d   : > { %v3331_v27 = vsel %vm4149_vm15, %v3329_v25, 0.0 }
0x141e   : > { %v3330_v22 = vsel %vm3326_vm14, %v3322_v23, %v3328_v26  ;;  %v3336_v29 = vadd.f32 %v3331_v27, %v1733_v41  ;;  %v3886_v41 = vld [vmem:[%s5043_s11 + $0x4] ss:$8 sps:$4 sm:$0xff]  }
0x141f   : > { %v3332_v28 = vsel %vm4149_vm15, %v3330_v22, 0.0  ;;  %3722 = vmatprep.mubr.msk.bf16.mxu0 %vm1229_vm9, %v3886_v41 }
0x1420   : > { %v3337_v30 = vadd.f32 %v3332_v28, %v1734_v42  ;;  %v3343_v42 = vld [vmem:[%s5044_s12 + $0x8] sm:$0xff] }
0x1422   : > { %v3338_v31 = vpack.c.bf16 %v3337_v30, %v3336_v29 }
0x1424   : > { %3394 = vrot.lane.b32.xlu1 %v3338_v31, %s3898_s14  ;;  %3350 = vrot.lane.b32.xlu0 %v3338_v31, %s3900_s16 }
0x1428   : > { %3405 = vrot.lane.b32.xlu1 %v3338_v31, %s3901_s17  ;;  %3361 = vrot.lane.b32.xlu0 %v3338_v31, %s3903_s19 }
0x142c   : > { %3416 = vrot.lane.b32.xlu1 %v3338_v31, %s3904_s20  ;;  %3372 = vrot.lane.b32.xlu0 %v3338_v31, %s3899_s15 }
0x1430   : > { %3427 = vrot.lane.b32.xlu1 %v3338_v31, %s3905_s23  ;;  %3383 = vrot.lane.b32.xlu0 %v3338_v31, %s3902_s18 }
0x1434   : > { %3445 = vperm.xlu1 %3818, %v3342_v18   ;;  %3396 = vrot.lane.b32.xlu0 %v3897_v0, %s3898_s14 }
0x1438   : > { %3407 = vrot.lane.b32.xlu0 %v3897_v0, %s3901_s17 }
0x143c   : > { %3418 = vrot.lane.b32.xlu0 %v3897_v0, %s3904_s20  ;;  %s3727_s20 = sshll.u32 %s5051_s26, 3 }
0x143d   : > { %s440_s21 = scalar_lea.vmem %s5045_s13, %s3727_s20 }
0x1440   : > { %3429 = vrot.lane.b32.xlu0 %v3897_v0, %s3905_s23 }
0x1444   : > { %3450 = vperm.xlu0 %3817, %v3343_v42  }
0x1496   : > { %v3351_v34 = vpop.permute.xlu0 %3350  ;;  %v3395_v47 = vpop.permute.xlu1 %3394 }
0x1497   : > { %v3352_v35 = vsel %vm529_vm3, %v3349_v32, %v3351_v34 }
0x1498   : > { %3466 = vmatpush1.bf16.msra.mxu0 %v3352_v35 }
0x1499   : > { %3467 = vmatprep.subr.bf16.mxu0 %v3897_v0 }
0x149a   : > { %v3362_v37 = vpop.permute.xlu0 %3361  ;;  %v3406_v15 = vpop.permute.xlu1 %3405 }
0x149b   : > { %v3363_v38 = vsel %vm581_vm6, %v3360_v33, %v3362_v37 }
0x149c   : > { %3468 = vmatpush1.bf16.msra.mxu0 %v3363_v38 }
0x149d   : > { %3469 = vmatprep.subr.bf16.mxu0 %v3897_v0 }
0x149e   : > { %v3373_v40 = vpop.permute.xlu0 %3372  ;;  %v3417_v53 = vpop.permute.xlu1 %3416 }
0x149f   : > { %v3374_v43 = vsel %vm633_vm2, %v3371_v36, %v3373_v40 }
0x14a0   : > { %3470 = vmatpush1.bf16.msra.mxu0 %v3374_v43 }
0x14a1   : > { %3471 = vmatprep.subr.bf16.mxu0 %v3897_v0 }
0x14a2   : > { %v3384_v44 = vpop.permute.xlu0 %3383  ;;  %v3428_v56 = vpop.permute.xlu1 %3427 }
0x14a3   : > { %v3385_v45 = vsel %vm685_vm5, %v3382_v39, %v3384_v44 }
0x14a4   : > { %3472 = vmatpush1.bf16.msra.mxu0 %v3385_v45 }
0x14a5   : > { %3473 = vmatprep.subr.bf16.mxu0 %v3897_v0 }
0x14a6   : > { %v3397_v14 = vpop.permute.xlu0 %3396 }
0x14a7   : > { %v3398_v50 = vsel %vm764_vm1, %v3395_v47, %v3397_v14 }
0x14a8   : > { %3474 = vmatpush1.bf16.msra.mxu0 %v3338_v31 }
0x14a9   : > { %3475 = vmatprep.subr.bf16.mxu0 %v3897_v0 }
0x14aa   : > { %v3408_v49 = vpop.permute.xlu0 %3407 }
0x14ab   : > { %v3409_v52 = vsel %vm816_vm4, %v3406_v15, %v3408_v49 }
0x14ac   : > { %3476 = vmatpush1.bf16.msra.mxu0 %v3398_v50 }
0x14ad   : > { %3477 = vmatprep.subr.bf16.mxu0 %v3897_v0 }
0x14ae   : > { %v3419_v51 = vpop.permute.xlu0 %3418 }
0x14af   : > { %v3420_v54 = vsel %vm868_vm7, %v3417_v53, %v3419_v51 }
0x14b0   : > { %3478 = vmatpush1.bf16.msra.mxu0 %v3409_v52 }
0x14b1   : > { %3479 = vmatprep.subr.bf16.mxu0 %v3897_v0 }
0x14b2   : > { %v3430_v55 = vpop.permute.xlu0 %3429 }
0x14b3   : > { %v3431_v58 = vsel %vm920_vm8, %v3428_v56, %v3430_v55  ;;  %v3446_v60 = vpop.permute.xlu1 %3445 }
0x14b4   : > { %3480 = vmatpush1.bf16.msra.mxu0 %v3420_v54 }
0x14b5   : > { %3481 = vmatprep.subr.bf16.mxu0 %v3897_v0 }
0x14b8   : > { %3482 = vmatpush1.bf16.msra.mxu0 %v3431_v58 }
0x14bb   : > { %3498 = vmatmul.mubr.bf16.vlgmr.msra.gmra.mrb[32].mxu0 %v3888_v59 }
0x14c3   : > { %v3451_v1 = vpop.permute.xlu0 %3450 }
0x158e   : > { %v3499_v61 = vpop.f32.mrb[32].mxu0 }
0x158f   : > { %v3500_v62 = vadd.f32 %v3499_v61, %v3446_v60  ;;  %v3501_v63 = vpop.f32.mrb[33].mxu0 }
0x1590   : > { %v3502_v2 = vpop.f32.mrb[34].mxu0 }
0x1591   : > { %vm3506_vm1 = vcmp.ge.f32.partialorder %v3500_v62, 0.0  ;;  %v3508_v3 = vmul.f32 0.25, %v3500_v62  ;;  %v3503_v4 = vadd.f32 %v3502_v2, %v3451_v1  ;;  %v3504_v0 = vpop.f32.mrb[35].mxu0 }
0x1593   : > { %v3510_v5 = vsel %vm3506_vm1, %v3500_v62, %v3508_v3  ;;  %vm3507_vm2 = vcmp.ge.f32.partialorder %v3503_v4, 0.0  ;;  %v3509_v6 = vmul.f32 0.25, %v3503_v4 }
0x1594   : > { %v3512_v8 = vsel %vm4149_vm15, %v3510_v5, 0.0 }
0x1595   : > { %v3511_v7 = vsel %vm3507_vm2, %v3503_v4, %v3509_v6 }
0x1596   : > { %v3513_v9 = vsel %vm4149_vm15, %v3511_v7, 0.0 }
0x1597   : > { %v3733_v10 = vpack.c.bf16 %v3513_v9, %v3512_v8 }
0x1599   : > { %3734 = vst [vmem:[%s440_s21] sm:$0xff] %v3733_v10  }
0x159a PF: > { %s23_s25 = sadd.s32 1, %s3895_s25  }
0x159b   : > { %p20_p4 = scmp.ge.s32.totalorder %s23_s25, 4  }
0x159d   :  { %22 = sbr.rel (!%p20_p4) target bundleno = 1 (0x1), region = 120 }

// kernel: srnet_forward.5
= control target key start
LH: loop header
LB: loop body
LE: loop exit
PB: predicated region body
PF: predicated region fallthrough
CT: control target
= control target key end

     0   :  { %s1566_s9 = smov 0   ;;  %s1936_s0 = inlined_call_operand.vmem [shape: bf16[2,16,1408], index: 0, kind: input, shape index: {}]   ;;  %s1937_s1 = inlined_call_operand.vmem [shape: bf16[16,144], index: 1, kind: input, shape index: {}]   ;;  %s1938_s2 = inlined_call_operand.vmem [shape: f32[2,16,1152], index: 2, kind: output, shape index: {}]  }
   0x1 LB: > { %s1376_s10 = sadd.s32 4294967295, %s1540_s9   ;;  %p1380_p0 = scmp.ge.s32.totalorder %s1540_s9, 1  ;;  %s1540_s9 = sphi %s1566_s9, %s12_s9  }
   0x2   : > { %p112_p1 = scmp.lt.s32.totalorder %s1540_s9, 3 }
   0x4   : > { %p113_p2 = pnand %p1380_p0, %p112_p1 }
   0x5   : > { %p134_p3 = scmp.lt.s32.totalorder (!%p113_p2), %s1376_s10, 1  ;;  %s1542_s15 = smov (!%p113_p2), 35   ;;  %v1625_v6 = vld [vmem:[%s1937_s1 + $0x4] ss:$8 sps:$4 sm:$0xff] (!%p113_p2)   ;;  %vm1086_vm0 = vcmask (!%p113_p2), 130048   ;;  %vm215_vm1 = vcmask (!%p113_p2), 285696  }
   0x6   : > { %116 = sbr.rel (%p113_p2) target bundleno = 510 (0x1fe), region = 28  ;;  %s1543_s16 = smov (!%p113_p2), 34   ;;  %1474 = vmatprep.mubr.msk.bf16.mxu0 (!%p113_p2), %vm1086_vm0, %v1625_v6  ;;  %1475 = vmatprep.mubr.msk.bf16.mxu1 (!%p113_p2), %vm1086_vm0, %v1625_v6  ;;  %vm313_vm2 = vcmask (!%p113_p2), 277504   ;;  %vm411_vm3 = vcmask (!%p113_p2), 269312   ;;  %vm509_vm4 = vcmask (!%p113_p2), 7168   ;;  %vm672_vm5 = vcmask (!%p113_p2), 1039360  }
   0x7   : > { %s1544_s17 = smov (!%p113_p2), 33   ;;  %s1545_s18 = smov (!%p113_p2), 1   ;;  %vm770_vm6 = vcmask (!%p113_p2), 777216   ;;  %vm868_vm7 = vcmask (!%p113_p2), 769024   ;;  %vm966_vm8 = vcmask (!%p113_p2), 760832  }
   0x8   : > { %s1546_s19 = smov (!%p113_p2), 127   ;;  %s1547_s20 = smov (!%p113_p2), 95   ;;  %v1784_v61 = vld [vmem:[%s1937_s1] ss:$8 sps:$4 sm:$0xff] (!%p113_p2)  }
   0x9   : > { %s1548_s21 = smov (!%p113_p2), 94   ;;  %s1549_s24 = smov (!%p113_p2), 93  }
   0xd   : > { %s1940_s10 = smov (!%p134_p3, %s1376_s10), 1 }
   0xe   : > { %s1481_s11 = smul.u32 88, %s1940_s10 }
   0xf   : > { %s1482_s27 = smul.u32 144, %s1940_s10 }
  0x10   : > { %s1580_s14 = scalar_lea.vmem %s1936_s0, %s1481_s11 }
  0x11   : > { %v1500_v0 = vld [vmem:[%s1580_s14 + $0x4] ss:$44 sps:$4 sm:$0xff]   ;;  %v1502_v1 = vld [vmem:[%s1580_s14] ss:$44 sps:$4 sm:$0xff]   ;;  %v1503_v2 = vld [vmem:[%s1580_s14 + $0x8] ss:$44 sps:$4 sm:$0xff]   ;;  %s1913_s30 = scalar_lea.vmem %s1938_s2, %s1482_s27 }
  0x12   : > { %197 = vrot.lane.b32.xlu0 %v1500_v0, %s1542_s15  ;;  %195 = vrot.lane.b32.xlu1 %v1502_v1, %s1542_s15  ;;  %v1597_v3 = vld [vmem:[%s1580_s14 + $0x8] ss:$44 sps:$4 sm:$0xff]   ;;  %v1601_v4 = vld [vmem:[%s1580_s14 + $0xc] ss:$44 sps:$4 sm:$0xff]  }
  0x13   : > { %v1606_v5 = vld [vmem:[%s1580_s14 + $0x4] ss:$44 sps:$4 sm:$0xff]   ;;  %v1510_v7 = vld [vmem:[%s1580_s14 + $0xc] ss:$44 sps:$4 sm:$0xff]   ;;  %v1513_v9 = vld [vmem:[%s1580_s14 + $0x14] ss:$44 sps:$4 sm:$0xff]  }
  0x14   : > { %v1511_v8 = vld [vmem:[%s1580_s14 + $0x10] ss:$44 sps:$4 sm:$0xff]   ;;  %v1514_v10 = vld [vmem:[%s1580_s14 + $0x18] ss:$44 sps:$4 sm:$0xff]   ;;  %v1663_v12 = vld [vmem:[%s1580_s14 + $0x14] ss:$44 sps:$4 sm:$0xff]  }
  0x15   : > { %v1659_v11 = vld [vmem:[%s1580_s14 + $0x10] ss:$44 sps:$4 sm:$0xff]   ;;  %v1668_v13 = vld [vmem:[%s1580_s14 + $0x18] ss:$44 sps:$4 sm:$0xff]   ;;  %v1523_v16 = vld [vmem:[%s1580_s14 + $0x20] ss:$44 sps:$4 sm:$0xff]  }
  0x16   : > { %199 = vrot.lane.b32.xlu0 %v1503_v2, %s1542_s15  ;;  %295 = vrot.lane.b32.xlu1 %v1500_v0, %s1543_s16  ;;  %v1673_v14 = vld [vmem:[%s1580_s14 + $0x1c] ss:$44 sps:$4 sm:$0xff]   ;;  %v1525_v17 = vld [vmem:[%s1580_s14 + $0x24] ss:$44 sps:$4 sm:$0xff]  }
  0x17   : > { %v1522_v15 = vld [vmem:[%s1580_s14 + $0x1c] ss:$44 sps:$4 sm:$0xff]   ;;  %v1733_v34 = vld [vmem:[%s1580_s14 + $0x20] ss:$44 sps:$4 sm:$0xff]   ;;  %v1527_v35 = vld [vmem:[%s1580_s14 + $0x24] ss:$44 sps:$4 sm:$0xff]  }
  0x18   : > { %v1529_v40 = vld [vmem:[%s1580_s14 + $0x28] ss:$44 sps:$4 sm:$0xff]  }
  0x1a   : > { %297 = vrot.lane.b32.xlu0 %v1503_v2, %s1543_s16  ;;  %293 = vrot.lane.b32.xlu1 %v1502_v1, %s1543_s16 }
  0x1e   : > { %393 = vrot.lane.b32.xlu0 %v1500_v0, %s1544_s17  ;;  %395 = vrot.lane.b32.xlu1 %v1503_v2, %s1544_s17 }
  0x22   : > { %391 = vrot.lane.b32.xlu0 %v1502_v1, %s1544_s17  ;;  %491 = vrot.lane.b32.xlu1 %v1500_v0, %s1545_s18 }
  0x26   : > { %493 = vrot.lane.b32.xlu0 %v1503_v2, %s1545_s18  ;;  %489 = vrot.lane.b32.xlu1 %v1502_v1, %s1545_s18 }
  0x2a   : > { %654 = vrot.lane.b32.xlu0 %v1597_v3, %s1546_s19  ;;  %656 = vrot.lane.b32.xlu1 %v1601_v4, %s1546_s19 }
  0x2e   : > { %652 = vrot.lane.b32.xlu0 %v1606_v5, %s1546_s19  ;;  %752 = vrot.lane.b32.xlu1 %v1597_v3, %s1547_s20 }
  0x32   : > { %754 = vrot.lane.b32.xlu0 %v1601_v4, %s1547_s20  ;;  %750 = vrot.lane.b32.xlu1 %v1606_v5, %s1547_s20 }
  0x36   : > { %850 = vrot.lane.b32.xlu0 %v1597_v3, %s1548_s21  ;;  %852 = vrot.lane.b32.xlu1 %v1601_v4, %s1548_s21 }
  0x3a   : > { %848 = vrot.lane.b32.xlu0 %v1606_v5, %s1548_s21  ;;  %948 = vrot.lane.b32.xlu1 %v1597_v3, %s1549_s24 }
  0x3e   : > { %950 = vrot.lane.b32.xlu0 %v1601_v4, %s1549_s24  ;;  %946 = vrot.lane.b32.xlu1 %v1606_v5, %s1549_s24 }
  0x42   : > { %201 = vrot.lane.b32.xlu0 %v1510_v7, %s1542_s15  ;;  %203 = vrot.lane.b32.xlu1 %v1511_v8, %s1542_s15 }
  0x46   : > { %205 = vrot.lane.b32.xlu0 %v1513_v9, %s1542_s15  ;;  %207 = vrot.lane.b32.xlu1 %v1514_v10, %s1542_s15 }
  0x4a   : > { %299 = vrot.lane.b32.xlu0 %v1510_v7, %s1543_s16  ;;  %301 = vrot.lane.b32.xlu1 %v1511_v8, %s1543_s16 }
  0x4e   : > { %303 = vrot.lane.b32.xlu0 %v1513_v9, %s1543_s16  ;;  %305 = vrot.lane.b32.xlu1 %v1514_v10, %s1543_s16 }
  0x52   : > { %397 = vrot.lane.b32.xlu0 %v1510_v7, %s1544_s17  ;;  %399 = vrot.lane.b32.xlu1 %v1511_v8, %s1544_s17 }
  0x56   : > { %401 = vrot.lane.b32.xlu0 %v1513_v9, %s1544_s17  ;;  %403 = vrot.lane.b32.xlu1 %v1514_v10, %s1544_s17 }
  0x5a   : > { %495 = vrot.lane.b32.xlu0 %v1510_v7, %s1545_s18  ;;  %497 = vrot.lane.b32.xlu1 %v1511_v8, %s1545_s18 }
  0x5e   : > { %499 = vrot.lane.b32.xlu0 %v1513_v9, %s1545_s18  ;;  %501 = vrot.lane.b32.xlu1 %v1514_v10, %s1545_s18 }
  0x62   : > { %658 = vrot.lane.b32.xlu0 %v1659_v11, %s1546_s19  ;;  %660 = vrot.lane.b32.xlu1 %v1663_v12, %s1546_s19 }
  0x66   : > { %662 = vrot.lane.b32.xlu0 %v1668_v13, %s1546_s19  ;;  %664 = vrot.lane.b32.xlu1 %v1673_v14, %s1546_s19 }
  0x6a   : > { %756 = vrot.lane.b32.xlu0 %v1659_v11, %s1547_s20  ;;  %758 = vrot.lane.b32.xlu1 %v1663_v12, %s1547_s20 }
  0x6e   : > { %760 = vrot.lane.b32.xlu0 %v1668_v13, %s1547_s20  ;;  %762 = vrot.lane.b32.xlu1 %v1673_v14, %s1547_s20 }
  0x72   : > { %854 = vrot.lane.b32.xlu0 %v1659_v11, %s1548_s21  ;;  %856 = vrot.lane.b32.xlu1 %v1663_v12, %s1548_s21 }
  0x76   : > { %858 = vrot.lane.b32.xlu0 %v1668_v13, %s1548_s21  ;;  %860 = vrot.lane.b32.xlu1 %v1673_v14, %s1548_s21 }
  0x7a   : > { %952 = vrot.lane.b32.xlu0 %v1659_v11, %s1549_s24  ;;  %954 = vrot.lane.b32.xlu1 %v1663_v12, %s1549_s24 }
  0x7e   : > { %956 = vrot.lane.b32.xlu0 %v1668_v13, %s1549_s24  ;;  %958 = vrot.lane.b32.xlu1 %v1673_v14, %s1549_s24 }
  0x82   : > { %209 = vrot.lane.b32.xlu0 %v1522_v15, %s1542_s15  ;;  %211 = vrot.lane.b32.xlu1 %v1523_v16, %s1542_s15 }
  0x84   : > { %v198_v18 = vpop.permute.xlu0 %197  ;;  %v196_v19 = vpop.permute.xlu1 %195 }
  0x85   : > { %v216_v23 = vsel %vm215_vm1, %v196_v19, %v198_v18 }
  0x86   : > { %213 = vrot.lane.b32.xlu0 %v1525_v17, %s1542_s15  ;;  %307 = vrot.lane.b32.xlu1 %v1522_v15, %s1543_s16 }
  0x88   : > { %v1710_v20 = vpop.permute.xlu0 %199  ;;  %v296_v21 = vpop.permute.xlu1 %295 }
  0x89   : > { %v217_v22 = vsel %vm215_vm1, %v198_v18, %v1710_v20 }
  0x8a   : > { %309 = vrot.lane.b32.xlu0 %v1523_v16, %s1543_s16  ;;  %1090 = vmatprep.subr.bf16.mxu0 %v217_v22 }
  0x8b   : > { %311 = vrot.lane.b32.xlu1 %v1525_v17, %s1543_s16  ;;  %1091 = vmatpush1.bf16.msra.mxu0 %v216_v23 }
  0x8c   : > { %v1717_v24 = vpop.permute.xlu0 %297  ;;  %v294_v25 = vpop.permute.xlu1 %293 }
  0x8d   : > { %v315_v26 = vsel %vm313_vm2, %v296_v21, %v1717_v24  ;;  %v314_v27 = vsel %vm313_vm2, %v294_v25, %v296_v21 }
  0x8e   : > { %405 = vrot.lane.b32.xlu0 %v1522_v15, %s1544_s17  ;;  %1092 = vmatprep.subr.bf16.mxu0 %v315_v26 }
  0x8f   : > { %407 = vrot.lane.b32.xlu1 %v1523_v16, %s1544_s17  ;;  %1093 = vmatpush1.bf16.msra.mxu0 %v314_v27 }
  0x90   : > { %v394_v28 = vpop.permute.xlu0 %393  ;;  %v1724_v29 = vpop.permute.xlu1 %395 }
  0x91   : > { %v413_v30 = vsel %vm411_vm3, %v394_v28, %v1724_v29 }
  0x92   : > { %409 = vrot.lane.b32.xlu0 %v1525_v17, %s1544_s17  ;;  %1094 = vmatprep.subr.bf16.mxu0 %v413_v30 }
  0x93   : > { %503 = vrot.lane.b32.xlu1 %v1522_v15, %s1545_s18 }
  0x94   : > { %v392_v31 = vpop.permute.xlu0 %391  ;;  %v492_v32 = vpop.permute.xlu1 %491 }
  0x95   : > { %v412_v33 = vsel %vm411_vm3, %v392_v31, %v394_v28 }
  0x96   : > { %505 = vrot.lane.b32.xlu0 %v1523_v16, %s1545_s18  ;;  %1095 = vmatpush1.bf16.msra.mxu0 %v412_v33 }
  0x97   : > { %507 = vrot.lane.b32.xlu1 %v1525_v17, %s1545_s18 }
  0x98   : > { %v1737_v36 = vpop.permute.xlu0 %493  ;;  %v490_v37 = vpop.permute.xlu1 %489 }
  0x99   : > { %v511_v38 = vsel %vm509_vm4, %v492_v32, %v1737_v36  ;;  %v510_v39 = vsel %vm509_vm4, %v490_v37, %v492_v32 }
  0x9a   : > { %666 = vrot.lane.b32.xlu0 %v1733_v34, %s1546_s19  ;;  %1096 = vmatprep.subr.bf16.mxu0 %v511_v38 }
  0x9b   : > { %668 = vrot.lane.b32.xlu1 %v1527_v35, %s1546_s19  ;;  %1097 = vmatpush1.bf16.msra.mxu0 %v510_v39 }
  0x9c   : > { %v655_v41 = vpop.permute.xlu0 %654  ;;  %1098 = vmatprep.subr.bf16.mxu0 %v1597_v3  ;;  %v1747_v42 = vpop.permute.xlu1 %656 }
  0x9d   : > { %v674_v43 = vsel %vm672_vm5, %v655_v41, %v1747_v42 }
  0x9e   : > { %670 = vrot.lane.b32.xlu0 %v1529_v40, %s1546_s19 }
  0x9f   : > { %764 = vrot.lane.b32.xlu1 %v1733_v34, %s1547_s20  ;;  %1099 = vmatpush1.bf16.msra.mxu0 %v1606_v5 }
  0xa0   : > { %v653_v44 = vpop.permute.xlu0 %652  ;;  %1100 = vmatprep.subr.bf16.mxu0 %v674_v43  ;;  %v753_v45 = vpop.permute.xlu1 %752 }
  0xa1   : > { %v673_v46 = vsel %vm672_vm5, %v653_v44, %v655_v41 }
  0xa2   : > { %766 = vrot.lane.b32.xlu0 %v1527_v35, %s1547_s20 }
  0xa3   : > { %768 = vrot.lane.b32.xlu1 %v1529_v40, %s1547_s20  ;;  %1101 = vmatpush1.bf16.msra.mxu0 %v673_v46 }
  0xa4   : > { %v1758_v47 = vpop.permute.xlu0 %754  ;;  %v751_v48 = vpop.permute.xlu1 %750 }
  0xa5   : > { %v772_v49 = vsel %vm770_vm6, %v753_v45, %v1758_v47  ;;  %v771_v50 = vsel %vm770_vm6, %v751_v48, %v753_v45 }
  0xa6   : > { %862 = vrot.lane.b32.xlu0 %v1733_v34, %s1548_s21  ;;  %1102 = vmatprep.subr.bf16.mxu0 %v772_v49 }
  0xa7   : > { %864 = vrot.lane.b32.xlu1 %v1527_v35, %s1548_s21  ;;  %1103 = vmatpush1.bf16.msra.mxu0 %v771_v50 }
  0xa8   : > { %v851_v51 = vpop.permute.xlu0 %850  ;;  %v1766_v52 = vpop.permute.xlu1 %852 }
  0xa9   : > { %v870_v53 = vsel %vm868_vm7, %v851_v51, %v1766_v52 }
  0xaa   : > { %866 = vrot.lane.b32.xlu0 %v1529_v40, %s1548_s21  ;;  %1104 = vmatprep.subr.bf16.mxu0 %v870_v53 }
  0xab   : > { %960 = vrot.lane.b32.xlu1 %v1733_v34, %s1549_s24 }
  0xac   : > { %v849_v54 = vpop.permute.xlu0 %848  ;;  %v949_v55 = vpop.permute.xlu1 %948 }
  0xad   : > { %v869_v56 = vsel %vm868_vm7, %v849_v54, %v851_v51 }
  0xae   : > { %962 = vrot.lane.b32.xlu0 %v1527_v35, %s1549_s24  ;;  %1105 = vmatpush1.bf16.msra.mxu0 %v869_v56 }
  0xaf   : > { %964 = vrot.lane.b32.xlu1 %v1529_v40, %s1549_s24 }
  0xb0   : > { %v1776_v57 = vpop.permute.xlu0 %950  ;;  %v947_v58 = vpop.permute.xlu1 %946 }
  0xb1   : > { %v968_v59 = vsel %vm966_vm8, %v949_v55, %v1776_v57  ;;  %v967_v60 = vsel %vm966_vm8, %v947_v58, %v949_v55 }
  0xb2   : > { %1106 = vmatprep.subr.bf16.mxu0 %v968_v59 }
  0xb3   : > { %1107 = vmatpush1.bf16.msra.mxu0 %v967_v60 }
  0xb4   : > { %v202_v62 = vpop.permute.xlu0 %201  ;;  %v204_v63 = vpop.permute.xlu1 %203 }
  0xb5   : > { %v218_v0 = vsel %vm215_vm1, %v1710_v20, %v202_v62  ;;  %v219_v1 = vsel %vm215_vm1, %v202_v62, %v204_v63 }
  0xb6   : > { %1123 = vmatmul.mubr.bf16.vlgmr.msra.gmra.mrb[0].mxu0 %v1784_v61  ;;  %1133 = vmatprep.subr.bf16.mxu1 %v219_v1 }
  0xb7   : > { %1476 = vmatprep.mubr.msk.bf16.mxu0 %vm1086_vm0, %v1625_v6  ;;  %1134 = vmatpush1.bf16.msra.mxu1 %v218_v0 }
  0xb8   : > { %v206_v2 = vpop.permute.xlu0 %205  ;;  %v1793_v5 = vpop.permute.xlu1 %207 }
  0xb9   : > { %v220_v3 = vsel %vm215_vm1, %v204_v63, %v206_v2  ;;  %v221_v7 = vsel %vm215_vm1, %v206_v2, %v1793_v5 }
  0xba   : > { %1176 = vmatprep.subr.bf16.mxu0 %v221_v7 }
  0xbb   : > { %1177 = vmatpush1.bf16.msra.mxu0 %v220_v3 }
  0xbc   : > { %v300_v8 = vpop.permute.xlu0 %299  ;;  %v302_v9 = vpop.permute.xlu1 %301 }
  0xbd   : > { %v316_v10 = vsel %vm313_vm2, %v1717_v24, %v300_v8  ;;  %v317_v15 = vsel %vm313_vm2, %v300_v8, %v302_v9  ;;  %v1550_v8 = vmov 0  }
  0xbe   : > { %1135 = vmatprep.subr.bf16.mxu1 %v317_v15 }
  0xbf   : > { %1136 = vmatpush1.bf16.msra.mxu1 %v316_v10 }
  0xc0   : > { %v304_v16 = vpop.permute.xlu0 %303  ;;  %v1801_v18 = vpop.permute.xlu1 %305 }
  0xc1   : > { %v318_v17 = vsel %vm313_vm2, %v302_v9, %v304_v16  ;;  %v319_v19 = vsel %vm313_vm2, %v304_v16, %v1801_v18 }
  0xc2   : > { %1178 = vmatprep.subr.bf16.mxu0 %v319_v19 }
  0xc3   : > { %1179 = vmatpush1.bf16.msra.mxu0 %v318_v17 }
  0xc4   : > { %v398_v20 = vpop.permute.xlu0 %397  ;;  %v400_v21 = vpop.permute.xlu1 %399 }
  0xc5   : > { %v414_v22 = vsel %vm411_vm3, %v1724_v29, %v398_v20  ;;  %v415_v23 = vsel %vm411_vm3, %v398_v20, %v400_v21 }
  0xc6   : > { %1137 = vmatprep.subr.bf16.mxu1 %v415_v23 }
  0xc7   : > { %1138 = vmatpush1.bf16.msra.mxu1 %v414_v22 }
  0xc8   : > { %v402_v24 = vpop.permute.xlu0 %401  ;;  %v1809_v26 = vpop.permute.xlu1 %403 }
  0xc9   : > { %v416_v25 = vsel %vm411_vm3, %v400_v21, %v402_v24  ;;  %v417_v27 = vsel %vm411_vm3, %v402_v24, %v1809_v26 }
  0xca   : > { %1180 = vmatprep.subr.bf16.mxu0 %v417_v27 }
  0xcb   : > { %1181 = vmatpush1.bf16.msra.mxu0 %v416_v25 }
  0xcc   : > { %v496_v28 = vpop.permute.xlu0 %495  ;;  %v498_v30 = vpop.permute.xlu1 %497 }
  0xcd   : > { %v512_v31 = vsel %vm509_vm4, %v1737_v36, %v496_v28  ;;  %v513_v29 = vsel %vm509_vm4, %v496_v28, %v498_v30 }
  0xce   : > { %1139 = vmatprep.subr.bf16.mxu1 %v513_v29 }
  0xcf   : > { %1140 = vmatpush1.bf16.msra.mxu1 %v512_v31 }
  0xd0   : > { %v500_v32 = vpop.permute.xlu0 %499  ;;  %v1817_v35 = vpop.permute.xlu1 %501  ;;  %1141 = vmatprep.subr.bf16.mxu1 %v1659_v11 }
  0xd1   : > { %v514_v33 = vsel %vm509_vm4, %v498_v30, %v500_v32  ;;  %v515_v37 = vsel %vm509_vm4, %v500_v32, %v1817_v35  ;;  %v1533_v32 = vld [vmem:[%s1580_s14 + $0x24] ss:$44 sps:$4 sm:$0xff]  }
  0xd2   : > { %1182 = vmatprep.subr.bf16.mxu0 %v515_v37 }
  0xd3   : > { %1142 = vmatpush1.bf16.msra.mxu1 %v1601_v4  ;;  %1183 = vmatpush1.bf16.msra.mxu0 %v514_v33 }
  0xd4   : > { %v659_v38 = vpop.permute.xlu0 %658  ;;  %v661_v36 = vpop.permute.xlu1 %660  ;;  %1184 = vmatprep.subr.bf16.mxu0 %v1668_v13 }
  0xd5   : > { %v675_v39 = vsel %vm672_vm5, %v1747_v42, %v659_v38  ;;  %v676_v40 = vsel %vm672_vm5, %v659_v38, %v661_v36 }
  0xd6   : > { %1143 = vmatprep.subr.bf16.mxu1 %v676_v40 }
  0xd7   : > { %1144 = vmatpush1.bf16.msra.mxu1 %v675_v39  ;;  %1185 = vmatpush1.bf16.msra.mxu0 %v1663_v12 }
  0xd8   : > { %v663_v11 = vpop.permute.xlu0 %662  ;;  %v1829_v43 = vpop.permute.xlu1 %664 }
  0xd9   : > { %v677_v41 = vsel %vm672_vm5, %v661_v36, %v663_v11  ;;  %v678_v4 = vsel %vm672_vm5, %v663_v11, %v1829_v43 }
  0xda   : > { %1186 = vmatprep.subr.bf16.mxu0 %v678_v4 }
  0xdb   : > { %1187 = vmatpush1.bf16.msra.mxu0 %v677_v41 }
  0xdc   : > { %v757_v13 = vpop.permute.xlu0 %756  ;;  %v759_v44 = vpop.permute.xlu1 %758 }
  0xdd   : > { %v773_v42 = vsel %vm770_vm6, %v1758_v47, %v757_v13  ;;  %v774_v45 = vsel %vm770_vm6, %v757_v13, %v759_v44 }
  0xde   : > { %1145 = vmatprep.subr.bf16.mxu1 %v774_v45 }
  0xdf   : > { %1146 = vmatpush1.bf16.msra.mxu1 %v773_v42 }
  0xe0   : > { %v761_v12 = vpop.permute.xlu0 %760  ;;  %v1837_v48 = vpop.permute.xlu1 %762 }
  0xe1   : > { %v775_v46 = vsel %vm770_vm6, %v759_v44, %v761_v12  ;;  %v776_v49 = vsel %vm770_vm6, %v761_v12, %v1837_v48 }
  0xe2   : > { %1188 = vmatprep.subr.bf16.mxu0 %v776_v49 }
  0xe3   : > { %1189 = vmatpush1.bf16.msra.mxu0 %v775_v46 }
  0xe4   : > { %v855_v50 = vpop.permute.xlu0 %854  ;;  %v857_v51 = vpop.permute.xlu1 %856 }
  0xe5   : > { %v871_v53 = vsel %vm868_vm7, %v1766_v52, %v855_v50  ;;  %v872_v47 = vsel %vm868_vm7, %v855_v50, %v857_v51 }
  0xe6   : > { %1147 = vmatprep.subr.bf16.mxu1 %v872_v47 }
  0xe7   : > { %1148 = vmatpush1.bf16.msra.mxu1 %v871_v53 }
  0xe8   : > { %v859_v54 = vpop.permute.xlu0 %858  ;;  %v1845_v56 = vpop.permute.xlu1 %860 }
  0xe9   : > { %v873_v55 = vsel %vm868_vm7, %v857_v51, %v859_v54  ;;  %v874_v58 = vsel %vm868_vm7, %v859_v54, %v1845_v56 }
  0xea   : > { %1190 = vmatprep.subr.bf16.mxu0 %v874_v58 }
  0xeb   : > { %1191 = vmatpush1.bf16.msra.mxu0 %v873_v55 }
  0xec   : > { %v953_v59 = vpop.permute.xlu0 %952  ;;  %v955_v60 = vpop.permute.xlu1 %954 }
  0xed   : > { %v969_v62 = vsel %vm966_vm8, %v1776_v57, %v953_v59  ;;  %v970_v52 = vsel %vm966_vm8, %v953_v59, %v955_v60 }
  0xee   : > { %1149 = vmatprep.subr.bf16.mxu1 %v970_v52 }
  0xef   : > { %1150 = vmatpush1.bf16.msra.mxu1 %v969_v62 }
  0xf0   : > { %v957_v63 = vpop.permute.xlu0 %956  ;;  %v1853_v1 = vpop.permute.xlu1 %958 }
  0xf1   : > { %v971_v0 = vsel %vm966_vm8, %v955_v60, %v957_v63  ;;  %v972_v2 = vsel %vm966_vm8, %v957_v63, %v1853_v1 }
  0xf2   : > { %1192 = vmatprep.subr.bf16.mxu0 %v972_v2  ;;  %1166 = vmatmul.mubr.bf16.vlgmr.msra.gmra.mrb[0].mxu1 %v1784_v61 }
  0xf3   : > { %1193 = vmatpush1.bf16.msra.mxu0 %v971_v0  ;;  %1477 = vmatprep.mubr.msk.bf16.mxu1 %vm1086_vm0, %v1625_v6 }
  0xf4   : > { %v210_v3 = vpop.permute.xlu0 %209  ;;  %v212_v7 = vpop.permute.xlu1 %211  ;;  %1262 = vmatprep.subr.bf16.mxu0 %v1550_v8 }
  0xf5   : > { %v222_v57 = vsel %vm215_vm1, %v1793_v5, %v210_v3  ;;  %v223_v9 = vsel %vm215_vm1, %v210_v3, %v212_v7 }
  0xf6   : > { %1219 = vmatprep.subr.bf16.mxu1 %v223_v9  ;;  %1209 = vmatmul.mubr.bf16.vlgmr.msra.gmra.mrb[4].mxu0 %v1784_v61 }
  0xf7   : > { %1220 = vmatpush1.bf16.msra.mxu1 %v222_v57  ;;  %1478 = vmatprep.mubr.msk.bf16.mxu0 %vm1086_vm0, %v1625_v6 }
  0xf8   : > { %v214_v10 = vpop.permute.xlu0 %213  ;;  %v308_v16 = vpop.permute.xlu1 %307 }
  0xf9   : > { %v224_v15 = vsel %vm215_vm1, %v212_v7, %v214_v10  ;;  %v320_v20 = vsel %vm313_vm2, %v1801_v18, %v308_v16 }
  0xfa   : > { %1263 = vmatpush1.bf16.msra.mxu0 %v224_v15 }
  0xfb   : > { %1264 = vmatprep.subr.bf16.mxu0 %v1550_v8 }
  0xfc   : > { %v310_v5 = vpop.permute.xlu0 %309 }
  0xfd   : > { %v312_v17 = vpop.permute.xlu1 %311  ;;  %v321_v19 = vsel %vm313_vm2, %v308_v16, %v310_v5 }
  0xfe   : > { %v322_v21 = vsel %vm313_vm2, %v310_v5, %v312_v17  ;;  %1221 = vmatprep.subr.bf16.mxu1 %v321_v19 }
  0xff   : > { %1265 = vmatpush1.bf16.msra.mxu0 %v322_v21  ;;  %1222 = vmatpush1.bf16.msra.mxu1 %v320_v20 }
 0x100   : > { %v406_v22 = vpop.permute.xlu0 %405  ;;  %1266 = vmatprep.subr.bf16.mxu0 %v1550_v8 }
 0x101   : > { %v418_v6 = vsel %vm411_vm3, %v1809_v26, %v406_v22  ;;  %v408_v23 = vpop.permute.xlu1 %407 }
 0x102   : > { %v419_v24 = vsel %vm411_vm3, %v406_v22, %v408_v23 }
 0x103   : > { %1223 = vmatprep.subr.bf16.mxu1 %v419_v24 }
 0x104   : > { %1224 = vmatpush1.bf16.msra.mxu1 %v418_v6  ;;  %v410_v25 = vpop.permute.xlu0 %409 }
 0x105   : > { %v420_v18 = vsel %vm411_vm3, %v408_v23, %v410_v25  ;;  %v504_v27 = vpop.permute.xlu1 %503 }
 0x106   : > { %1267 = vmatpush1.bf16.msra.mxu0 %v420_v18  ;;  %v516_v26 = vsel %vm509_vm4, %v1817_v35, %v504_v27 }
 0x107   : > { %1268 = vmatprep.subr.bf16.mxu0 %v1550_v8 }
 0x108   : > { %v506_v28 = vpop.permute.xlu0 %505 }
 0x109   : > { %v508_v30 = vpop.permute.xlu1 %507  ;;  %v517_v31 = vsel %vm509_vm4, %v504_v27, %v506_v28 }
 0x10a   : > { %v518_v29 = vsel %vm509_vm4, %v506_v28, %v508_v30  ;;  %1225 = vmatprep.subr.bf16.mxu1 %v517_v31 }
 0x10b   : > { %1269 = vmatpush1.bf16.msra.mxu0 %v518_v29  ;;  %1226 = vmatpush1.bf16.msra.mxu1 %v516_v26 }
 0x10c   : > { %v667_v33 = vpop.permute.xlu0 %666  ;;  %1270 = vmatprep.subr.bf16.mxu0 %v1550_v8  ;;  %1227 = vmatprep.subr.bf16.mxu1 %v1733_v34 }
 0x10d   : > { %v669_v37 = vpop.permute.xlu1 %668  ;;  %v679_v40 = vsel %vm672_vm5, %v1829_v43, %v667_v33 }
 0x10e   : > { %v680_v38 = vsel %vm672_vm5, %v667_v33, %v669_v37 }
 0x10f   : > { %1271 = vmatpush1.bf16.msra.mxu0 %v1533_v32  ;;  %1228 = vmatpush1.bf16.msra.mxu1 %v1673_v14 }
 0x110   : > { %v671_v36 = vpop.permute.xlu0 %670  ;;  %1229 = vmatprep.subr.bf16.mxu1 %v680_v38  ;;  %1272 = vmatprep.subr.bf16.mxu0 %v1550_v8 }
 0x111   : > { %v681_v35 = vsel %vm672_vm5, %v669_v37, %v671_v36  ;;  %v765_v39 = vpop.permute.xlu1 %764 }
 0x112   : > { %v777_v41 = vsel %vm770_vm6, %v1837_v48, %v765_v39 }
 0x113   : > { %1273 = vmatpush1.bf16.msra.mxu0 %v681_v35  ;;  %1230 = vmatpush1.bf16.msra.mxu1 %v679_v40 }
 0x114   : > { %v767_v11 = vpop.permute.xlu0 %766  ;;  %1274 = vmatprep.subr.bf16.mxu0 %v1550_v8 }
 0x115   : > { %v769_v34 = vpop.permute.xlu1 %768  ;;  %v778_v14 = vsel %vm770_vm6, %v765_v39, %v767_v11 }
 0x116   : > { %v779_v4 = vsel %vm770_vm6, %v767_v11, %v769_v34  ;;  %1231 = vmatprep.subr.bf16.mxu1 %v778_v14 }
 0x117   : > { %1275 = vmatpush1.bf16.msra.mxu0 %v779_v4  ;;  %1232 = vmatpush1.bf16.msra.mxu1 %v777_v41 }
 0x118   : > { %v863_v13 = vpop.permute.xlu0 %862  ;;  %1276 = vmatprep.subr.bf16.mxu0 %v1550_v8 }
 0x119   : > { %v875_v43 = vsel %vm868_vm7, %v1845_v56, %v863_v13  ;;  %v865_v44 = vpop.permute.xlu1 %864 }
 0x11a   : > { %v876_v42 = vsel %vm868_vm7, %v863_v13, %v865_v44 }
 0x11b   : > { %1233 = vmatprep.subr.bf16.mxu1 %v876_v42 }
 0x11c   : > { %1234 = vmatpush1.bf16.msra.mxu1 %v875_v43  ;;  %v867_v45 = vpop.permute.xlu0 %866 }
 0x11d   : > { %v877_v12 = vsel %vm868_vm7, %v865_v44, %v867_v45  ;;  %v961_v46 = vpop.permute.xlu1 %960 }
 0x11e   : > { %1277 = vmatpush1.bf16.msra.mxu0 %v877_v12  ;;  %v973_v51 = vsel %vm966_vm8, %v1853_v1, %v961_v46 }
 0x11f   : > { %1278 = vmatprep.subr.bf16.mxu0 %v1550_v8 }
 0x120   : > { %v963_v48 = vpop.permute.xlu0 %962 }
 0x121   : > { %v965_v49 = vpop.permute.xlu1 %964  ;;  %v974_v50 = vsel %vm966_vm8, %v961_v46, %v963_v48 }
 0x122   : > { %v975_v53 = vsel %vm966_vm8, %v963_v48, %v965_v49  ;;  %1235 = vmatprep.subr.bf16.mxu1 %v974_v50 }
 0x123   : > { %1279 = vmatpush1.bf16.msra.mxu0 %v975_v53  ;;  %1236 = vmatpush1.bf16.msra.mxu1 %v973_v51 }
 0x126   : > { %1295 = vmatmul.mubr.bf16.vlgmr.msra.gmra.mrb[8].mxu0 %v1784_v61  ;;  %1252 = vmatmul.mubr.bf16.vlgmr.msra.gmra.mrb[4].mxu1 %v1784_v61 }
 0x189   : > { %v1124_v47 = vpop.f32.mrb[0].mxu0 }
 0x18a   : > { %1303 = vst [vmem:[%s1913_s30] sm:$0xff] %v1124_v47  ;;  %v1126_v54 = vpop.f32.mrb[1].mxu0 }
 0x18b   : > { %1304 = vst [vmem:[%s1913_s30 + $0x8] sm:$0xff] %v1126_v54  ;;  %v1128_v61 = vpop.f32.mrb[2].mxu0 }
 0x18c   : > { %1312 = vst [vmem:[%s1913_s30 + $0x48] sm:$0xff] %v1128_v61  ;;  %v1130_v55 = vpop.f32.mrb[3].mxu0 }
 0x18d   : > { %1313 = vst [vmem:[%s1913_s30 + $0x50] sm:$0xff] %v1130_v55 }
 0x1c5   : > { %v1167_v56 = vpop.f32.mrb[0].mxu1 }
 0x1c6   : > { %1305 = vst [vmem:[%s1913_s30 + $0x10] sm:$0xff] %v1167_v56  ;;  %v1169_v58 = vpop.f32.mrb[1].mxu1 }
 0x1c7   : > { %1306 = vst [vmem:[%s1913_s30 + $0x18] sm:$0xff] %v1169_v58  ;;  %v1171_v59 = vpop.f32.mrb[2].mxu1 }
 0x1c8   : > { %1314 = vst [vmem:[%s1913_s30 + $0x58] sm:$0xff] %v1171_v59  ;;  %v1173_v60 = vpop.f32.mrb[3].mxu1 }
 0x1c9   : > { %v1210_v62 = vpop.f32.mrb[4].mxu0  ;;  %1315 = vst [vmem:[%s1913_s30 + $0x60] sm:$0xff] %v1173_v60 }
 0x1ca   : > { %1307 = vst [vmem:[%s1913_s30 + $0x20] sm:$0xff] %v1210_v62  ;;  %v1212_v52 = vpop.f32.mrb[5].mxu0 }
 0x1cb   : > { %1308 = vst [vmem:[%s1913_s30 + $0x28] sm:$0xff] %v1212_v52  ;;  %v1214_v63 = vpop.f32.mrb[6].mxu0 }
 0x1cc   : > { %1316 = vst [vmem:[%s1913_s30 + $0x68] sm:$0xff] %v1214_v63  ;;  %v1216_v0 = vpop.f32.mrb[7].mxu0 }
 0x1cd   : > { %1317 = vst [vmem:[%s1913_s30 + $0x70] sm:$0xff] %v1216_v0 }
 0x1f9   : > { %v1296_v1 = vpop.f32.mrb[8].mxu0  ;;  %v1253_v2 = vpop.f32.mrb[4].mxu1 }
 0x1fa   : > { %1311 = vst [vmem:[%s1913_s30 + $0x40] sm:$0xff] %v1296_v1  ;;  %1309 = vst [vmem:[%s1913_s30 + $0x30] sm:$0xff] %v1253_v2  ;;  %v1298_v3 = vpop.f32.mrb[9].mxu0  ;;  %v1255_v57 = vpop.f32.mrb[5].mxu1 }
 0x1fb   : > { %1310 = vst [vmem:[%s1913_s30 + $0x38] sm:$0xff] %v1255_v57  ;;  %v1299_v7 = vpop.f32.mrb[10].mxu0  ;;  %v1257_v8 = vpop.f32.mrb[6].mxu1 }
 0x1fc   : > { %1320 = vst [vmem:[%s1913_s30 + $0x88] sm:$0xff] %v1299_v7  ;;  %1318 = vst [vmem:[%s1913_s30 + $0x78] sm:$0xff] %v1257_v8  ;;  %v1301_v9 = vpop.f32.mrb[11].mxu0  ;;  %v1259_v10 = vpop.f32.mrb[7].mxu1 }
 0x1fd   : > { %1319 = vst [vmem:[%s1913_s30 + $0x80] sm:$0xff] %v1259_v10 }
 0x1fe PF: > { %s12_s9 = sadd.s32 1, %s1540_s9  }
 0x1ff   : > { %p9_p4 = scmp.ge.s32.totalorder %s12_s9, 4  }
 0x201   :  { %11 = sbr.rel (!%p9_p4) target bundleno = 1 (0x1), region = 58 }

</bundles_post_ra>
